<compile_context>
chip_gen: v6e
topology: v6e:2x2x1
jax: 0.10.0
libtpu: 0.0.40
codegen_flags: <defaults>
</compile_context>

<pallas_src>
import functools

import jax
import jax.numpy as jnp
from jax.experimental import pallas as pl
from jax.experimental.pallas import tpu as pltpu


_VMEM_LIMIT = 32 * 1024 * 1024          # scoped-VMEM cap (bump over v5e's 16 MiB default)
_ROW_BUDGET = 14 * 1024 * 1024          # conservative per-kernel working-set budget


# ------------------------------- helpers ------------------------------------


def _pick_tile(n, target):
    """Largest divisor of n that is <= target and a multiple of 8 (else n)."""
    if n <= target:
        return n
    for t in range(min(target, n), 7, -1):
        if n % t == 0 and t % 8 == 0:
            return t
    return n


def _row_tile(m, row_bytes, weight_bytes, budget=_ROW_BUDGET):
    """Pick the largest row tile whose double-buffered footprint fits the budget."""
    target = 64
    for t in (512, 256, 128, 64):
        if 2 * weight_bytes + 2 * t * row_bytes <= budget:
            target = t
            break
    return _pick_tile(m, target)


def _pad_rows(a, mult=8):
    """Pad leading (row) dim to a multiple of `mult` so tiling never degenerates."""
    pad = (-a.shape[0]) % mult
    if pad:
        a = jnp.pad(a, ((0, pad),) + ((0, 0),) * (a.ndim - 1))
    return a


def _gelu_exact(x):
    # Exact (erf-based) GELU matching torch.nn.functional.gelu default.
    # erf via the Abramowitz-Stegun 7.1.26 rational approximation (|err| < 1.5e-7),
    # built only from exp so it lowers cleanly in Mosaic.
    z = x * 0.7071067811865476
    za = jnp.abs(z)
    t = 1.0 / (1.0 + 0.3275911 * za)
    poly = ((((1.061405429 * t - 1.453152027) * t + 1.421413741) * t
             - 0.284496736) * t + 0.254829592) * t
    erf_abs = 1.0 - poly * jnp.exp(-za * za)
    erf = jnp.where(z >= 0, erf_abs, -erf_abs)
    return 0.5 * x * (1.0 + erf)


# ----------------------- fused LayerNorm + Linear ----------------------------


def _ln_linear_kernel(x_ref, g_ref, bln_ref, w_ref, b_ref, o_ref, *, eps):
    x = x_ref[...].astype(jnp.float32)                 # (tm, Cin)
    mean = jnp.mean(x, axis=-1, keepdims=True)
    xc = x - mean
    var = jnp.mean(xc * xc, axis=-1, keepdims=True)    # biased var (PyTorch LN)
    xn = xc * jax.lax.rsqrt(var + eps) * g_ref[...] + bln_ref[...]
    y = jnp.dot(xn.astype(jnp.bfloat16), w_ref[...],   # weights already bf16
                preferred_element_type=jnp.float32) + b_ref[...]
    o_ref[...] = y.astype(o_ref.dtype)


def ln_linear(x, g, bln, w, b, eps, out_dtype=None):
    # y = LayerNorm(x; g, bln, eps) @ w + b        x: (M, Cin), w: (Cin, Cout) bf16
    M0, Cin = x.shape
    Cout = w.shape[1]
    out_dtype = x.dtype if out_dtype is None else out_dtype
    x = _pad_rows(x)
    M = x.shape[0]
    row_bytes = x.dtype.itemsize * Cin + jnp.dtype(out_dtype).itemsize * Cout
    tm = _row_tile(M, row_bytes, w.dtype.itemsize * Cin * Cout)
    out = pl.pallas_call(
        functools.partial(_ln_linear_kernel, eps=eps),
        out_shape=jax.ShapeDtypeStruct((M, Cout), out_dtype),
        grid=(M // tm,),
        in_specs=[pl.BlockSpec((tm, Cin), lambda i: (i, 0)),
                  pl.BlockSpec((1, Cin), lambda i: (0, 0)),
                  pl.BlockSpec((1, Cin), lambda i: (0, 0)),
                  pl.BlockSpec((Cin, Cout), lambda i: (0, 0)),
                  pl.BlockSpec((1, Cout), lambda i: (0, 0))],
        out_specs=pl.BlockSpec((tm, Cout), lambda i: (i, 0)),
        compiler_params=pltpu.CompilerParams(
            dimension_semantics=("parallel",),
            vmem_limit_bytes=_VMEM_LIMIT),
        cost_estimate=pl.CostEstimate(
            flops=2 * M * Cin * Cout, transcendentals=0,
            bytes_accessed=(x.dtype.itemsize * M * Cin
                            + w.dtype.itemsize * Cin * Cout
                            + jnp.dtype(out_dtype).itemsize * M * Cout)),
    )(x, g.reshape(1, Cin), bln.reshape(1, Cin), w, b.reshape(1, Cout))
    return out[:M0] if M != M0 else out


# ------------------- fused Linear + bias + residual (fc2) --------------------


def _linear_res_kernel(x_ref, w_ref, b_ref, r_ref, o_ref):
    y = (jnp.dot(x_ref[...].astype(jnp.bfloat16), w_ref[...],
                 preferred_element_type=jnp.float32)
         + b_ref[...] + r_ref[...].astype(jnp.float32))
    o_ref[...] = y.astype(o_ref.dtype)


def linear_res(x, w, b, res):
    # y = x @ w + b + res          x: (M, Cin) bf16, w: (Cin, Cout) bf16, res f32
    M0, Cin = x.shape
    Cout = w.shape[1]
    x = _pad_rows(x)
    res = _pad_rows(res)
    M = x.shape[0]
    row_bytes = x.dtype.itemsize * Cin + 2 * res.dtype.itemsize * Cout
    tm = _row_tile(M, row_bytes, w.dtype.itemsize * Cin * Cout)
    out = pl.pallas_call(
        _linear_res_kernel,
        out_shape=jax.ShapeDtypeStruct((M, Cout), res.dtype),
        grid=(M // tm,),
        in_specs=[pl.BlockSpec((tm, Cin), lambda i: (i, 0)),
                  pl.BlockSpec((Cin, Cout), lambda i: (0, 0)),
                  pl.BlockSpec((1, Cout), lambda i: (0, 0)),
                  pl.BlockSpec((tm, Cout), lambda i: (i, 0))],
        out_specs=pl.BlockSpec((tm, Cout), lambda i: (i, 0)),
        compiler_params=pltpu.CompilerParams(
            dimension_semantics=("parallel",),
            vmem_limit_bytes=_VMEM_LIMIT),
        cost_estimate=pl.CostEstimate(
            flops=2 * M * Cin * Cout, transcendentals=0,
            bytes_accessed=(x.dtype.itemsize * M * Cin
                            + w.dtype.itemsize * Cin * Cout
                            + 2 * 4 * M * Cout)),
    )(x, w, b.reshape(1, Cout), res)
    return out[:M0] if M != M0 else out


# ------- fused LN1 + SR conv (patch matmul) + SR LayerNorm + kv Linear --------


def _sr_kv_kernel(xp_ref, g1_ref, b1_ref, srw_ref, srb_ref, g2_ref, b2_ref,
                  kvw_ref, kvb_ref, o_ref, *, C, sr2, eps1, eps2):
    xp = xp_ref[...].astype(jnp.float32)               # (tmk, sr2*C)
    g1 = g1_ref[...]
    b1 = b1_ref[...]
    # LN1 per patch position, assembled into one bf16 slab so the SR conv becomes
    # a single K = sr2*C matmul (fills the 256-deep MXU on v6e/v7x).
    segs = []
    for s in range(sr2):
        seg = xp[:, s * C:(s + 1) * C]
        mean = jnp.mean(seg, axis=-1, keepdims=True)
        sc = seg - mean
        var = jnp.mean(sc * sc, axis=-1, keepdims=True)
        segs.append((sc * jax.lax.rsqrt(var + eps1) * g1 + b1)
                    .astype(jnp.bfloat16))
    slab = jnp.concatenate(segs, axis=-1)              # (tmk, sr2*C) bf16
    xr = jnp.dot(slab, srw_ref[...],
                 preferred_element_type=jnp.float32) + srb_ref[...]
    # Attention.norm (default eps=1e-5)
    mean = jnp.mean(xr, axis=-1, keepdims=True)
    xc = xr - mean
    var = jnp.mean(xc * xc, axis=-1, keepdims=True)
    xrn = xc * jax.lax.rsqrt(var + eps2) * g2_ref[...] + b2_ref[...]
    kv = jnp.dot(xrn.astype(jnp.bfloat16), kvw_ref[...],
                 preferred_element_type=jnp.float32) + kvb_ref[...]
    o_ref[...] = kv.astype(o_ref.dtype)


def sr_kv(xp, p, C, sr_ratio):
    # xp: (B*Nk, sr*sr*C) patch-flattened raw tokens -> kv: (B*Nk, 2C) bf16
    Mk0, P = xp.shape
    Cout = p['kv_w'].shape[1]
    xp = _pad_rows(xp)
    Mk = xp.shape[0]
    row_bytes = xp.dtype.itemsize * P + 2 * Cout
    wbytes = 2 * (P * C + C * Cout)
    tmk = _row_tile(Mk, row_bytes, wbytes)
    out = pl.pallas_call(
        functools.partial(_sr_kv_kernel, C=C, sr2=sr_ratio * sr_ratio,
                          eps1=1e-6, eps2=1e-5),
        out_shape=jax.ShapeDtypeStruct((Mk, Cout), jnp.bfloat16),
        grid=(Mk // tmk,),
        in_specs=[pl.BlockSpec((tmk, P), lambda i: (i, 0)),
                  pl.BlockSpec((1, C), lambda i: (0, 0)),
                  pl.BlockSpec((1, C), lambda i: (0, 0)),
                  pl.BlockSpec((P, C), lambda i: (0, 0)),
                  pl.BlockSpec((1, C), lambda i: (0, 0)),
                  pl.BlockSpec((1, C), lambda i: (0, 0)),
                  pl.BlockSpec((1, C), lambda i: (0, 0)),
                  pl.BlockSpec((C, Cout), lambda i: (0, 0)),
                  pl.BlockSpec((1, Cout), lambda i: (0, 0))],
        out_specs=pl.BlockSpec((tmk, Cout), lambda i: (i, 0)),
        compiler_params=pltpu.CompilerParams(
            dimension_semantics=("parallel",),
            vmem_limit_bytes=_VMEM_LIMIT),
        cost_estimate=pl.CostEstimate(
            flops=2 * Mk * P * C + 2 * Mk * C * Cout, transcendentals=0,
            bytes_accessed=(xp.dtype.itemsize * Mk * P
                            + 2 * (P * C + C * Cout) + 2 * Mk * Cout)),
    )(xp, p['norm1_g'].reshape(1, C), p['norm1_b'].reshape(1, C),
      p['sr_w'], p['sr_b'].reshape(1, C),
      p['srnorm_g'].reshape(1, C), p['srnorm_b'].reshape(1, C),
      p['kv_w'], p['kv_b'].reshape(1, Cout))
    return out[:Mk0] if Mk != Mk0 else out


# ---------------- fused attention + softmax + proj + residual ----------------


def _attn_kernel(q_ref, kv_ref, res_ref, pw_ref, pb_ref, o_ref, attn_sc,
                 *, num_heads, head_dim, scale):
    q = q_ref[0]                                       # (tq, C)   bf16
    kv = kv_ref[0]                                     # (Nk, 2C)  bf16
    C = num_heads * head_dim
    for h in range(num_heads):
        lo = h * head_dim
        qh = q[:, lo:lo + head_dim]
        kh = kv[:, lo:lo + head_dim]
        vh = kv[:, C + lo:C + lo + head_dim]
        s = jax.lax.dot_general(qh, kh, (((1,), (1,)), ((), ())),
                                preferred_element_type=jnp.float32) * scale
        s = s - jnp.max(s, axis=-1, keepdims=True)
        pexp = jnp.exp(s)
        pexp = pexp * pl.reciprocal(jnp.sum(pexp, axis=-1, keepdims=True),
                                    approx=True)
        # accumulate per-head output into a lane-dense (tq, C) f32 scratch
        attn_sc[:, lo:lo + head_dim] = jnp.dot(
            pexp.astype(jnp.bfloat16), vh, preferred_element_type=jnp.float32)
    y = (jnp.dot(attn_sc[...].astype(jnp.bfloat16), pw_ref[...],
                 preferred_element_type=jnp.float32)
         + pb_ref[...] + res_ref[0])
    o_ref[0] = y.astype(o_ref.dtype)


def attention_proj_res(q, kv, x_res, proj_w, proj_b, *, num_heads, scale):
    # q: (B, N, C) bf16; kv: (B, Nk, 2C) bf16; x_res: (B, N, C) f32
    B, N, C = q.shape
    Nk = kv.shape[1]
    d = C // num_heads
    # Cap tq so the (tq, Nk) score matrix + resident kv block stay well inside
    # VMEM/vregs (matters on v7x's 64 MiB VMEM and sr_ratio==1 high-res stages).
    tq_target = 128
    while tq_target > 16 and tq_target * Nk * 4 > (2 << 20):
        tq_target //= 2
    tq = _pick_tile(N, tq_target)
    # TODO(synk): for very long kv (sr_ratio==1 at high resolution) switch to a
    # flash-style inner kv loop with online softmax instead of a resident kv block.
    return pl.pallas_call(
        functools.partial(_attn_kernel, num_heads=num_heads, head_dim=d,
                          scale=scale),
        out_shape=jax.ShapeDtypeStruct((B, N, C), x_res.dtype),
        grid=(B, N // tq),
        in_specs=[pl.BlockSpec((1, tq, C), lambda b, i: (b, i, 0)),
                  pl.BlockSpec((1, Nk, 2 * C), lambda b, i: (b, 0, 0)),
                  pl.BlockSpec((1, tq, C), lambda b, i: (b, i, 0)),
                  pl.BlockSpec((C, C), lambda b, i: (0, 0)),
                  pl.BlockSpec((1, C), lambda b, i: (0, 0))],
        out_specs=pl.BlockSpec((1, tq, C), lambda b, i: (b, i, 0)),
        scratch_shapes=[pltpu.VMEM((tq, C), jnp.float32)],
        compiler_params=pltpu.CompilerParams(
            dimension_semantics=("parallel", "parallel"),
            vmem_limit_bytes=_VMEM_LIMIT),
        cost_estimate=pl.CostEstimate(
            flops=4 * B * N * Nk * C + 2 * B * N * C * C,
            transcendentals=B * num_heads * N * Nk,
            bytes_accessed=(2 * B * N * C + 2 * B * Nk * 2 * C
                            + 2 * 4 * B * N * C + 2 * C * C)),
    )(q, kv, x_res, proj_w, proj_b.reshape(1, C))


# -------------------- fused depthwise 3x3 + bias + GELU ----------------------


def _dwconv_gelu_kernel(x_ref, w_ref, b_ref, o_ref, pad_ref, *, H, W):
    tc = x_ref.shape[-1]
    # Halo only along H (outermost axis): aligned, unmasked stores; only 2 rows zeroed.
    zrow = jnp.zeros((W, tc), jnp.float32)
    pad_ref[0] = zrow
    pad_ref[H + 1] = zrow
    pad_ref[1:H + 1] = x_ref[0].astype(jnp.float32)
    xc = pad_ref[...]                                   # (H+2, W, tc) f32
    # +/-1 W shifts via XLU sublane rotate + edge masks (no misaligned slice copies).
    col = jax.lax.broadcasted_iota(jnp.int32, xc.shape, 1)
    xl = jnp.where(col >= 1, pltpu.roll(xc, shift=1, axis=1), 0.0)          # x[:, w-1]
    xr = jnp.where(col <= W - 2, pltpu.roll(xc, shift=W - 1, axis=1), 0.0)  # x[:, w+1]
    w = w_ref[...]                                      # (9, tc)
    srcs = (xl, xc, xr)
    acc = jnp.zeros((H, W, tc), jnp.float32)
    for i in range(3):          # kh: slices along axis 0 are plain address offsets
        for j in range(3):      # kw
            acc = acc + srcs[j][i:i + H] * w[i * 3 + j]
    o_ref[0] = _gelu_exact(acc + b_ref[0]).astype(o_ref.dtype)


def dwconv_gelu(x_nhwc, w9c, b):
    # x_nhwc: (B, H, W, Ch) bf16; w9c: (9, Ch) taps row-major (kh, kw); b: (Ch,)
    B, H, W, Ch = x_nhwc.shape
    tc = 128 if (Ch > 128 and Ch % 128 == 0) else Ch
    return pl.pallas_call(
        functools.partial(_dwconv_gelu_kernel, H=H, W=W),
        out_shape=jax.ShapeDtypeStruct((B, H, W, Ch), x_nhwc.dtype),
        grid=(B, Ch // tc),
        in_specs=[pl.BlockSpec((1, H, W, tc), lambda bb, c: (bb, 0, 0, c)),
                  pl.BlockSpec((9, tc), lambda bb, c: (0, c)),
                  pl.BlockSpec((1, tc), lambda bb, c: (0, c))],
        out_specs=pl.BlockSpec((1, H, W, tc), lambda bb, c: (bb, 0, 0, c)),
        scratch_shapes=[pltpu.VMEM((H + 2, W, tc), jnp.float32)],
        compiler_params=pltpu.CompilerParams(
            dimension_semantics=("parallel", "parallel"),
            vmem_limit_bytes=_VMEM_LIMIT),
        cost_estimate=pl.CostEstimate(
            flops=2 * 9 * B * H * W * Ch,
            transcendentals=B * H * W * Ch,
            bytes_accessed=2 * 2 * B * H * W * Ch + 4 * 10 * Ch),
    )(x_nhwc, w9c, b.reshape(1, Ch))


# ------------------------------ Block forward --------------------------------


def block_forward(x, H, W, p, *, num_heads, sr_ratio):
    B, N, C = x.shape
    d = C // num_heads
    scale = d ** (-0.5)
    x2d = x.reshape(B * N, C)

    # ---- x = x + attn(norm1(x)) ----
    if sr_ratio > 1:
        q = ln_linear(x2d, p['norm1_g'], p['norm1_b'], p['q_w'], p['q_b'],
                      eps=1e-6, out_dtype=jnp.bfloat16)
        Hs, Ws = H // sr_ratio, W // sr_ratio
        Nk = Hs * Ws
        # patch-flatten of the RAW tokens (the LN1 is recomputed inside sr_kv)
        xp = x.reshape(B, Hs, sr_ratio, Ws, sr_ratio, C)
        xp = xp.transpose(0, 1, 3, 2, 4, 5).reshape(B * Nk,
                                                    sr_ratio * sr_ratio * C)
        kv = sr_kv(xp, p, C, sr_ratio)                           # (B*Nk, 2C) bf16
    else:
        Nk = N
        # fused q+kv: one LN pass, one kernel, one read of x
        qkv_w = jnp.concatenate([p['q_w'], p['kv_w']], axis=1)   # (C, 3C) bf16
        qkv_b = jnp.concatenate([p['q_b'], p['kv_b']], axis=0)
        qkv = ln_linear(x2d, p['norm1_g'], p['norm1_b'], qkv_w, qkv_b,
                        eps=1e-6, out_dtype=jnp.bfloat16)
        q, kv = qkv[:, :C], qkv[:, C:]

    x = attention_proj_res(q.reshape(B, N, C), kv.reshape(B, Nk, 2 * C), x,
                           p['proj_w'], p['proj_b'],
                           num_heads=num_heads, scale=scale)     # (B, N, C) f32

    # ---- x = x + mlp(norm2(x)) ----
    h = ln_linear(x.reshape(B * N, C), p['norm2_g'], p['norm2_b'],
                  p['fc1_w'], p['fc1_b'], eps=1e-6,
                  out_dtype=jnp.bfloat16)                        # (B*N, hidden) bf16
    hidden = h.shape[1]
    hg = dwconv_gelu(h.reshape(B, H, W, hidden), p['dw_w'], p['dw_b'])
    out = linear_res(hg.reshape(B * N, hidden), p['fc2_w'], p['fc2_b'],
                     x.reshape(B * N, C))
    return out.reshape(B, N, C)


# ------------------------------ Param init ------------------------------------


def init_params(key, dim, num_heads, mlp_ratio, sr_ratio):
    hidden = int(dim * mlp_ratio)
    ks = jax.random.split(key, 8)
    f32, bf16 = jnp.float32, jnp.bfloat16

    def w(k, shape):
        # MXU weights stored once in bf16: half the HBM/VMEM traffic, zero extra
        # precision loss (the MXU consumes bf16 with f32 accumulation anyway).
        return (jax.random.normal(k, shape, f32) * 0.02).astype(bf16)

    p = {
        'norm1_g': jnp.ones((dim,), f32), 'norm1_b': jnp.zeros((dim,), f32),
        'q_w': w(ks[0], (dim, dim)), 'q_b': jnp.zeros((dim,), f32),
        'kv_w': w(ks[1], (dim, 2 * dim)), 'kv_b': jnp.zeros((2 * dim,), f32),
        'proj_w': w(ks[2], (dim, dim)), 'proj_b': jnp.zeros((dim,), f32),
        'norm2_g': jnp.ones((dim,), f32), 'norm2_b': jnp.zeros((dim,), f32),
        'fc1_w': w(ks[3], (dim, hidden)), 'fc1_b': jnp.zeros((hidden,), f32),
        # depthwise 3x3 weights stored as (9, hidden): taps row-major (kh, kw)
        'dw_w': jax.random.normal(ks[4], (9, hidden), f32) * 0.02,
        'dw_b': jnp.zeros((hidden,), f32),
        'fc2_w': w(ks[5], (hidden, dim)), 'fc2_b': jnp.zeros((dim,), f32),
    }
    if sr_ratio > 1:
        # Conv2d(dim, dim, k=sr, stride=sr) weight flattened to (sr*sr*dim, dim)
        # with patch ordering (kh, kw, cin) matching the wrapper's patch flatten.
        p['sr_w'] = w(ks[6], (sr_ratio * sr_ratio * dim, dim))
        p['sr_b'] = jnp.zeros((dim,), f32)
        p['srnorm_g'] = jnp.ones((dim,), f32)
        p['srnorm_b'] = jnp.zeros((dim,), f32)
    return p


# --------------------------------- main ---------------------------------------


if __name__ == "__main__":
    key = jax.random.PRNGKey(0)
    B, H, W, C = 2, 8, 8, 32
    num_heads, mlp_ratio, sr_ratio = 2, 2.0, 2
    N = H * W

    kx, kp = jax.random.split(key)
    x = jax.random.normal(kx, (B, N, C), jnp.float32)
    params = init_params(kp, C, num_heads, mlp_ratio, sr_ratio)

    fwd = jax.jit(functools.partial(block_forward, num_heads=num_heads,
                                    sr_ratio=sr_ratio),
                  static_argnums=(1, 2))
    out = jax.block_until_ready(fwd(x, H, W, params))
    assert out.shape == (B, N, C) and out.dtype == jnp.float32
    assert bool(jnp.all(jnp.isfinite(out)))
    print("KERNEL_OK")
</pallas_src>

<mosaic_0001>
module attributes {stable_mosaic.version = 11 : i64} {
  func.func @_attn_kernel(%arg0: i32, %arg1: i32, %arg2: memref<1x64x32xbf16, #tpu.memory_space<vmem>>, %arg3: memref<1x16x64xbf16, #tpu.memory_space<vmem>>, %arg4: memref<1x64x32xf32, #tpu.memory_space<vmem>>, %arg5: memref<32x32xbf16, #tpu.memory_space<vmem>>, %arg6: memref<1x32xf32, #tpu.memory_space<vmem>>, %arg7: memref<1x64x32xf32, #tpu.memory_space<vmem>>, %arg8: memref<64x32xf32, #tpu.memory_space<vmem>>) attributes {dimension_semantics = [#tpu.dimension_semantics<parallel>, #tpu.dimension_semantics<parallel>], iteration_bounds = array<i64: 2, 1>, scalar_prefetch = 0 : i64, scratch_operands = 1 : i64, tpu.core_type = #tpu.core_type<tc>, window_params = [{transform_indices = @transform_0, window_bounds = array<i64: 1, 64, 32>}, {transform_indices = @transform_1, window_bounds = array<i64: 1, 16, 64>}, {transform_indices = @transform_2, window_bounds = array<i64: 1, 64, 32>}, {pipeline_mode = #tpu.pipeline_mode<synchronous>, transform_indices = @transform_3, window_bounds = array<i64: 32, 32>}, {pipeline_mode = #tpu.pipeline_mode<synchronous>, transform_indices = @transform_4, window_bounds = array<i64: 1, 32>}, {transform_indices = @transform_5, window_bounds = array<i64: 1, 64, 32>}]} {
    %c0 = arith.constant 0 : index
    %c0_0 = arith.constant 0 : index
    %c0_1 = arith.constant 0 : index
    %0 = vector.load %arg2[%c0, %c0_0, %c0_1] : memref<1x64x32xbf16, #tpu.memory_space<vmem>>, vector<1x64x32xbf16>
    %1 = vector.shape_cast %0 : vector<1x64x32xbf16> to vector<64x32xbf16>
    %c0_2 = arith.constant 0 : index
    %c0_3 = arith.constant 0 : index
    %c0_4 = arith.constant 0 : index
    %2 = vector.load %arg3[%c0_2, %c0_3, %c0_4] : memref<1x16x64xbf16, #tpu.memory_space<vmem>>, vector<1x16x64xbf16>
    %3 = vector.shape_cast %2 : vector<1x16x64xbf16> to vector<16x64xbf16>
    %4 = vector.extract_strided_slice %1 {offsets = [0, 0], sizes = [64, 16], strides = [1, 1]} : vector<64x32xbf16> to vector<64x16xbf16>
    %5 = vector.extract_strided_slice %3 {offsets = [0, 0], sizes = [16, 16], strides = [1, 1]} : vector<16x64xbf16> to vector<16x16xbf16>
    %6 = vector.extract_strided_slice %3 {offsets = [0, 32], sizes = [16, 16], strides = [1, 1]} : vector<16x64xbf16> to vector<16x16xbf16>
    %cst = arith.constant dense<0.000000e+00> : vector<64x16xf32>
    %7 = tpu.matmul %4, %5, %cst {dimension_numbers = #tpu.dot_dimension_numbers<[1], [1], [0], [0], [0, 0, 1, 0], [], []>} : vector<64x16xbf16>, vector<16x16xbf16>, vector<64x16xf32> -> vector<64x16xf32>
    %cst_5 = arith.constant 2.500000e-01 : f32
    %8 = vector.broadcast %cst_5 : f32 to vector<64x16xf32>
    %9 = arith.mulf %7, %8 : vector<64x16xf32>
    %cst_6 = arith.constant dense<0xFF800000> : vector<64xf32>
    %10 = vector.multi_reduction <maximumf>, %9, %cst_6 [1] : vector<64x16xf32> to vector<64xf32>
    %11 = vector.shape_cast %10 : vector<64xf32> to vector<64x1xf32>
    %12 = vector.broadcast %11 : vector<64x1xf32> to vector<64x16xf32>
    %13 = arith.subf %9, %12 : vector<64x16xf32>
    %14 = math.exp %13 : vector<64x16xf32>
    %cst_7 = arith.constant dense<0.000000e+00> : vector<64xf32>
    %15 = vector.multi_reduction <add>, %14, %cst_7 [1] : vector<64x16xf32> to vector<64xf32>
    %16 = vector.shape_cast %15 : vector<64xf32> to vector<64x1xf32>
    %17 = tpu.reciprocal %16 {approx = true} : vector<64x1xf32> -> vector<64x1xf32>
    %18 = vector.broadcast %17 : vector<64x1xf32> to vector<64x16xf32>
    %19 = arith.mulf %14, %18 : vector<64x16xf32>
    %20 = arith.truncf %19 : vector<64x16xf32> to vector<64x16xbf16>
    %cst_8 = arith.constant dense<0.000000e+00> : vector<64x16xf32>
    %21 = tpu.matmul %20, %6, %cst_8 {dimension_numbers = #tpu.dot_dimension_numbers<[1], [0], [0], [1], [0, 0, 1, 1], [], []>} : vector<64x16xbf16>, vector<16x16xbf16>, vector<64x16xf32> -> vector<64x16xf32>
    %c0_9 = arith.constant 0 : index
    %c0_10 = arith.constant 0 : index
    %22 = vector.load %arg8[%c0_9, %c0_10] : memref<64x32xf32, #tpu.memory_space<vmem>>, vector<64x16xf32>
    tpu.vector_store %arg8[%c0_9, %c0_10], %21 {strides = array<i32>} : memref<64x32xf32, #tpu.memory_space<vmem>>, vector<64x16xf32>,
    %23 = vector.extract_strided_slice %1 {offsets = [0, 16], sizes = [64, 16], strides = [1, 1]} : vector<64x32xbf16> to vector<64x16xbf16>
    %24 = vector.extract_strided_slice %3 {offsets = [0, 16], sizes = [16, 16], strides = [1, 1]} : vector<16x64xbf16> to vector<16x16xbf16>
    %25 = vector.extract_strided_slice %3 {offsets = [0, 48], sizes = [16, 16], strides = [1, 1]} : vector<16x64xbf16> to vector<16x16xbf16>
    %cst_11 = arith.constant dense<0.000000e+00> : vector<64x16xf32>
    %26 = tpu.matmul %23, %24, %cst_11 {dimension_numbers = #tpu.dot_dimension_numbers<[1], [1], [0], [0], [0, 0, 1, 0], [], []>} : vector<64x16xbf16>, vector<16x16xbf16>, vector<64x16xf32> -> vector<64x16xf32>
    %cst_12 = arith.constant 2.500000e-01 : f32
    %27 = vector.broadcast %cst_12 : f32 to vector<64x16xf32>
    %28 = arith.mulf %26, %27 : vector<64x16xf32>
    %cst_13 = arith.constant dense<0xFF800000> : vector<64xf32>
    %29 = vector.multi_reduction <maximumf>, %28, %cst_13 [1] : vector<64x16xf32> to vector<64xf32>
    %30 = vector.shape_cast %29 : vector<64xf32> to vector<64x1xf32>
    %31 = vector.broadcast %30 : vector<64x1xf32> to vector<64x16xf32>
    %32 = arith.subf %28, %31 : vector<64x16xf32>
    %33 = math.exp %32 : vector<64x16xf32>
    %cst_14 = arith.constant dense<0.000000e+00> : vector<64xf32>
    %34 = vector.multi_reduction <add>, %33, %cst_14 [1] : vector<64x16xf32> to vector<64xf32>
    %35 = vector.shape_cast %34 : vector<64xf32> to vector<64x1xf32>
    %36 = tpu.reciprocal %35 {approx = true} : vector<64x1xf32> -> vector<64x1xf32>
    %37 = vector.broadcast %36 : vector<64x1xf32> to vector<64x16xf32>
    %38 = arith.mulf %33, %37 : vector<64x16xf32>
    %39 = arith.truncf %38 : vector<64x16xf32> to vector<64x16xbf16>
    %cst_15 = arith.constant dense<0.000000e+00> : vector<64x16xf32>
    %40 = tpu.matmul %39, %25, %cst_15 {dimension_numbers = #tpu.dot_dimension_numbers<[1], [0], [0], [1], [0, 0, 1, 1], [], []>} : vector<64x16xbf16>, vector<16x16xbf16>, vector<64x16xf32> -> vector<64x16xf32>
    %c0_16 = arith.constant 0 : index
    %c16 = arith.constant 16 : index
    %41 = vector.load %arg8[%c0_16, %c16] : memref<64x32xf32, #tpu.memory_space<vmem>>, vector<64x16xf32>
    tpu.vector_store %arg8[%c0_16, %c16], %40 {strides = array<i32>} : memref<64x32xf32, #tpu.memory_space<vmem>>, vector<64x16xf32>,
    %c0_17 = arith.constant 0 : index
    %c0_18 = arith.constant 0 : index
    %42 = vector.load %arg8[%c0_17, %c0_18] : memref<64x32xf32, #tpu.memory_space<vmem>>, vector<64x32xf32>
    %43 = arith.truncf %42 : vector<64x32xf32> to vector<64x32xbf16>
    %c0_19 = arith.constant 0 : index
    %c0_20 = arith.constant 0 : index
    %44 = vector.load %arg5[%c0_19, %c0_20] : memref<32x32xbf16, #tpu.memory_space<vmem>>, vector<32x32xbf16>
    %cst_21 = arith.constant dense<0.000000e+00> : vector<64x32xf32>
    %45 = tpu.matmul %43, %44, %cst_21 {dimension_numbers = #tpu.dot_dimension_numbers<[1], [0], [0], [1], [0, 0, 1, 1], [], []>} : vector<64x32xbf16>, vector<32x32xbf16>, vector<64x32xf32> -> vector<64x32xf32>
    %c0_22 = arith.constant 0 : index
    %c0_23 = arith.constant 0 : index
    %46 = vector.load %arg6[%c0_22, %c0_23] : memref<1x32xf32, #tpu.memory_space<vmem>>, vector<1x32xf32>
    %47 = vector.broadcast %46 : vector<1x32xf32> to vector<64x32xf32>
    %48 = arith.addf %45, %47 : vector<64x32xf32>
    %c0_24 = arith.constant 0 : index
    %c0_25 = arith.constant 0 : index
    %c0_26 = arith.constant 0 : index
    %49 = vector.load %arg4[%c0_24, %c0_25, %c0_26] : memref<1x64x32xf32, #tpu.memory_space<vmem>>, vector<1x64x32xf32>
    %50 = vector.shape_cast %49 : vector<1x64x32xf32> to vector<64x32xf32>
    %51 = arith.addf %48, %50 : vector<64x32xf32>
    %c0_27 = arith.constant 0 : index
    %c0_28 = arith.constant 0 : index
    %c0_29 = arith.constant 0 : index
    %52 = vector.load %arg7[%c0_27, %c0_28, %c0_29] : memref<1x64x32xf32, #tpu.memory_space<vmem>>, vector<1x64x32xf32>
    %53 = vector.shape_cast %52 : vector<1x64x32xf32> to vector<64x32xf32>
    %54 = vector.shape_cast %51 : vector<64x32xf32> to vector<1x64x32xf32>
    tpu.vector_store %arg7[%c0_27, %c0_28, %c0_29], %54 {strides = array<i32>} : memref<1x64x32xf32, #tpu.memory_space<vmem>>, vector<1x64x32xf32>,
    return
  }
  func.func @transform_0(%arg0: i32, %arg1: i32) -> (i32, i32, i32) {
    %c0_i32 = arith.constant 0 : i32
    %c0_i32_0 = arith.constant 0 : i32
    return %arg0, %arg1, %c0_i32 : i32, i32, i32
  }
  func.func @transform_1(%arg0: i32, %arg1: i32) -> (i32, i32, i32) {
    %c0_i32 = arith.constant 0 : i32
    %c0_i32_0 = arith.constant 0 : i32
    %c0_i32_1 = arith.constant 0 : i32
    return %arg0, %c0_i32, %c0_i32_0 : i32, i32, i32
  }
  func.func @transform_2(%arg0: i32, %arg1: i32) -> (i32, i32, i32) {
    %c0_i32 = arith.constant 0 : i32
    %c0_i32_0 = arith.constant 0 : i32
    return %arg0, %arg1, %c0_i32 : i32, i32, i32
  }
  func.func @transform_3(%arg0: i32, %arg1: i32) -> (i32, i32) {
    %c0_i32 = arith.constant 0 : i32
    %c0_i32_0 = arith.constant 0 : i32
    %c0_i32_1 = arith.constant 0 : i32
    return %c0_i32, %c0_i32_0 : i32, i32
  }
  func.func @transform_4(%arg0: i32, %arg1: i32) -> (i32, i32) {
    %c0_i32 = arith.constant 0 : i32
    %c0_i32_0 = arith.constant 0 : i32
    %c0_i32_1 = arith.constant 0 : i32
    return %c0_i32, %c0_i32_0 : i32, i32
  }
  func.func @transform_5(%arg0: i32, %arg1: i32) -> (i32, i32, i32) {
    %c0_i32 = arith.constant 0 : i32
    %c0_i32_0 = arith.constant 0 : i32
    return %arg0, %arg1, %c0_i32 : i32, i32, i32
  }
}

module attributes {stable_mosaic.version = 11 : i64} {
  func.func @_sr_kv_kernel(%arg0: i32, %arg1: memref<32x128xf32, #tpu.memory_space<vmem>>, %arg2: memref<1x32xf32, #tpu.memory_space<vmem>>, %arg3: memref<1x32xf32, #tpu.memory_space<vmem>>, %arg4: memref<128x32xbf16, #tpu.memory_space<vmem>>, %arg5: memref<1x32xf32, #tpu.memory_space<vmem>>, %arg6: memref<1x32xf32, #tpu.memory_space<vmem>>, %arg7: memref<1x32xf32, #tpu.memory_space<vmem>>, %arg8: memref<32x64xbf16, #tpu.memory_space<vmem>>, %arg9: memref<1x64xf32, #tpu.memory_space<vmem>>, %arg10: memref<32x64xbf16, #tpu.memory_space<vmem>>) attributes {dimension_semantics = [#tpu.dimension_semantics<parallel>], iteration_bounds = array<i64: 1>, scalar_prefetch = 0 : i64, scratch_operands = 0 : i64, tpu.core_type = #tpu.core_type<tc>, window_params = [{transform_indices = @transform_0, window_bounds = array<i64: 32, 128>}, {pipeline_mode = #tpu.pipeline_mode<synchronous>, transform_indices = @transform_1, window_bounds = array<i64: 1, 32>}, {pipeline_mode = #tpu.pipeline_mode<synchronous>, transform_indices = @transform_2, window_bounds = array<i64: 1, 32>}, {pipeline_mode = #tpu.pipeline_mode<synchronous>, transform_indices = @transform_3, window_bounds = array<i64: 128, 32>}, {pipeline_mode = #tpu.pipeline_mode<synchronous>, transform_indices = @transform_4, window_bounds = array<i64: 1, 32>}, {pipeline_mode = #tpu.pipeline_mode<synchronous>, transform_indices = @transform_5, window_bounds = array<i64: 1, 32>}, {pipeline_mode = #tpu.pipeline_mode<synchronous>, transform_indices = @transform_6, window_bounds = array<i64: 1, 32>}, {pipeline_mode = #tpu.pipeline_mode<synchronous>, transform_indices = @transform_7, window_bounds = array<i64: 32, 64>}, {pipeline_mode = #tpu.pipeline_mode<synchronous>, transform_indices = @transform_8, window_bounds = array<i64: 1, 64>}, {transform_indices = @transform_9, window_bounds = array<i64: 32, 64>}]} {
    %c0 = arith.constant 0 : index
    %c0_0 = arith.constant 0 : index
    %0 = vector.load %arg1[%c0, %c0_0] : memref<32x128xf32, #tpu.memory_space<vmem>>, vector<32x128xf32>
    %c0_1 = arith.constant 0 : index
    %c0_2 = arith.constant 0 : index
    %1 = vector.load %arg2[%c0_1, %c0_2] : memref<1x32xf32, #tpu.memory_space<vmem>>, vector<1x32xf32>
    %c0_3 = arith.constant 0 : index
    %c0_4 = arith.constant 0 : index
    %2 = vector.load %arg3[%c0_3, %c0_4] : memref<1x32xf32, #tpu.memory_space<vmem>>, vector<1x32xf32>
    %3 = vector.extract_strided_slice %0 {offsets = [0, 0], sizes = [32, 32], strides = [1, 1]} : vector<32x128xf32> to vector<32x32xf32>
    %cst = arith.constant dense<0.000000e+00> : vector<32xf32>
    %4 = vector.multi_reduction <add>, %3, %cst [1] : vector<32x32xf32> to vector<32xf32>
    %5 = vector.shape_cast %4 : vector<32xf32> to vector<32x1xf32>
    %cst_5 = arith.constant 3.200000e+01 : f32
    %6 = vector.broadcast %cst_5 : f32 to vector<32x1xf32>
    %7 = arith.divf %5, %6 : vector<32x1xf32>
    %8 = vector.broadcast %7 : vector<32x1xf32> to vector<32x32xf32>
    %9 = arith.subf %3, %8 : vector<32x32xf32>
    %10 = arith.mulf %9, %9 : vector<32x32xf32>
    %cst_6 = arith.constant dense<0.000000e+00> : vector<32xf32>
    %11 = vector.multi_reduction <add>, %10, %cst_6 [1] : vector<32x32xf32> to vector<32xf32>
    %12 = vector.shape_cast %11 : vector<32xf32> to vector<32x1xf32>
    %cst_7 = arith.constant 3.200000e+01 : f32
    %13 = vector.broadcast %cst_7 : f32 to vector<32x1xf32>
    %14 = arith.divf %12, %13 : vector<32x1xf32>
    %cst_8 = arith.constant 9.99999997E-7 : f32
    %15 = vector.broadcast %cst_8 : f32 to vector<32x1xf32>
    %16 = arith.addf %14, %15 : vector<32x1xf32>
    %17 = math.rsqrt %16 : vector<32x1xf32>
    %18 = vector.broadcast %17 : vector<32x1xf32> to vector<32x32xf32>
    %19 = arith.mulf %9, %18 : vector<32x32xf32>
    %20 = vector.broadcast %1 : vector<1x32xf32> to vector<32x32xf32>
    %21 = arith.mulf %19, %20 : vector<32x32xf32>
    %22 = vector.broadcast %2 : vector<1x32xf32> to vector<32x32xf32>
    %23 = arith.addf %21, %22 : vector<32x32xf32>
    %24 = arith.truncf %23 : vector<32x32xf32> to vector<32x32xbf16>
    %25 = vector.extract_strided_slice %0 {offsets = [0, 32], sizes = [32, 32], strides = [1, 1]} : vector<32x128xf32> to vector<32x32xf32>
    %cst_9 = arith.constant dense<0.000000e+00> : vector<32xf32>
    %26 = vector.multi_reduction <add>, %25, %cst_9 [1] : vector<32x32xf32> to vector<32xf32>
    %27 = vector.shape_cast %26 : vector<32xf32> to vector<32x1xf32>
    %cst_10 = arith.constant 3.200000e+01 : f32
    %28 = vector.broadcast %cst_10 : f32 to vector<32x1xf32>
    %29 = arith.divf %27, %28 : vector<32x1xf32>
    %30 = vector.broadcast %29 : vector<32x1xf32> to vector<32x32xf32>
    %31 = arith.subf %25, %30 : vector<32x32xf32>
    %32 = arith.mulf %31, %31 : vector<32x32xf32>
    %cst_11 = arith.constant dense<0.000000e+00> : vector<32xf32>
    %33 = vector.multi_reduction <add>, %32, %cst_11 [1] : vector<32x32xf32> to vector<32xf32>
    %34 = vector.shape_cast %33 : vector<32xf32> to vector<32x1xf32>
    %cst_12 = arith.constant 3.200000e+01 : f32
    %35 = vector.broadcast %cst_12 : f32 to vector<32x1xf32>
    %36 = arith.divf %34, %35 : vector<32x1xf32>
    %cst_13 = arith.constant 9.99999997E-7 : f32
    %37 = vector.broadcast %cst_13 : f32 to vector<32x1xf32>
    %38 = arith.addf %36, %37 : vector<32x1xf32>
    %39 = math.rsqrt %38 : vector<32x1xf32>
    %40 = vector.broadcast %39 : vector<32x1xf32> to vector<32x32xf32>
    %41 = arith.mulf %31, %40 : vector<32x32xf32>
    %42 = vector.broadcast %1 : vector<1x32xf32> to vector<32x32xf32>
    %43 = arith.mulf %41, %42 : vector<32x32xf32>
    %44 = vector.broadcast %2 : vector<1x32xf32> to vector<32x32xf32>
    %45 = arith.addf %43, %44 : vector<32x32xf32>
    %46 = arith.truncf %45 : vector<32x32xf32> to vector<32x32xbf16>
    %47 = vector.extract_strided_slice %0 {offsets = [0, 64], sizes = [32, 32], strides = [1, 1]} : vector<32x128xf32> to vector<32x32xf32>
    %cst_14 = arith.constant dense<0.000000e+00> : vector<32xf32>
    %48 = vector.multi_reduction <add>, %47, %cst_14 [1] : vector<32x32xf32> to vector<32xf32>
    %49 = vector.shape_cast %48 : vector<32xf32> to vector<32x1xf32>
    %cst_15 = arith.constant 3.200000e+01 : f32
    %50 = vector.broadcast %cst_15 : f32 to vector<32x1xf32>
    %51 = arith.divf %49, %50 : vector<32x1xf32>
    %52 = vector.broadcast %51 : vector<32x1xf32> to vector<32x32xf32>
    %53 = arith.subf %47, %52 : vector<32x32xf32>
    %54 = arith.mulf %53, %53 : vector<32x32xf32>
    %cst_16 = arith.constant dense<0.000000e+00> : vector<32xf32>
    %55 = vector.multi_reduction <add>, %54, %cst_16 [1] : vector<32x32xf32> to vector<32xf32>
    %56 = vector.shape_cast %55 : vector<32xf32> to vector<32x1xf32>
    %cst_17 = arith.constant 3.200000e+01 : f32
    %57 = vector.broadcast %cst_17 : f32 to vector<32x1xf32>
    %58 = arith.divf %56, %57 : vector<32x1xf32>
    %cst_18 = arith.constant 9.99999997E-7 : f32
    %59 = vector.broadcast %cst_18 : f32 to vector<32x1xf32>
    %60 = arith.addf %58, %59 : vector<32x1xf32>
    %61 = math.rsqrt %60 : vector<32x1xf32>
    %62 = vector.broadcast %61 : vector<32x1xf32> to vector<32x32xf32>
    %63 = arith.mulf %53, %62 : vector<32x32xf32>
    %64 = vector.broadcast %1 : vector<1x32xf32> to vector<32x32xf32>
    %65 = arith.mulf %63, %64 : vector<32x32xf32>
    %66 = vector.broadcast %2 : vector<1x32xf32> to vector<32x32xf32>
    %67 = arith.addf %65, %66 : vector<32x32xf32>
    %68 = arith.truncf %67 : vector<32x32xf32> to vector<32x32xbf16>
    %69 = vector.extract_strided_slice %0 {offsets = [0, 96], sizes = [32, 32], strides = [1, 1]} : vector<32x128xf32> to vector<32x32xf32>
    %cst_19 = arith.constant dense<0.000000e+00> : vector<32xf32>
    %70 = vector.multi_reduction <add>, %69, %cst_19 [1] : vector<32x32xf32> to vector<32xf32>
    %71 = vector.shape_cast %70 : vector<32xf32> to vector<32x1xf32>
    %cst_20 = arith.constant 3.200000e+01 : f32
    %72 = vector.broadcast %cst_20 : f32 to vector<32x1xf32>
    %73 = arith.divf %71, %72 : vector<32x1xf32>
    %74 = vector.broadcast %73 : vector<32x1xf32> to vector<32x32xf32>
    %75 = arith.subf %69, %74 : vector<32x32xf32>
    %76 = arith.mulf %75, %75 : vector<32x32xf32>
    %cst_21 = arith.constant dense<0.000000e+00> : vector<32xf32>
    %77 = vector.multi_reduction <add>, %76, %cst_21 [1] : vector<32x32xf32> to vector<32xf32>
    %78 = vector.shape_cast %77 : vector<32xf32> to vector<32x1xf32>
    %cst_22 = arith.constant 3.200000e+01 : f32
    %79 = vector.broadcast %cst_22 : f32 to vector<32x1xf32>
    %80 = arith.divf %78, %79 : vector<32x1xf32>
    %cst_23 = arith.constant 9.99999997E-7 : f32
    %81 = vector.broadcast %cst_23 : f32 to vector<32x1xf32>
    %82 = arith.addf %80, %81 : vector<32x1xf32>
    %83 = math.rsqrt %82 : vector<32x1xf32>
    %84 = vector.broadcast %83 : vector<32x1xf32> to vector<32x32xf32>
    %85 = arith.mulf %75, %84 : vector<32x32xf32>
    %86 = vector.broadcast %1 : vector<1x32xf32> to vector<32x32xf32>
    %87 = arith.mulf %85, %86 : vector<32x32xf32>
    %88 = vector.broadcast %2 : vector<1x32xf32> to vector<32x32xf32>
    %89 = arith.addf %87, %88 : vector<32x32xf32>
    %90 = arith.truncf %89 : vector<32x32xf32> to vector<32x32xbf16>
    %91 = tpu.concatenate %24, %46, %68, %90 in 1 : vector<32x32xbf16>, vector<32x32xbf16>, vector<32x32xbf16>, vector<32x32xbf16> -> vector<32x128xbf16>
    %c0_24 = arith.constant 0 : index
    %c0_25 = arith.constant 0 : index
    %92 = vector.load %arg4[%c0_24, %c0_25] : memref<128x32xbf16, #tpu.memory_space<vmem>>, vector<128x32xbf16>
    %cst_26 = arith.constant dense<0.000000e+00> : vector<32x32xf32>
    %93 = tpu.matmul %91, %92, %cst_26 {dimension_numbers = #tpu.dot_dimension_numbers<[1], [0], [0], [1], [0, 0, 1, 1], [], []>} : vector<32x128xbf16>, vector<128x32xbf16>, vector<32x32xf32> -> vector<32x32xf32>
    %c0_27 = arith.constant 0 : index
    %c0_28 = arith.constant 0 : index
    %94 = vector.load %arg5[%c0_27, %c0_28] : memref<1x32xf32, #tpu.memory_space<vmem>>, vector<1x32xf32>
    %95 = vector.broadcast %94 : vector<1x32xf32> to vector<32x32xf32>
    %96 = arith.addf %93, %95 : vector<32x32xf32>
    %cst_29 = arith.constant dense<0.000000e+00> : vector<32xf32>
    %97 = vector.multi_reduction <add>, %96, %cst_29 [1] : vector<32x32xf32> to vector<32xf32>
    %98 = vector.shape_cast %97 : vector<32xf32> to vector<32x1xf32>
    %cst_30 = arith.constant 3.200000e+01 : f32
    %99 = vector.broadcast %cst_30 : f32 to vector<32x1xf32>
    %100 = arith.divf %98, %99 : vector<32x1xf32>
    %101 = vector.broadcast %100 : vector<32x1xf32> to vector<32x32xf32>
    %102 = arith.subf %96, %101 : vector<32x32xf32>
    %103 = arith.mulf %102, %102 : vector<32x32xf32>
    %cst_31 = arith.constant dense<0.000000e+00> : vector<32xf32>
    %104 = vector.multi_reduction <add>, %103, %cst_31 [1] : vector<32x32xf32> to vector<32xf32>
    %105 = vector.shape_cast %104 : vector<32xf32> to vector<32x1xf32>
    %cst_32 = arith.constant 3.200000e+01 : f32
    %106 = vector.broadcast %cst_32 : f32 to vector<32x1xf32>
    %107 = arith.divf %105, %106 : vector<32x1xf32>
    %cst_33 = arith.constant 9.99999974E-6 : f32
    %108 = vector.broadcast %cst_33 : f32 to vector<32x1xf32>
    %109 = arith.addf %107, %108 : vector<32x1xf32>
    %110 = math.rsqrt %109 : vector<32x1xf32>
    %111 = vector.broadcast %110 : vector<32x1xf32> to vector<32x32xf32>
    %112 = arith.mulf %102, %111 : vector<32x32xf32>
    %c0_34 = arith.constant 0 : index
    %c0_35 = arith.constant 0 : index
    %113 = vector.load %arg6[%c0_34, %c0_35] : memref<1x32xf32, #tpu.memory_space<vmem>>, vector<1x32xf32>
    %114 = vector.broadcast %113 : vector<1x32xf32> to vector<32x32xf32>
    %115 = arith.mulf %112, %114 : vector<32x32xf32>
    %c0_36 = arith.constant 0 : index
    %c0_37 = arith.constant 0 : index
    %116 = vector.load %arg7[%c0_36, %c0_37] : memref<1x32xf32, #tpu.memory_space<vmem>>, vector<1x32xf32>
    %117 = vector.broadcast %116 : vector<1x32xf32> to vector<32x32xf32>
    %118 = arith.addf %115, %117 : vector<32x32xf32>
    %119 = arith.truncf %118 : vector<32x32xf32> to vector<32x32xbf16>
    %c0_38 = arith.constant 0 : index
    %c0_39 = arith.constant 0 : index
    %120 = vector.load %arg8[%c0_38, %c0_39] : memref<32x64xbf16, #tpu.memory_space<vmem>>, vector<32x64xbf16>
    %cst_40 = arith.constant dense<0.000000e+00> : vector<32x64xf32>
    %121 = tpu.matmul %119, %120, %cst_40 {dimension_numbers = #tpu.dot_dimension_numbers<[1], [0], [0], [1], [0, 0, 1, 1], [], []>} : vector<32x32xbf16>, vector<32x64xbf16>, vector<32x64xf32> -> vector<32x64xf32>
    %c0_41 = arith.constant 0 : index
    %c0_42 = arith.constant 0 : index
    %122 = vector.load %arg9[%c0_41, %c0_42] : memref<1x64xf32, #tpu.memory_space<vmem>>, vector<1x64xf32>
    %123 = vector.broadcast %122 : vector<1x64xf32> to vector<32x64xf32>
    %124 = arith.addf %121, %123 : vector<32x64xf32>
    %125 = arith.truncf %124 : vector<32x64xf32> to vector<32x64xbf16>
    %c0_43 = arith.constant 0 : index
    %c0_44 = arith.constant 0 : index
    %126 = vector.load %arg10[%c0_43, %c0_44] : memref<32x64xbf16, #tpu.memory_space<vmem>>, vector<32x64xbf16>
    tpu.vector_store %arg10[%c0_43, %c0_44], %125 {strides = array<i32>} : memref<32x64xbf16, #tpu.memory_space<vmem>>, vector<32x64xbf16>,
    return
  }
  func.func @transform_0(%arg0: i32) -> (i32, i32) {
    %c0_i32 = arith.constant 0 : i32
    %c0_i32_0 = arith.constant 0 : i32
    return %arg0, %c0_i32 : i32, i32
  }
  func.func @transform_1(%arg0: i32) -> (i32, i32) {
    %c0_i32 = arith.constant 0 : i32
    %c0_i32_0 = arith.constant 0 : i32
    %c0_i32_1 = arith.constant 0 : i32
    return %c0_i32, %c0_i32_0 : i32, i32
  }
  func.func @transform_2(%arg0: i32) -> (i32, i32) {
    %c0_i32 = arith.constant 0 : i32
    %c0_i32_0 = arith.constant 0 : i32
    %c0_i32_1 = arith.constant 0 : i32
    return %c0_i32, %c0_i32_0 : i32, i32
  }
  func.func @transform_3(%arg0: i32) -> (i32, i32) {
    %c0_i32 = arith.constant 0 : i32
    %c0_i32_0 = arith.constant 0 : i32
    %c0_i32_1 = arith.constant 0 : i32
    return %c0_i32, %c0_i32_0 : i32, i32
  }
  func.func @transform_4(%arg0: i32) -> (i32, i32) {
    %c0_i32 = arith.constant 0 : i32
    %c0_i32_0 = arith.constant 0 : i32
    %c0_i32_1 = arith.constant 0 : i32
    return %c0_i32, %c0_i32_0 : i32, i32
  }
  func.func @transform_5(%arg0: i32) -> (i32, i32) {
    %c0_i32 = arith.constant 0 : i32
    %c0_i32_0 = arith.constant 0 : i32
    %c0_i32_1 = arith.constant 0 : i32
    return %c0_i32, %c0_i32_0 : i32, i32
  }
  func.func @transform_6(%arg0: i32) -> (i32, i32) {
    %c0_i32 = arith.constant 0 : i32
    %c0_i32_0 = arith.constant 0 : i32
    %c0_i32_1 = arith.constant 0 : i32
    return %c0_i32, %c0_i32_0 : i32, i32
  }
  func.func @transform_7(%arg0: i32) -> (i32, i32) {
    %c0_i32 = arith.constant 0 : i32
    %c0_i32_0 = arith.constant 0 : i32
    %c0_i32_1 = arith.constant 0 : i32
    return %c0_i32, %c0_i32_0 : i32, i32
  }
  func.func @transform_8(%arg0: i32) -> (i32, i32) {
    %c0_i32 = arith.constant 0 : i32
    %c0_i32_0 = arith.constant 0 : i32
    %c0_i32_1 = arith.constant 0 : i32
    return %c0_i32, %c0_i32_0 : i32, i32
  }
  func.func @transform_9(%arg0: i32) -> (i32, i32) {
    %c0_i32 = arith.constant 0 : i32
    %c0_i32_0 = arith.constant 0 : i32
    return %arg0, %c0_i32 : i32, i32
  }
}

module attributes {stable_mosaic.version = 11 : i64} {
  func.func @_ln_linear_kernel(%arg0: i32, %arg1: memref<128x32xf32, #tpu.memory_space<vmem>>, %arg2: memref<1x32xf32, #tpu.memory_space<vmem>>, %arg3: memref<1x32xf32, #tpu.memory_space<vmem>>, %arg4: memref<32x64xbf16, #tpu.memory_space<vmem>>, %arg5: memref<1x64xf32, #tpu.memory_space<vmem>>, %arg6: memref<128x64xbf16, #tpu.memory_space<vmem>>) attributes {dimension_semantics = [#tpu.dimension_semantics<parallel>], iteration_bounds = array<i64: 1>, scalar_prefetch = 0 : i64, scratch_operands = 0 : i64, tpu.core_type = #tpu.core_type<tc>, window_params = [{transform_indices = @transform_0, window_bounds = array<i64: 128, 32>}, {pipeline_mode = #tpu.pipeline_mode<synchronous>, transform_indices = @transform_1, window_bounds = array<i64: 1, 32>}, {pipeline_mode = #tpu.pipeline_mode<synchronous>, transform_indices = @transform_2, window_bounds = array<i64: 1, 32>}, {pipeline_mode = #tpu.pipeline_mode<synchronous>, transform_indices = @transform_3, window_bounds = array<i64: 32, 64>}, {pipeline_mode = #tpu.pipeline_mode<synchronous>, transform_indices = @transform_4, window_bounds = array<i64: 1, 64>}, {transform_indices = @transform_5, window_bounds = array<i64: 128, 64>}]} {
    %c0 = arith.constant 0 : index
    %c0_0 = arith.constant 0 : index
    %0 = vector.load %arg1[%c0, %c0_0] : memref<128x32xf32, #tpu.memory_space<vmem>>, vector<128x32xf32>
    %cst = arith.constant dense<0.000000e+00> : vector<128xf32>
    %1 = vector.multi_reduction <add>, %0, %cst [1] : vector<128x32xf32> to vector<128xf32>
    %2 = vector.shape_cast %1 : vector<128xf32> to vector<128x1xf32>
    %cst_1 = arith.constant 3.200000e+01 : f32
    %3 = vector.broadcast %cst_1 : f32 to vector<128x1xf32>
    %4 = arith.divf %2, %3 : vector<128x1xf32>
    %5 = vector.broadcast %4 : vector<128x1xf32> to vector<128x32xf32>
    %6 = arith.subf %0, %5 : vector<128x32xf32>
    %7 = arith.mulf %6, %6 : vector<128x32xf32>
    %cst_2 = arith.constant dense<0.000000e+00> : vector<128xf32>
    %8 = vector.multi_reduction <add>, %7, %cst_2 [1] : vector<128x32xf32> to vector<128xf32>
    %9 = vector.shape_cast %8 : vector<128xf32> to vector<128x1xf32>
    %cst_3 = arith.constant 3.200000e+01 : f32
    %10 = vector.broadcast %cst_3 : f32 to vector<128x1xf32>
    %11 = arith.divf %9, %10 : vector<128x1xf32>
    %cst_4 = arith.constant 9.99999997E-7 : f32
    %12 = vector.broadcast %cst_4 : f32 to vector<128x1xf32>
    %13 = arith.addf %11, %12 : vector<128x1xf32>
    %14 = math.rsqrt %13 : vector<128x1xf32>
    %15 = vector.broadcast %14 : vector<128x1xf32> to vector<128x32xf32>
    %16 = arith.mulf %6, %15 : vector<128x32xf32>
    %c0_5 = arith.constant 0 : index
    %c0_6 = arith.constant 0 : index
    %17 = vector.load %arg2[%c0_5, %c0_6] : memref<1x32xf32, #tpu.memory_space<vmem>>, vector<1x32xf32>
    %18 = vector.broadcast %17 : vector<1x32xf32> to vector<128x32xf32>
    %19 = arith.mulf %16, %18 : vector<128x32xf32>
    %c0_7 = arith.constant 0 : index
    %c0_8 = arith.constant 0 : index
    %20 = vector.load %arg3[%c0_7, %c0_8] : memref<1x32xf32, #tpu.memory_space<vmem>>, vector<1x32xf32>
    %21 = vector.broadcast %20 : vector<1x32xf32> to vector<128x32xf32>
    %22 = arith.addf %19, %21 : vector<128x32xf32>
    %23 = arith.truncf %22 : vector<128x32xf32> to vector<128x32xbf16>
    %c0_9 = arith.constant 0 : index
    %c0_10 = arith.constant 0 : index
    %24 = vector.load %arg4[%c0_9, %c0_10] : memref<32x64xbf16, #tpu.memory_space<vmem>>, vector<32x64xbf16>
    %cst_11 = arith.constant dense<0.000000e+00> : vector<128x64xf32>
    %25 = tpu.matmul %23, %24, %cst_11 {dimension_numbers = #tpu.dot_dimension_numbers<[1], [0], [0], [1], [0, 0, 1, 1], [], []>} : vector<128x32xbf16>, vector<32x64xbf16>, vector<128x64xf32> -> vector<128x64xf32>
    %c0_12 = arith.constant 0 : index
    %c0_13 = arith.constant 0 : index
    %26 = vector.load %arg5[%c0_12, %c0_13] : memref<1x64xf32, #tpu.memory_space<vmem>>, vector<1x64xf32>
    %27 = vector.broadcast %26 : vector<1x64xf32> to vector<128x64xf32>
    %28 = arith.addf %25, %27 : vector<128x64xf32>
    %29 = arith.truncf %28 : vector<128x64xf32> to vector<128x64xbf16>
    %c0_14 = arith.constant 0 : index
    %c0_15 = arith.constant 0 : index
    %30 = vector.load %arg6[%c0_14, %c0_15] : memref<128x64xbf16, #tpu.memory_space<vmem>>, vector<128x64xbf16>
    tpu.vector_store %arg6[%c0_14, %c0_15], %29 {strides = array<i32>} : memref<128x64xbf16, #tpu.memory_space<vmem>>, vector<128x64xbf16>,
    return
  }
  func.func @transform_0(%arg0: i32) -> (i32, i32) {
    %c0_i32 = arith.constant 0 : i32
    %c0_i32_0 = arith.constant 0 : i32
    return %arg0, %c0_i32 : i32, i32
  }
  func.func @transform_1(%arg0: i32) -> (i32, i32) {
    %c0_i32 = arith.constant 0 : i32
    %c0_i32_0 = arith.constant 0 : i32
    %c0_i32_1 = arith.constant 0 : i32
    return %c0_i32, %c0_i32_0 : i32, i32
  }
  func.func @transform_2(%arg0: i32) -> (i32, i32) {
    %c0_i32 = arith.constant 0 : i32
    %c0_i32_0 = arith.constant 0 : i32
    %c0_i32_1 = arith.constant 0 : i32
    return %c0_i32, %c0_i32_0 : i32, i32
  }
  func.func @transform_3(%arg0: i32) -> (i32, i32) {
    %c0_i32 = arith.constant 0 : i32
    %c0_i32_0 = arith.constant 0 : i32
    %c0_i32_1 = arith.constant 0 : i32
    return %c0_i32, %c0_i32_0 : i32, i32
  }
  func.func @transform_4(%arg0: i32) -> (i32, i32) {
    %c0_i32 = arith.constant 0 : i32
    %c0_i32_0 = arith.constant 0 : i32
    %c0_i32_1 = arith.constant 0 : i32
    return %c0_i32, %c0_i32_0 : i32, i32
  }
  func.func @transform_5(%arg0: i32) -> (i32, i32) {
    %c0_i32 = arith.constant 0 : i32
    %c0_i32_0 = arith.constant 0 : i32
    return %arg0, %c0_i32 : i32, i32
  }
}

module attributes {stable_mosaic.version = 11 : i64} {
  func.func @_ln_linear_kernel(%arg0: i32, %arg1: memref<128x32xf32, #tpu.memory_space<vmem>>, %arg2: memref<1x32xf32, #tpu.memory_space<vmem>>, %arg3: memref<1x32xf32, #tpu.memory_space<vmem>>, %arg4: memref<32x32xbf16, #tpu.memory_space<vmem>>, %arg5: memref<1x32xf32, #tpu.memory_space<vmem>>, %arg6: memref<128x32xbf16, #tpu.memory_space<vmem>>) attributes {dimension_semantics = [#tpu.dimension_semantics<parallel>], iteration_bounds = array<i64: 1>, scalar_prefetch = 0 : i64, scratch_operands = 0 : i64, tpu.core_type = #tpu.core_type<tc>, window_params = [{transform_indices = @transform_0, window_bounds = array<i64: 128, 32>}, {pipeline_mode = #tpu.pipeline_mode<synchronous>, transform_indices = @transform_1, window_bounds = array<i64: 1, 32>}, {pipeline_mode = #tpu.pipeline_mode<synchronous>, transform_indices = @transform_2, window_bounds = array<i64: 1, 32>}, {pipeline_mode = #tpu.pipeline_mode<synchronous>, transform_indices = @transform_3, window_bounds = array<i64: 32, 32>}, {pipeline_mode = #tpu.pipeline_mode<synchronous>, transform_indices = @transform_4, window_bounds = array<i64: 1, 32>}, {transform_indices = @transform_5, window_bounds = array<i64: 128, 32>}]} {
    %c0 = arith.constant 0 : index
    %c0_0 = arith.constant 0 : index
    %0 = vector.load %arg1[%c0, %c0_0] : memref<128x32xf32, #tpu.memory_space<vmem>>, vector<128x32xf32>
    %cst = arith.constant dense<0.000000e+00> : vector<128xf32>
    %1 = vector.multi_reduction <add>, %0, %cst [1] : vector<128x32xf32> to vector<128xf32>
    %2 = vector.shape_cast %1 : vector<128xf32> to vector<128x1xf32>
    %cst_1 = arith.constant 3.200000e+01 : f32
    %3 = vector.broadcast %cst_1 : f32 to vector<128x1xf32>
    %4 = arith.divf %2, %3 : vector<128x1xf32>
    %5 = vector.broadcast %4 : vector<128x1xf32> to vector<128x32xf32>
    %6 = arith.subf %0, %5 : vector<128x32xf32>
    %7 = arith.mulf %6, %6 : vector<128x32xf32>
    %cst_2 = arith.constant dense<0.000000e+00> : vector<128xf32>
    %8 = vector.multi_reduction <add>, %7, %cst_2 [1] : vector<128x32xf32> to vector<128xf32>
    %9 = vector.shape_cast %8 : vector<128xf32> to vector<128x1xf32>
    %cst_3 = arith.constant 3.200000e+01 : f32
    %10 = vector.broadcast %cst_3 : f32 to vector<128x1xf32>
    %11 = arith.divf %9, %10 : vector<128x1xf32>
    %cst_4 = arith.constant 9.99999997E-7 : f32
    %12 = vector.broadcast %cst_4 : f32 to vector<128x1xf32>
    %13 = arith.addf %11, %12 : vector<128x1xf32>
    %14 = math.rsqrt %13 : vector<128x1xf32>
    %15 = vector.broadcast %14 : vector<128x1xf32> to vector<128x32xf32>
    %16 = arith.mulf %6, %15 : vector<128x32xf32>
    %c0_5 = arith.constant 0 : index
    %c0_6 = arith.constant 0 : index
    %17 = vector.load %arg2[%c0_5, %c0_6] : memref<1x32xf32, #tpu.memory_space<vmem>>, vector<1x32xf32>
    %18 = vector.broadcast %17 : vector<1x32xf32> to vector<128x32xf32>
    %19 = arith.mulf %16, %18 : vector<128x32xf32>
    %c0_7 = arith.constant 0 : index
    %c0_8 = arith.constant 0 : index
    %20 = vector.load %arg3[%c0_7, %c0_8] : memref<1x32xf32, #tpu.memory_space<vmem>>, vector<1x32xf32>
    %21 = vector.broadcast %20 : vector<1x32xf32> to vector<128x32xf32>
    %22 = arith.addf %19, %21 : vector<128x32xf32>
    %23 = arith.truncf %22 : vector<128x32xf32> to vector<128x32xbf16>
    %c0_9 = arith.constant 0 : index
    %c0_10 = arith.constant 0 : index
    %24 = vector.load %arg4[%c0_9, %c0_10] : memref<32x32xbf16, #tpu.memory_space<vmem>>, vector<32x32xbf16>
    %cst_11 = arith.constant dense<0.000000e+00> : vector<128x32xf32>
    %25 = tpu.matmul %23, %24, %cst_11 {dimension_numbers = #tpu.dot_dimension_numbers<[1], [0], [0], [1], [0, 0, 1, 1], [], []>} : vector<128x32xbf16>, vector<32x32xbf16>, vector<128x32xf32> -> vector<128x32xf32>
    %c0_12 = arith.constant 0 : index
    %c0_13 = arith.constant 0 : index
    %26 = vector.load %arg5[%c0_12, %c0_13] : memref<1x32xf32, #tpu.memory_space<vmem>>, vector<1x32xf32>
    %27 = vector.broadcast %26 : vector<1x32xf32> to vector<128x32xf32>
    %28 = arith.addf %25, %27 : vector<128x32xf32>
    %29 = arith.truncf %28 : vector<128x32xf32> to vector<128x32xbf16>
    %c0_14 = arith.constant 0 : index
    %c0_15 = arith.constant 0 : index
    %30 = vector.load %arg6[%c0_14, %c0_15] : memref<128x32xbf16, #tpu.memory_space<vmem>>, vector<128x32xbf16>
    tpu.vector_store %arg6[%c0_14, %c0_15], %29 {strides = array<i32>} : memref<128x32xbf16, #tpu.memory_space<vmem>>, vector<128x32xbf16>,
    return
  }
  func.func @transform_0(%arg0: i32) -> (i32, i32) {
    %c0_i32 = arith.constant 0 : i32
    %c0_i32_0 = arith.constant 0 : i32
    return %arg0, %c0_i32 : i32, i32
  }
  func.func @transform_1(%arg0: i32) -> (i32, i32) {
    %c0_i32 = arith.constant 0 : i32
    %c0_i32_0 = arith.constant 0 : i32
    %c0_i32_1 = arith.constant 0 : i32
    return %c0_i32, %c0_i32_0 : i32, i32
  }
  func.func @transform_2(%arg0: i32) -> (i32, i32) {
    %c0_i32 = arith.constant 0 : i32
    %c0_i32_0 = arith.constant 0 : i32
    %c0_i32_1 = arith.constant 0 : i32
    return %c0_i32, %c0_i32_0 : i32, i32
  }
  func.func @transform_3(%arg0: i32) -> (i32, i32) {
    %c0_i32 = arith.constant 0 : i32
    %c0_i32_0 = arith.constant 0 : i32
    %c0_i32_1 = arith.constant 0 : i32
    return %c0_i32, %c0_i32_0 : i32, i32
  }
  func.func @transform_4(%arg0: i32) -> (i32, i32) {
    %c0_i32 = arith.constant 0 : i32
    %c0_i32_0 = arith.constant 0 : i32
    %c0_i32_1 = arith.constant 0 : i32
    return %c0_i32, %c0_i32_0 : i32, i32
  }
  func.func @transform_5(%arg0: i32) -> (i32, i32) {
    %c0_i32 = arith.constant 0 : i32
    %c0_i32_0 = arith.constant 0 : i32
    return %arg0, %c0_i32 : i32, i32
  }
}

module attributes {stable_mosaic.version = 11 : i64} {
  func.func @_dwconv_gelu_kernel(%arg0: i32, %arg1: i32, %arg2: memref<1x8x8x64xbf16, #tpu.memory_space<vmem>>, %arg3: memref<9x64xf32, #tpu.memory_space<vmem>>, %arg4: memref<1x64xf32, #tpu.memory_space<vmem>>, %arg5: memref<1x8x8x64xbf16, #tpu.memory_space<vmem>>, %arg6: memref<10x8x64xf32, #tpu.memory_space<vmem>>) attributes {dimension_semantics = [#tpu.dimension_semantics<parallel>, #tpu.dimension_semantics<parallel>], iteration_bounds = array<i64: 2, 1>, scalar_prefetch = 0 : i64, scratch_operands = 1 : i64, tpu.core_type = #tpu.core_type<tc>, window_params = [{transform_indices = @transform_0, window_bounds = array<i64: 1, 8, 8, 64>}, {transform_indices = @transform_1, window_bounds = array<i64: 9, 64>}, {transform_indices = @transform_2, window_bounds = array<i64: 1, 64>}, {transform_indices = @transform_3, window_bounds = array<i64: 1, 8, 8, 64>}]} {
    %cst = arith.constant 0.000000e+00 : f32
    %0 = vector.broadcast %cst : f32 to vector<8x64xf32>
    %c0 = arith.constant 0 : index
    %c0_0 = arith.constant 0 : index
    %c0_1 = arith.constant 0 : index
    %1 = vector.load %arg6[%c0, %c0_0, %c0_1] : memref<10x8x64xf32, #tpu.memory_space<vmem>>, vector<1x8x64xf32>
    %2 = vector.shape_cast %1 : vector<1x8x64xf32> to vector<8x64xf32>
    %3 = vector.shape_cast %0 : vector<8x64xf32> to vector<1x8x64xf32>
    tpu.vector_store %arg6[%c0, %c0_0, %c0_1], %3 {strides = array<i32>} : memref<10x8x64xf32, #tpu.memory_space<vmem>>, vector<1x8x64xf32>,
    %c9 = arith.constant 9 : index
    %c0_2 = arith.constant 0 : index
    %c0_3 = arith.constant 0 : index
    %4 = vector.load %arg6[%c9, %c0_2, %c0_3] : memref<10x8x64xf32, #tpu.memory_space<vmem>>, vector<1x8x64xf32>
    %5 = vector.shape_cast %4 : vector<1x8x64xf32> to vector<8x64xf32>
    %6 = vector.shape_cast %0 : vector<8x64xf32> to vector<1x8x64xf32>
    tpu.vector_store %arg6[%c9, %c0_2, %c0_3], %6 {strides = array<i32>} : memref<10x8x64xf32, #tpu.memory_space<vmem>>, vector<1x8x64xf32>,
    %c0_4 = arith.constant 0 : index
    %c0_5 = arith.constant 0 : index
    %c0_6 = arith.constant 0 : index
    %c0_7 = arith.constant 0 : index
    %7 = vector.load %arg2[%c0_4, %c0_5, %c0_6, %c0_7] : memref<1x8x8x64xbf16, #tpu.memory_space<vmem>>, vector<1x8x8x64xbf16>
    %8 = vector.shape_cast %7 : vector<1x8x8x64xbf16> to vector<8x8x64xbf16>
    %9 = arith.extf %8 : vector<8x8x64xbf16> to vector<8x8x64xf32>
    %c1 = arith.constant 1 : index
    %c0_8 = arith.constant 0 : index
    %c0_9 = arith.constant 0 : index
    %10 = vector.load %arg6[%c1, %c0_8, %c0_9] : memref<10x8x64xf32, #tpu.memory_space<vmem>>, vector<8x8x64xf32>
    tpu.vector_store %arg6[%c1, %c0_8, %c0_9], %9 {strides = array<i32>} : memref<10x8x64xf32, #tpu.memory_space<vmem>>, vector<8x8x64xf32>,
    %c0_10 = arith.constant 0 : index
    %c0_11 = arith.constant 0 : index
    %c0_12 = arith.constant 0 : index
    %11 = vector.load %arg6[%c0_10, %c0_11, %c0_12] : memref<10x8x64xf32, #tpu.memory_space<vmem>>, vector<10x8x64xf32>
    %12 = tpu.iota {dimensions = array<i32: 1>} : vector<10x8x64xi32>
    %c1_i32 = arith.constant 1 : i32
    %13 = vector.broadcast %c1_i32 : i32 to vector<10x8x64xi32>
    %14 = arith.cmpi sge, %12, %13 : vector<10x8x64xi32>
    %c1_i32_13 = arith.constant 1 : i32
    %15 = tpu.dynamic_rotate %11 by %c1_i32_13 dim 1 : vector<10x8x64xf32>, i32 -> vector<10x8x64xf32>
    %cst_14 = arith.constant 0.000000e+00 : f32
    %16 = vector.broadcast %cst_14 : f32 to vector<10x8x64xf32>
    %17 = arith.select %14, %15, %16 : vector<10x8x64xi1>, vector<10x8x64xf32>
    %c6_i32 = arith.constant 6 : i32
    %18 = vector.broadcast %c6_i32 : i32 to vector<10x8x64xi32>
    %19 = arith.cmpi sle, %12, %18 : vector<10x8x64xi32>
    %c7_i32 = arith.constant 7 : i32
    %20 = tpu.dynamic_rotate %11 by %c7_i32 dim 1 : vector<10x8x64xf32>, i32 -> vector<10x8x64xf32>
    %cst_15 = arith.constant 0.000000e+00 : f32
    %21 = vector.broadcast %cst_15 : f32 to vector<10x8x64xf32>
    %22 = arith.select %19, %20, %21 : vector<10x8x64xi1>, vector<10x8x64xf32>
    %c0_16 = arith.constant 0 : index
    %c0_17 = arith.constant 0 : index
    %23 = vector.load %arg3[%c0_16, %c0_17] : memref<9x64xf32, #tpu.memory_space<vmem>>, vector<9x64xf32>
    %cst_18 = arith.constant 0.000000e+00 : f32
    %24 = vector.broadcast %cst_18 : f32 to vector<8x8x64xf32>
    %25 = vector.extract_strided_slice %17 {offsets = [0, 0, 0], sizes = [8, 8, 64], strides = [1, 1, 1]} : vector<10x8x64xf32> to vector<8x8x64xf32>
    %26 = vector.extract_strided_slice %23 {offsets = [0, 0], sizes = [1, 64], strides = [1, 1]} : vector<9x64xf32> to vector<1x64xf32>
    %27 = vector.shape_cast %26 : vector<1x64xf32> to vector<64xf32>
    %28 = vector.shape_cast %27 : vector<64xf32> to vector<1x1x64xf32>
    %29 = vector.broadcast %28 : vector<1x1x64xf32> to vector<8x8x64xf32>
    %30 = arith.mulf %25, %29 : vector<8x8x64xf32>
    %31 = arith.addf %24, %30 : vector<8x8x64xf32>
    %32 = vector.extract_strided_slice %11 {offsets = [0, 0, 0], sizes = [8, 8, 64], strides = [1, 1, 1]} : vector<10x8x64xf32> to vector<8x8x64xf32>
    %33 = vector.extract_strided_slice %23 {offsets = [1, 0], sizes = [1, 64], strides = [1, 1]} : vector<9x64xf32> to vector<1x64xf32>
    %34 = vector.shape_cast %33 : vector<1x64xf32> to vector<64xf32>
    %35 = vector.shape_cast %34 : vector<64xf32> to vector<1x1x64xf32>
    %36 = vector.broadcast %35 : vector<1x1x64xf32> to vector<8x8x64xf32>
    %37 = arith.mulf %32, %36 : vector<8x8x64xf32>
    %38 = arith.addf %31, %37 : vector<8x8x64xf32>
    %39 = vector.extract_strided_slice %22 {offsets = [0, 0, 0], sizes = [8, 8, 64], strides = [1, 1, 1]} : vector<10x8x64xf32> to vector<8x8x64xf32>
    %40 = vector.extract_strided_slice %23 {offsets = [2, 0], sizes = [1, 64], strides = [1, 1]} : vector<9x64xf32> to vector<1x64xf32>
    %41 = vector.shape_cast %40 : vector<1x64xf32> to vector<64xf32>
    %42 = vector.shape_cast %41 : vector<64xf32> to vector<1x1x64xf32>
    %43 = vector.broadcast %42 : vector<1x1x64xf32> to vector<8x8x64xf32>
    %44 = arith.mulf %39, %43 : vector<8x8x64xf32>
    %45 = arith.addf %38, %44 : vector<8x8x64xf32>
    %46 = vector.extract_strided_slice %17 {offsets = [1, 0, 0], sizes = [8, 8, 64], strides = [1, 1, 1]} : vector<10x8x64xf32> to vector<8x8x64xf32>
    %47 = vector.extract_strided_slice %23 {offsets = [3, 0], sizes = [1, 64], strides = [1, 1]} : vector<9x64xf32> to vector<1x64xf32>
    %48 = vector.shape_cast %47 : vector<1x64xf32> to vector<64xf32>
    %49 = vector.shape_cast %48 : vector<64xf32> to vector<1x1x64xf32>
    %50 = vector.broadcast %49 : vector<1x1x64xf32> to vector<8x8x64xf32>
    %51 = arith.mulf %46, %50 : vector<8x8x64xf32>
    %52 = arith.addf %45, %51 : vector<8x8x64xf32>
    %53 = vector.extract_strided_slice %11 {offsets = [1, 0, 0], sizes = [8, 8, 64], strides = [1, 1, 1]} : vector<10x8x64xf32> to vector<8x8x64xf32>
    %54 = vector.extract_strided_slice %23 {offsets = [4, 0], sizes = [1, 64], strides = [1, 1]} : vector<9x64xf32> to vector<1x64xf32>
    %55 = vector.shape_cast %54 : vector<1x64xf32> to vector<64xf32>
    %56 = vector.shape_cast %55 : vector<64xf32> to vector<1x1x64xf32>
    %57 = vector.broadcast %56 : vector<1x1x64xf32> to vector<8x8x64xf32>
    %58 = arith.mulf %53, %57 : vector<8x8x64xf32>
    %59 = arith.addf %52, %58 : vector<8x8x64xf32>
    %60 = vector.extract_strided_slice %22 {offsets = [1, 0, 0], sizes = [8, 8, 64], strides = [1, 1, 1]} : vector<10x8x64xf32> to vector<8x8x64xf32>
    %61 = vector.extract_strided_slice %23 {offsets = [5, 0], sizes = [1, 64], strides = [1, 1]} : vector<9x64xf32> to vector<1x64xf32>
    %62 = vector.shape_cast %61 : vector<1x64xf32> to vector<64xf32>
    %63 = vector.shape_cast %62 : vector<64xf32> to vector<1x1x64xf32>
    %64 = vector.broadcast %63 : vector<1x1x64xf32> to vector<8x8x64xf32>
    %65 = arith.mulf %60, %64 : vector<8x8x64xf32>
    %66 = arith.addf %59, %65 : vector<8x8x64xf32>
    %67 = vector.extract_strided_slice %17 {offsets = [2, 0, 0], sizes = [8, 8, 64], strides = [1, 1, 1]} : vector<10x8x64xf32> to vector<8x8x64xf32>
    %68 = vector.extract_strided_slice %23 {offsets = [6, 0], sizes = [1, 64], strides = [1, 1]} : vector<9x64xf32> to vector<1x64xf32>
    %69 = vector.shape_cast %68 : vector<1x64xf32> to vector<64xf32>
    %70 = vector.shape_cast %69 : vector<64xf32> to vector<1x1x64xf32>
    %71 = vector.broadcast %70 : vector<1x1x64xf32> to vector<8x8x64xf32>
    %72 = arith.mulf %67, %71 : vector<8x8x64xf32>
    %73 = arith.addf %66, %72 : vector<8x8x64xf32>
    %74 = vector.extract_strided_slice %11 {offsets = [2, 0, 0], sizes = [8, 8, 64], strides = [1, 1, 1]} : vector<10x8x64xf32> to vector<8x8x64xf32>
    %75 = vector.extract_strided_slice %23 {offsets = [7, 0], sizes = [1, 64], strides = [1, 1]} : vector<9x64xf32> to vector<1x64xf32>
    %76 = vector.shape_cast %75 : vector<1x64xf32> to vector<64xf32>
    %77 = vector.shape_cast %76 : vector<64xf32> to vector<1x1x64xf32>
    %78 = vector.broadcast %77 : vector<1x1x64xf32> to vector<8x8x64xf32>
    %79 = arith.mulf %74, %78 : vector<8x8x64xf32>
    %80 = arith.addf %73, %79 : vector<8x8x64xf32>
    %81 = vector.extract_strided_slice %22 {offsets = [2, 0, 0], sizes = [8, 8, 64], strides = [1, 1, 1]} : vector<10x8x64xf32> to vector<8x8x64xf32>
    %82 = vector.extract_strided_slice %23 {offsets = [8, 0], sizes = [1, 64], strides = [1, 1]} : vector<9x64xf32> to vector<1x64xf32>
    %83 = vector.shape_cast %82 : vector<1x64xf32> to vector<64xf32>
    %84 = vector.shape_cast %83 : vector<64xf32> to vector<1x1x64xf32>
    %85 = vector.broadcast %84 : vector<1x1x64xf32> to vector<8x8x64xf32>
    %86 = arith.mulf %81, %85 : vector<8x8x64xf32>
    %87 = arith.addf %80, %86 : vector<8x8x64xf32>
    %c0_19 = arith.constant 0 : index
    %c0_20 = arith.constant 0 : index
    %88 = vector.load %arg4[%c0_19, %c0_20] : memref<1x64xf32, #tpu.memory_space<vmem>>, vector<1x64xf32>
    %89 = vector.shape_cast %88 : vector<1x64xf32> to vector<64xf32>
    %90 = vector.shape_cast %89 : vector<64xf32> to vector<1x1x64xf32>
    %91 = vector.broadcast %90 : vector<1x1x64xf32> to vector<8x8x64xf32>
    %92 = arith.addf %87, %91 : vector<8x8x64xf32>
    %cst_21 = arith.constant 0.707106769 : f32
    %93 = vector.broadcast %cst_21 : f32 to vector<8x8x64xf32>
    %94 = arith.mulf %92, %93 : vector<8x8x64xf32>
    %95 = math.absf %94 : vector<8x8x64xf32>
    %cst_22 = arith.constant 0.327591091 : f32
    %96 = vector.broadcast %cst_22 : f32 to vector<8x8x64xf32>
    %97 = arith.mulf %96, %95 : vector<8x8x64xf32>
    %cst_23 = arith.constant 1.000000e+00 : f32
    %98 = vector.broadcast %cst_23 : f32 to vector<8x8x64xf32>
    %99 = arith.addf %98, %97 : vector<8x8x64xf32>
    %cst_24 = arith.constant 1.000000e+00 : f32
    %100 = vector.broadcast %cst_24 : f32 to vector<8x8x64xf32>
    %101 = arith.divf %100, %99 : vector<8x8x64xf32>
    %cst_25 = arith.constant 1.06140542 : f32
    %102 = vector.broadcast %cst_25 : f32 to vector<8x8x64xf32>
    %103 = arith.mulf %102, %101 : vector<8x8x64xf32>
    %cst_26 = arith.constant 1.45315206 : f32
    %104 = vector.broadcast %cst_26 : f32 to vector<8x8x64xf32>
    %105 = arith.subf %103, %104 : vector<8x8x64xf32>
    %106 = arith.mulf %105, %101 : vector<8x8x64xf32>
    %cst_27 = arith.constant 1.42141378 : f32
    %107 = vector.broadcast %cst_27 : f32 to vector<8x8x64xf32>
    %108 = arith.addf %106, %107 : vector<8x8x64xf32>
    %109 = arith.mulf %108, %101 : vector<8x8x64xf32>
    %cst_28 = arith.constant 0.284496725 : f32
    %110 = vector.broadcast %cst_28 : f32 to vector<8x8x64xf32>
    %111 = arith.subf %109, %110 : vector<8x8x64xf32>
    %112 = arith.mulf %111, %101 : vector<8x8x64xf32>
    %cst_29 = arith.constant 0.254829586 : f32
    %113 = vector.broadcast %cst_29 : f32 to vector<8x8x64xf32>
    %114 = arith.addf %112, %113 : vector<8x8x64xf32>
    %115 = arith.mulf %114, %101 : vector<8x8x64xf32>
    %cst_30 = arith.constant 0.000000e+00 : f32
    %116 = vector.broadcast %cst_30 : f32 to vector<8x8x64xf32>
    %117 = arith.subf %116, %95 : vector<8x8x64xf32>
    %118 = arith.mulf %117, %95 : vector<8x8x64xf32>
    %119 = math.exp %118 : vector<8x8x64xf32>
    %120 = arith.mulf %115, %119 : vector<8x8x64xf32>
    %cst_31 = arith.constant 1.000000e+00 : f32
    %121 = vector.broadcast %cst_31 : f32 to vector<8x8x64xf32>
    %122 = arith.subf %121, %120 : vector<8x8x64xf32>
    %cst_32 = arith.constant 0.000000e+00 : f32
    %123 = vector.broadcast %cst_32 : f32 to vector<8x8x64xf32>
    %124 = arith.cmpf oge, %94, %123 : vector<8x8x64xf32>
    %cst_33 = arith.constant 0.000000e+00 : f32
    %125 = vector.broadcast %cst_33 : f32 to vector<8x8x64xf32>
    %126 = arith.subf %125, %122 : vector<8x8x64xf32>
    %127 = arith.select %124, %122, %126 : vector<8x8x64xi1>, vector<8x8x64xf32>
    %cst_34 = arith.constant 5.000000e-01 : f32
    %128 = vector.broadcast %cst_34 : f32 to vector<8x8x64xf32>
    %129 = arith.mulf %128, %92 : vector<8x8x64xf32>
    %cst_35 = arith.constant 1.000000e+00 : f32
    %130 = vector.broadcast %cst_35 : f32 to vector<8x8x64xf32>
    %131 = arith.addf %130, %127 : vector<8x8x64xf32>
    %132 = arith.mulf %129, %131 : vector<8x8x64xf32>
    %133 = arith.truncf %132 : vector<8x8x64xf32> to vector<8x8x64xbf16>
    %c0_36 = arith.constant 0 : index
    %c0_37 = arith.constant 0 : index
    %c0_38 = arith.constant 0 : index
    %c0_39 = arith.constant 0 : index
    %134 = vector.load %arg5[%c0_36, %c0_37, %c0_38, %c0_39] : memref<1x8x8x64xbf16, #tpu.memory_space<vmem>>, vector<1x8x8x64xbf16>
    %135 = vector.shape_cast %134 : vector<1x8x8x64xbf16> to vector<8x8x64xbf16>
    %136 = vector.shape_cast %133 : vector<8x8x64xbf16> to vector<1x8x8x64xbf16>
    tpu.vector_store %arg5[%c0_36, %c0_37, %c0_38, %c0_39], %136 {strides = array<i32>} : memref<1x8x8x64xbf16, #tpu.memory_space<vmem>>, vector<1x8x8x64xbf16>,
    return
  }
  func.func @transform_0(%arg0: i32, %arg1: i32) -> (i32, i32, i32, i32) {
    %c0_i32 = arith.constant 0 : i32
    %c0_i32_0 = arith.constant 0 : i32
    %c0_i32_1 = arith.constant 0 : i32
    return %arg0, %c0_i32, %c0_i32_0, %arg1 : i32, i32, i32, i32
  }
  func.func @transform_1(%arg0: i32, %arg1: i32) -> (i32, i32) {
    %c0_i32 = arith.constant 0 : i32
    %c0_i32_0 = arith.constant 0 : i32
    return %c0_i32, %arg1 : i32, i32
  }
  func.func @transform_2(%arg0: i32, %arg1: i32) -> (i32, i32) {
    %c0_i32 = arith.constant 0 : i32
    %c0_i32_0 = arith.constant 0 : i32
    return %c0_i32, %arg1 : i32, i32
  }
  func.func @transform_3(%arg0: i32, %arg1: i32) -> (i32, i32, i32, i32) {
    %c0_i32 = arith.constant 0 : i32
    %c0_i32_0 = arith.constant 0 : i32
    %c0_i32_1 = arith.constant 0 : i32
    return %arg0, %c0_i32, %c0_i32_0, %arg1 : i32, i32, i32, i32
  }
}

module attributes {stable_mosaic.version = 11 : i64} {
  func.func @_linear_res_kernel(%arg0: i32, %arg1: memref<128x64xbf16, #tpu.memory_space<vmem>>, %arg2: memref<64x32xbf16, #tpu.memory_space<vmem>>, %arg3: memref<1x32xf32, #tpu.memory_space<vmem>>, %arg4: memref<128x32xf32, #tpu.memory_space<vmem>>, %arg5: memref<128x32xf32, #tpu.memory_space<vmem>>) attributes {dimension_semantics = [#tpu.dimension_semantics<parallel>], iteration_bounds = array<i64: 1>, scalar_prefetch = 0 : i64, scratch_operands = 0 : i64, tpu.core_type = #tpu.core_type<tc>, window_params = [{transform_indices = @transform_0, window_bounds = array<i64: 128, 64>}, {pipeline_mode = #tpu.pipeline_mode<synchronous>, transform_indices = @transform_1, window_bounds = array<i64: 64, 32>}, {pipeline_mode = #tpu.pipeline_mode<synchronous>, transform_indices = @transform_2, window_bounds = array<i64: 1, 32>}, {transform_indices = @transform_3, window_bounds = array<i64: 128, 32>}, {transform_indices = @transform_4, window_bounds = array<i64: 128, 32>}]} {
    %c0 = arith.constant 0 : index
    %c0_0 = arith.constant 0 : index
    %0 = vector.load %arg1[%c0, %c0_0] : memref<128x64xbf16, #tpu.memory_space<vmem>>, vector<128x64xbf16>
    %c0_1 = arith.constant 0 : index
    %c0_2 = arith.constant 0 : index
    %1 = vector.load %arg2[%c0_1, %c0_2] : memref<64x32xbf16, #tpu.memory_space<vmem>>, vector<64x32xbf16>
    %cst = arith.constant dense<0.000000e+00> : vector<128x32xf32>
    %2 = tpu.matmul %0, %1, %cst {dimension_numbers = #tpu.dot_dimension_numbers<[1], [0], [0], [1], [0, 0, 1, 1], [], []>} : vector<128x64xbf16>, vector<64x32xbf16>, vector<128x32xf32> -> vector<128x32xf32>
    %c0_3 = arith.constant 0 : index
    %c0_4 = arith.constant 0 : index
    %3 = vector.load %arg3[%c0_3, %c0_4] : memref<1x32xf32, #tpu.memory_space<vmem>>, vector<1x32xf32>
    %4 = vector.broadcast %3 : vector<1x32xf32> to vector<128x32xf32>
    %5 = arith.addf %2, %4 : vector<128x32xf32>
    %c0_5 = arith.constant 0 : index
    %c0_6 = arith.constant 0 : index
    %6 = vector.load %arg4[%c0_5, %c0_6] : memref<128x32xf32, #tpu.memory_space<vmem>>, vector<128x32xf32>
    %7 = arith.addf %5, %6 : vector<128x32xf32>
    %c0_7 = arith.constant 0 : index
    %c0_8 = arith.constant 0 : index
    %8 = vector.load %arg5[%c0_7, %c0_8] : memref<128x32xf32, #tpu.memory_space<vmem>>, vector<128x32xf32>
    tpu.vector_store %arg5[%c0_7, %c0_8], %7 {strides = array<i32>} : memref<128x32xf32, #tpu.memory_space<vmem>>, vector<128x32xf32>,
    return
  }
  func.func @transform_0(%arg0: i32) -> (i32, i32) {
    %c0_i32 = arith.constant 0 : i32
    %c0_i32_0 = arith.constant 0 : i32
    return %arg0, %c0_i32 : i32, i32
  }
  func.func @transform_1(%arg0: i32) -> (i32, i32) {
    %c0_i32 = arith.constant 0 : i32
    %c0_i32_0 = arith.constant 0 : i32
    %c0_i32_1 = arith.constant 0 : i32
    return %c0_i32, %c0_i32_0 : i32, i32
  }
  func.func @transform_2(%arg0: i32) -> (i32, i32) {
    %c0_i32 = arith.constant 0 : i32
    %c0_i32_0 = arith.constant 0 : i32
    %c0_i32_1 = arith.constant 0 : i32
    return %c0_i32, %c0_i32_0 : i32, i32
  }
  func.func @transform_3(%arg0: i32) -> (i32, i32) {
    %c0_i32 = arith.constant 0 : i32
    %c0_i32_0 = arith.constant 0 : i32
    return %arg0, %c0_i32 : i32, i32
  }
  func.func @transform_4(%arg0: i32) -> (i32, i32) {
    %c0_i32 = arith.constant 0 : i32
    %c0_i32_0 = arith.constant 0 : i32
    return %arg0, %c0_i32 : i32, i32
  }
}

</mosaic_0001>

<bundles_post_ra>
// kernel: block_forward.6
= control target key start
LH: loop header
LB: loop body
LE: loop exit
PB: predicated region body
PF: predicated region fallthrough
CT: control target
= control target key end

     0   :  { %vm37_vm0 = vcmask 261120   ;;  %vm509_vm1 = vcmask 257024   ;;  %s1014_s0 = inlined_call_operand.vmem [shape: f32[128,32], index: 0, kind: input, shape index: {}]   ;;  %s1015_s3 = inlined_call_operand.vmem [shape: bf16[32,32], index: 3, kind: input, shape index: {}]   ;;  %s1016_s1 = inlined_call_operand.vmem [shape: f32[1,32], index: 1, kind: input, shape index: {}]   ;;  %s1017_s2 = inlined_call_operand.vmem [shape: f32[1,32], index: 2, kind: input, shape index: {}]   ;;  %s1018_s4 = inlined_call_operand.vmem [shape: f32[1,32], index: 4, kind: input, shape index: {}]   ;;  %s1019_s5 = inlined_call_operand.vmem [shape: bf16[128,32], index: 5, kind: output, shape index: {}]  }
   0x1   :  { %v21_v0 = vld [vmem:[%s1014_s0] sm:$0xff]  ;;  %v22_v2 = vld [vmem:[%s1014_s0 + $0x8] sm:$0xff]  ;;  %v23_v8 = vld [vmem:[%s1014_s0 + $0x10] sm:$0xff] }
   0x2   :  { %v29_v1 = vld [vmem:[%s1014_s0 + $0x40] sm:$0xff]  ;;  %v38_v3 = vsel %vm37_vm0, %v21_v0, 0.0  ;;  %v30_v5 = vld [vmem:[%s1014_s0 + $0x48] sm:$0xff]  ;;  %v41_v6 = vsel %vm37_vm0, %v22_v2, 0.0  ;;  %v24_v9 = vld [vmem:[%s1014_s0 + $0x18] sm:$0xff]  ;;  %v44_v10 = vsel %vm37_vm0, %v23_v8, 0.0 }
   0x3   :  { %v62_v4 = vsel %vm37_vm0, %v29_v1, 0.0  ;;  %39 = vadd.xlane.f32.xlu0 %v38_v3  ;;  %v65_v7 = vsel %vm37_vm0, %v30_v5, 0.0  ;;  %v47_v11 = vsel %vm37_vm0, %v24_v9, 0.0  ;;  %v700_v12 = vld [vmem:[%s1014_s0 + $0x50] sm:$0xff]  ;;  %v705_v13 = vld [vmem:[%s1014_s0 + $0x58] sm:$0xff]  ;;  %v714_v16 = vld [vmem:[%s1014_s0 + $0x20] sm:$0xff] }
   0x4   :  { %63 = vadd.xlane.f32.xlu1 %v62_v4  ;;  %v68_v14 = vsel %vm37_vm0, %v700_v12, 0.0  ;;  %v71_v15 = vsel %vm37_vm0, %v705_v13, 0.0  ;;  %v719_v17 = vld [vmem:[%s1014_s0 + $0x28] sm:$0xff]  ;;  %v50_v18 = vsel %vm37_vm0, %v714_v16, 0.0  ;;  %v728_v20 = vld [vmem:[%s1014_s0 + $0x60] sm:$0xff]  ;;  %v742_v24 = vld [vmem:[%s1014_s0 + $0x30] sm:$0xff] }
   0x5   :  { %v53_v19 = vsel %vm37_vm0, %v719_v17, 0.0  ;;  %v733_v21 = vld [vmem:[%s1014_s0 + $0x68] sm:$0xff]  ;;  %v74_v22 = vsel %vm37_vm0, %v728_v20, 0.0  ;;  %v747_v25 = vld [vmem:[%s1014_s0 + $0x38] sm:$0xff]  ;;  %v56_v26 = vsel %vm37_vm0, %v742_v24, 0.0  ;;  %v756_v28 = vld [vmem:[%s1014_s0 + $0x70] sm:$0xff] }
   0x6   :  { %v77_v23 = vsel %vm37_vm0, %v733_v21, 0.0  ;;  %v59_v27 = vsel %vm37_vm0, %v747_v25, 0.0  ;;  %v761_v29 = vld [vmem:[%s1014_s0 + $0x78] sm:$0xff]  ;;  %v80_v30 = vsel %vm37_vm0, %v756_v28, 0.0 }
   0x7   :  { %42 = vadd.xlane.f32.xlu0 %v41_v6  ;;  %v83_v31 = vsel %vm37_vm0, %v761_v29, 0.0 }
   0x8   :  { %66 = vadd.xlane.f32.xlu1 %v65_v7 }
   0xb   :  { %45 = vadd.xlane.f32.xlu0 %v44_v10 }
   0xc   :  { %48 = vadd.xlane.f32.xlu1 %v47_v11 }
   0xf   :  { %69 = vadd.xlane.f32.xlu0 %v68_v14 }
  0x10   :  { %72 = vadd.xlane.f32.xlu1 %v71_v15 }
  0x13   :  { %51 = vadd.xlane.f32.xlu0 %v50_v18 }
  0x14   :  { %54 = vadd.xlane.f32.xlu1 %v53_v19 }
  0x17   :  { %75 = vadd.xlane.f32.xlu0 %v74_v22 }
  0x18   :  { %78 = vadd.xlane.f32.xlu1 %v77_v23 }
  0x1b   :  { %57 = vadd.xlane.f32.xlu0 %v56_v26 }
  0x1c   :  { %60 = vadd.xlane.f32.xlu1 %v59_v27 }
  0x1f   :  { %81 = vadd.xlane.f32.xlu0 %v80_v30 }
  0x20   :  { %84 = vadd.xlane.f32.xlu1 %v83_v31 }
  0x8c   :  { %v40_v32 = vpop.xlane.xlu0 %39 }
  0x8d   :  { %v64_v33 = vpop.xlane.xlu1 %63  ;;  %v87_v34 = vmul.f32 0.03125, %v40_v32 }
  0x8e   :  { %v95_v35 = vmul.f32 0.03125, %v64_v33 }
  0x8f   :  { %v767_v36 = vsub.f32 %v21_v0, %v87_v34 }
  0x90   :  { %v769_v37 = vsub.f32 %v29_v1, %v95_v35  ;;  %v43_v38 = vpop.xlane.xlu0 %42 }
  0x91   :  { %v67_v39 = vpop.xlane.xlu1 %66  ;;  %v88_v40 = vmul.f32 0.03125, %v43_v38  ;;  %v119_v42 = vmul.f32 %v767_v36, %v767_v36 }
  0x92   :  { %v96_v41 = vmul.f32 0.03125, %v67_v39  ;;  %v127_v43 = vmul.f32 %v769_v37, %v769_v37 }
  0x93   :  { %v775_v44 = vsub.f32 %v22_v2, %v88_v40  ;;  %v135_v46 = vsel %vm37_vm0, %v119_v42, 0.0 }
  0x94   :  { %v777_v45 = vsub.f32 %v30_v5, %v96_v41  ;;  %136 = vadd.xlane.f32.xlu0 %v135_v46  ;;  %v46_v47 = vpop.xlane.xlu0 %45  ;;  %v159_v49 = vsel %vm37_vm0, %v127_v43, 0.0 }
  0x95   :  { %v49_v48 = vpop.xlane.xlu1 %48  ;;  %v89_v50 = vmul.f32 0.03125, %v46_v47  ;;  %v120_v52 = vmul.f32 %v775_v44, %v775_v44 }
  0x96   :  { %v90_v51 = vmul.f32 0.03125, %v49_v48  ;;  %v128_v53 = vmul.f32 %v777_v45, %v777_v45 }
  0x97   :  { %v785_v54 = vsub.f32 %v23_v8, %v89_v50  ;;  %v138_v56 = vsel %vm37_vm0, %v120_v52, 0.0 }
  0x98   :  { %v787_v55 = vsub.f32 %v24_v9, %v90_v51  ;;  %160 = vadd.xlane.f32.xlu0 %v159_v49  ;;  %139 = vadd.xlane.f32.xlu1 %v138_v56  ;;  %v70_v57 = vpop.xlane.xlu0 %69  ;;  %v162_v59 = vsel %vm37_vm0, %v128_v53, 0.0  ;;  %v610_v53 = vld [vmem:[%s1015_s3] sm:$0xff]  }
  0x99   :  { %v73_v58 = vpop.xlane.xlu1 %72  ;;  %v97_v60 = vmul.f32 0.03125, %v70_v57  ;;  %v121_v62 = vmul.f32 %v785_v54, %v785_v54 }
  0x9a   :  { %v98_v61 = vmul.f32 0.03125, %v73_v58  ;;  %v122_v63 = vmul.f32 %v787_v55, %v787_v55 }
  0x9b   :  { %v796_v0 = vsub.f32 %v700_v12, %v97_v60  ;;  %v141_v2 = vsel %vm37_vm0, %v121_v62, 0.0 }
  0x9c   :  { %v799_v1 = vsub.f32 %v705_v13, %v98_v61  ;;  %163 = vadd.xlane.f32.xlu1 %v162_v59  ;;  %142 = vadd.xlane.f32.xlu0 %v141_v2  ;;  %v52_v3 = vpop.xlane.xlu0 %51  ;;  %v144_v5 = vsel %vm37_vm0, %v122_v63, 0.0 }
  0x9d   :  { %v55_v4 = vpop.xlane.xlu1 %54  ;;  %v91_v6 = vmul.f32 0.03125, %v52_v3  ;;  %v129_v8 = vmul.f32 %v796_v0, %v796_v0 }
  0x9e   :  { %v92_v7 = vmul.f32 0.03125, %v55_v4  ;;  %v130_v9 = vmul.f32 %v799_v1, %v799_v1 }
  0x9f   :  { %v808_v10 = vsub.f32 %v714_v16, %v91_v6  ;;  %v165_v12 = vsel %vm37_vm0, %v129_v8, 0.0 }
  0xa0   :  { %v811_v11 = vsub.f32 %v719_v17, %v92_v7  ;;  %145 = vadd.xlane.f32.xlu1 %v144_v5  ;;  %166 = vadd.xlane.f32.xlu0 %v165_v12  ;;  %v76_v13 = vpop.xlane.xlu0 %75  ;;  %v168_v15 = vsel %vm37_vm0, %v130_v9, 0.0 }
  0xa1   :  { %v79_v14 = vpop.xlane.xlu1 %78  ;;  %v99_v18 = vmul.f32 0.03125, %v76_v13  ;;  %v123_v22 = vmul.f32 %v808_v10, %v808_v10 }
  0xa2   :  { %v100_v19 = vmul.f32 0.03125, %v79_v14  ;;  %v124_v16 = vmul.f32 %v811_v11, %v811_v11 }
  0xa3   :  { %v820_v23 = vsub.f32 %v728_v20, %v99_v18  ;;  %v147_v26 = vsel %vm37_vm0, %v123_v22, 0.0 }
  0xa4   :  { %v823_v17 = vsub.f32 %v733_v21, %v100_v19  ;;  %169 = vadd.xlane.f32.xlu1 %v168_v15  ;;  %148 = vadd.xlane.f32.xlu0 %v147_v26  ;;  %v58_v27 = vpop.xlane.xlu0 %57  ;;  %v150_v31 = vsel %vm37_vm0, %v124_v16, 0.0 }
  0xa5   :  { %v61_v30 = vpop.xlane.xlu1 %60  ;;  %v93_v32 = vmul.f32 0.03125, %v58_v27  ;;  %v131_v34 = vmul.f32 %v820_v23, %v820_v23 }
  0xa6   :  { %v94_v33 = vmul.f32 0.03125, %v61_v30  ;;  %v132_v20 = vmul.f32 %v823_v17, %v823_v17 }
  0xa7   :  { %v832_v35 = vsub.f32 %v742_v24, %v93_v32  ;;  %v171_v38 = vsel %vm37_vm0, %v131_v34, 0.0 }
  0xa8   :  { %v835_v21 = vsub.f32 %v747_v25, %v94_v33  ;;  %151 = vadd.xlane.f32.xlu1 %v150_v31  ;;  %172 = vadd.xlane.f32.xlu0 %v171_v38  ;;  %v82_v39 = vpop.xlane.xlu0 %81  ;;  %v174_v41 = vsel %vm37_vm0, %v132_v20, 0.0  ;;  %v867_v33 = vld [vmem:[%s1016_s1] ss:$0 sm:$0xff] }
  0xa9   :  { %v85_v40 = vpop.xlane.xlu1 %84  ;;  %v101_v42 = vmul.f32 0.03125, %v82_v39  ;;  %v125_v46 = vmul.f32 %v832_v35, %v832_v35 }
  0xaa   :  { %v102_v43 = vmul.f32 0.03125, %v85_v40  ;;  %v126_v24 = vmul.f32 %v835_v21, %v835_v21 }
  0xab   :  { %v844_v47 = vsub.f32 %v756_v28, %v101_v42  ;;  %v153_v48 = vsel %vm37_vm0, %v125_v46, 0.0 }
  0xac   :  { %v847_v25 = vsub.f32 %v761_v29, %v102_v43  ;;  %175 = vadd.xlane.f32.xlu1 %v174_v41  ;;  %154 = vadd.xlane.f32.xlu0 %v153_v48  ;;  %v156_v49 = vsel %vm37_vm0, %v126_v24, 0.0  ;;  %v609_v29 = vld [vmem:[%s1015_s3 + $0x8] sm:$0xff]  }
  0xad   :  { %v133_v50 = vmul.f32 %v844_v47, %v844_v47  ;;  %585 = vmatprep.subr.bf16.mxu0 %v609_v29  ;;  %605 = vmatprep.subr.bf16.mxu1 %v609_v29 }
  0xae   :  { %v134_v51 = vmul.f32 %v847_v25, %v847_v25  ;;  %586 = vmatpush3.bf16.msra.mxu0 %v609_v29  ;;  %607 = vmatpush3.bf16.msra.mxu1 %v609_v29 }
  0xaf   :  { %v177_v52 = vsel %vm37_vm0, %v133_v50, 0.0  ;;  %587 = vmatprep.subr.bf16.mxu0 %v610_v53  ;;  %606 = vmatprep.subr.bf16.mxu1 %v610_v53 }
  0xb0   :  { %157 = vadd.xlane.f32.xlu1 %v156_v49  ;;  %178 = vadd.xlane.f32.xlu0 %v177_v52  ;;  %v180_v28 = vsel %vm37_vm0, %v134_v51, 0.0 }
  0xb2   :  { %588 = vmatpush3.bf16.msra.mxu0 %v610_v53  ;;  %608 = vmatpush3.bf16.msra.mxu1 %v610_v53 }
  0xb4   :  { %181 = vadd.xlane.f32.xlu1 %v180_v28 }
 0x11d   :  { %v137_v56 = vpop.xlane.xlu0 %136 }
 0x11e   :  { %v183_v57 = vmul.f32 0.03125, %v137_v56 }
 0x120   :  { %v199_v58 = vadd.f32 1e-06, %v183_v57 }
 0x121   :  { %v140_v59 = vpop.xlane.xlu1 %139  ;;  %v161_v60 = vpop.xlane.xlu0 %160 }
 0x122   :  { %611 = vrsqrt.f32 %v199_v58  ;;  %v184_v61 = vmul.f32 0.03125, %v140_v59  ;;  %v191_v62 = vmul.f32 0.03125, %v161_v60 }
 0x124   :  { %v200_v63 = vadd.f32 1e-06, %v184_v61  ;;  %v207_v2 = vadd.f32 1e-06, %v191_v62 }
 0x125   :  { %v164_v3 = vpop.xlane.xlu1 %163  ;;  %v143_v4 = vpop.xlane.xlu0 %142 }
 0x126   :  { %613 = vrsqrt.f32 %v200_v63  ;;  %v192_v5 = vmul.f32 0.03125, %v164_v3  ;;  %v185_v6 = vmul.f32 0.03125, %v143_v4 }
 0x127   :  { %615 = vrsqrt.f32 %v207_v2 }
 0x128   :  { %v208_v7 = vadd.f32 1e-06, %v192_v5  ;;  %v201_v8 = vadd.f32 1e-06, %v185_v6 }
 0x129   :  { %v146_v9 = vpop.xlane.xlu1 %145  ;;  %v167_v12 = vpop.xlane.xlu0 %166 }
 0x12a   :  { %617 = vrsqrt.f32 %v208_v7  ;;  %v186_v13 = vmul.f32 0.03125, %v146_v9  ;;  %v193_v14 = vmul.f32 0.03125, %v167_v12 }
 0x12b   :  { %619 = vrsqrt.f32 %v201_v8 }
 0x12c   :  { %v202_v15 = vadd.f32 1e-06, %v186_v13  ;;  %v209_v18 = vadd.f32 1e-06, %v193_v14 }
 0x12d   :  { %v170_v19 = vpop.xlane.xlu1 %169  ;;  %v149_v22 = vpop.xlane.xlu0 %148 }
 0x12e   :  { %621 = vrsqrt.f32 %v202_v15  ;;  %v194_v16 = vmul.f32 0.03125, %v170_v19  ;;  %v187_v26 = vmul.f32 0.03125, %v149_v22 }
 0x12f   :  { %v612_v27 = vpop.eup %611  ;;  %623 = vrsqrt.f32 %v209_v18 }
 0x130   :  { %v210_v30 = vadd.f32 1e-06, %v194_v16  ;;  %v203_v31 = vadd.f32 1e-06, %v187_v26  ;;  %v231_v32 = vmul.f32 %v612_v27, %v767_v36  ;;  %v874_v36 = vld [vmem:[%s1017_s2] ss:$0 sm:$0xff] }
 0x131   :  { %v152_v34 = vpop.xlane.xlu1 %151  ;;  %v173_v20 = vpop.xlane.xlu0 %172 }
 0x132   :  { %625 = vrsqrt.f32 %v210_v30  ;;  %v188_v38 = vmul.f32 0.03125, %v152_v34  ;;  %v195_v39 = vmul.f32 0.03125, %v173_v20  ;;  %v254_v41 = vmul.f32 %v867_v33, %v231_v32 }
 0x133   :  { %v614_v40 = vpop.eup %613  ;;  %627 = vrsqrt.f32 %v203_v31 }
 0x134   :  { %v616_v42 = vpop.eup %615  ;;  %v204_v43 = vadd.f32 1e-06, %v188_v38  ;;  %v211_v46 = vadd.f32 1e-06, %v195_v39  ;;  %v232_v24 = vmul.f32 %v614_v40, %v775_v44  ;;  %v277_v53 = vadd.f32 %v874_v36, %v254_v41 }
 0x135   :  { %v176_v48 = vpop.xlane.xlu1 %175  ;;  %v155_v49 = vpop.xlane.xlu0 %154  ;;  %v239_v50 = vmul.f32 %v616_v42, %v769_v37 }
 0x136   :  { %629 = vrsqrt.f32 %v204_v43  ;;  %v196_v51 = vmul.f32 0.03125, %v176_v48  ;;  %v189_v52 = vmul.f32 0.03125, %v155_v49  ;;  %v255_v28 = vmul.f32 %v867_v33, %v232_v24 }
 0x137   :  { %v618_v29 = vpop.eup %617  ;;  %631 = vrsqrt.f32 %v211_v46  ;;  %v262_v37 = vmul.f32 %v867_v33, %v239_v50 }
 0x138   :  { %v620_v56 = vpop.eup %619  ;;  %v212_v44 = vadd.f32 1e-06, %v196_v51  ;;  %v205_v57 = vadd.f32 1e-06, %v189_v52  ;;  %v278_v58 = vadd.f32 %v874_v36, %v255_v28  ;;  %v240_v59 = vmul.f32 %v618_v29, %v777_v45 }
 0x139   :  { %v158_v60 = vpop.xlane.xlu1 %157  ;;  %v179_v61 = vpop.xlane.xlu0 %178  ;;  %v233_v62 = vmul.f32 %v620_v56, %v785_v54  ;;  %v285_v54 = vadd.f32 %v874_v36, %v262_v37 }
 0x13a   :  { %633 = vrsqrt.f32 %v212_v44  ;;  %v190_v63 = vmul.f32 0.03125, %v158_v60  ;;  %v197_v2 = vmul.f32 0.03125, %v179_v61  ;;  %v293_v3 = vpack.c.bf16 %v278_v58, %v277_v53 }
 0x13b   :  { %v622_v4 = vpop.eup %621  ;;  %635 = vrsqrt.f32 %v205_v57  ;;  %v263_v5 = vmul.f32 %v867_v33, %v240_v59  ;;  %v256_v6 = vmul.f32 %v867_v33, %v233_v62 }
 0x13c   :  { %v624_v7 = vpop.eup %623  ;;  %v206_v8 = vadd.f32 1e-06, %v190_v63  ;;  %v213_v9 = vadd.f32 1e-06, %v197_v2  ;;  %589 = vmatprep.mubr.msk.bf16.mxu0 %vm37_vm0, %v293_v3  ;;  %v234_v45 = vmul.f32 %v622_v4, %v787_v55  ;;  %v932_v4 = vld [vmem:[%s1018_s4] ss:$0 sm:$0xff] }
 0x13d   :  { %v182_v12 = vpop.xlane.xlu1 %181  ;;  %v286_v13 = vadd.f32 %v874_v36, %v263_v5  ;;  %v241_v14 = vmul.f32 %v624_v7, %v796_v0  ;;  %v279_v16 = vadd.f32 %v874_v36, %v256_v6 }
 0x13e   :  { %637 = vrsqrt.f32 %v206_v8  ;;  %v198_v15 = vmul.f32 0.03125, %v182_v12  ;;  %v257_v18 = vmul.f32 %v867_v33, %v234_v45 }
 0x13f   :  { %v626_v19 = vpop.eup %625  ;;  %639 = vrsqrt.f32 %v213_v9  ;;  %v297_v22 = vpack.c.bf16 %v286_v13, %v285_v54  ;;  %v264_v31 = vmul.f32 %v867_v33, %v241_v14 }
 0x140   :  { %v628_v26 = vpop.eup %627  ;;  %v214_v27 = vadd.f32 1e-06, %v198_v15  ;;  %v280_v55 = vadd.f32 %v874_v36, %v257_v18  ;;  %v242_v30 = vmul.f32 %v626_v19, %v799_v1 }
 0x141   :  { %597 = vmatprep.mubr.msk.bf16.mxu1 %vm37_vm0, %v297_v22  ;;  %v235_v0 = vmul.f32 %v628_v26, %v808_v10  ;;  %v287_v39 = vadd.f32 %v874_v36, %v264_v31 }
 0x142   :  { %641 = vrsqrt.f32 %v214_v27  ;;  %v294_v32 = vpack.c.bf16 %v280_v55, %v279_v16  ;;  %v265_v34 = vmul.f32 %v867_v33, %v242_v30 }
 0x143   :  { %v630_v20 = vpop.eup %629  ;;  %v258_v41 = vmul.f32 %v867_v33, %v235_v0 }
 0x144   :  { %v632_v38 = vpop.eup %631  ;;  %590 = vmatmul.mubr.msk.bf16.vlgmr.msra.gmra.mxu0 %vm37_vm0, %v294_v32  ;;  %v288_v40 = vadd.f32 %v874_v36, %v265_v34  ;;  %v236_v1 = vmul.f32 %v630_v20, %v811_v11 }
 0x145   :  { %v243_v42 = vmul.f32 %v632_v38, %v820_v23  ;;  %v281_v48 = vadd.f32 %v874_v36, %v258_v41 }
 0x146   :  { %v298_v43 = vpack.c.bf16 %v288_v40, %v287_v39  ;;  %v259_v10 = vmul.f32 %v867_v33, %v236_v1 }
 0x147   :  { %v634_v46 = vpop.eup %633  ;;  %v266_v51 = vmul.f32 %v867_v33, %v243_v42 }
 0x148   :  { %v636_v24 = vpop.eup %635  ;;  %598 = vmatmul.mubr.msk.bf16.vlgmr.msra.gmra.mxu1 %vm37_vm0, %v298_v43  ;;  %v282_v49 = vadd.f32 %v874_v36, %v259_v10  ;;  %v244_v50 = vmul.f32 %v634_v46, %v823_v17 }
 0x149   :  { %v237_v11 = vmul.f32 %v636_v24, %v832_v35  ;;  %v289_v53 = vadd.f32 %v874_v36, %v266_v51 }
 0x14a   :  { %v295_v52 = vpack.c.bf16 %v282_v49, %v281_v48  ;;  %v267_v23 = vmul.f32 %v867_v33, %v244_v50 }
 0x14b   :  { %v638_v28 = vpop.eup %637  ;;  %v260_v57 = vmul.f32 %v867_v33, %v237_v11 }
 0x14c   :  { %v640_v29 = vpop.eup %639  ;;  %593 = vmatprep.mubr.msk.bf16.mxu0 %vm37_vm0, %v295_v52  ;;  %v290_v56 = vadd.f32 %v874_v36, %v267_v23  ;;  %v238_v44 = vmul.f32 %v638_v28, %v835_v21 }
 0x14d   :  { %v245_v17 = vmul.f32 %v640_v29, %v844_v47  ;;  %v283_v60 = vadd.f32 %v874_v36, %v260_v57 }
 0x14e   :  { %v299_v58 = vpack.c.bf16 %v290_v56, %v289_v53  ;;  %v261_v35 = vmul.f32 %v867_v33, %v238_v44 }
 0x14f   :  { %v642_v59 = vpop.eup %641  ;;  %v268_v62 = vmul.f32 %v867_v33, %v245_v17 }
 0x150   :  { %601 = vmatprep.mubr.msk.bf16.mxu1 %vm37_vm0, %v299_v58  ;;  %v284_v61 = vadd.f32 %v874_v36, %v261_v35  ;;  %v246_v37 = vmul.f32 %v642_v59, %v847_v25 }
 0x151   :  { %v291_v47 = vadd.f32 %v874_v36, %v268_v62 }
 0x152   :  { %v296_v63 = vpack.c.bf16 %v284_v61, %v283_v60  ;;  %v269_v21 = vmul.f32 %v867_v33, %v246_v37 }
 0x154   :  { %594 = vmatmul.mubr.msk.bf16.gmra.mxu0 %vm37_vm0, %v296_v63  ;;  %v292_v2 = vadd.f32 %v874_v36, %v269_v21 }
 0x156   :  { %v300_v3 = vpack.c.bf16 %v292_v2, %v291_v47 }
 0x158   :  { %602 = vmatmul.mubr.msk.bf16.gmra.mxu1 %vm37_vm0, %v300_v3 }
 0x204   :  { %v591_v25 = vpop.f32.mrf.mxu0 }
 0x205   :  { %v391_v5 = vadd.f32 %v591_v25, %v932_v4 }
 0x206   :  { %v382_v6 = vpop.f32.mrf.mxu0 }
 0x207   :  { %v561_v33 = vpack.c.bf16 %v391_v5, %v391_v5  ;;  %v383_v7 = vadd.f32 %v932_v4, %v382_v6 }
 0x208   :  { %v592_v8 = vpop.f32.mrf.mxu0  ;;  %v599_v9 = vpop.f32.mrf.mxu1 }
 0x209   :  { %512 = vst.msk [vmem:[%s1019_s5 + $0x8] sm:$0xf] %vm509_vm1, %v561_v33  ;;  %v559_v36 = vpack.c.bf16 %v383_v7, %v383_v7  ;;  %v394_v45 = vadd.f32 %v592_v8, %v932_v4  ;;  %v423_v12 = vadd.f32 %v599_v9, %v932_v4 }
 0x20a   :  { %v385_v54 = vpop.f32.mrf.mxu0  ;;  %v414_v13 = vpop.f32.mrf.mxu1 }
 0x20b   :  { %510 = vst.msk [vmem:[%s1019_s5] sm:$0xf] %vm509_vm1, %v559_v36  ;;  %v562_v14 = vpack.c.bf16 %v394_v45, %v394_v45  ;;  %v569_v15 = vpack.c.bf16 %v423_v12, %v423_v12  ;;  %v386_v18 = vadd.f32 %v932_v4, %v385_v54  ;;  %v415_v19 = vadd.f32 %v932_v4, %v414_v13 }
 0x20c   :  { %v600_v22 = vpop.f32.mrf.mxu1 }
 0x20d   :  { %513 = vst.msk [vmem:[%s1019_s5 + $0xc] sm:$0xf] %vm509_vm1, %v562_v14  ;;  %520 = vst.msk [vmem:[%s1019_s5 + $0x28] sm:$0xf] %vm509_vm1, %v569_v15  ;;  %v560_v16 = vpack.c.bf16 %v386_v18, %v386_v18  ;;  %v567_v26 = vpack.c.bf16 %v415_v19, %v415_v19  ;;  %v426_v27 = vadd.f32 %v600_v22, %v932_v4 }
 0x20e   :  { %v417_v55 = vpop.f32.mrf.mxu1 }
 0x20f   :  { %511 = vst.msk [vmem:[%s1019_s5 + $0x4] sm:$0xf] %vm509_vm1, %v560_v16  ;;  %518 = vst.msk [vmem:[%s1019_s5 + $0x20] sm:$0xf] %vm509_vm1, %v567_v26  ;;  %v570_v30 = vpack.c.bf16 %v426_v27, %v426_v27  ;;  %v418_v31 = vadd.f32 %v932_v4, %v417_v55 }
 0x211   :  { %521 = vst.msk [vmem:[%s1019_s5 + $0x2c] sm:$0xf] %vm509_vm1, %v570_v30  ;;  %v568_v0 = vpack.c.bf16 %v418_v31, %v418_v31 }
 0x213   :  { %519 = vst.msk [vmem:[%s1019_s5 + $0x24] sm:$0xf] %vm509_vm1, %v568_v0 }
 0x214   :  { %v595_v32 = vpop.f32.mrf.mxu0 }
 0x215   :  { %v407_v34 = vadd.f32 %v595_v32, %v932_v4 }
 0x216   :  { %v398_v20 = vpop.f32.mrf.mxu0 }
 0x217   :  { %v565_v38 = vpack.c.bf16 %v407_v34, %v407_v34  ;;  %v399_v39 = vadd.f32 %v932_v4, %v398_v20 }
 0x218   :  { %v596_v40 = vpop.f32.mrf.mxu0  ;;  %v603_v1 = vpop.f32.mrf.mxu1 }
 0x219   :  { %516 = vst.msk [vmem:[%s1019_s5 + $0x18] sm:$0xf] %vm509_vm1, %v565_v38  ;;  %v563_v41 = vpack.c.bf16 %v399_v39, %v399_v39  ;;  %v410_v42 = vadd.f32 %v596_v40, %v932_v4  ;;  %v439_v43 = vadd.f32 %v603_v1, %v932_v4 }
 0x21a   :  { %v401_v10 = vpop.f32.mrf.mxu0  ;;  %v430_v46 = vpop.f32.mrf.mxu1 }
 0x21b   :  { %514 = vst.msk [vmem:[%s1019_s5 + $0x10] sm:$0xf] %vm509_vm1, %v563_v41  ;;  %v566_v24 = vpack.c.bf16 %v410_v42, %v410_v42  ;;  %v573_v48 = vpack.c.bf16 %v439_v43, %v439_v43  ;;  %v402_v49 = vadd.f32 %v932_v4, %v401_v10  ;;  %v431_v50 = vadd.f32 %v932_v4, %v430_v46 }
 0x21c   :  { %v604_v51 = vpop.f32.mrf.mxu1 }
 0x21d   :  { %517 = vst.msk [vmem:[%s1019_s5 + $0x1c] sm:$0xf] %vm509_vm1, %v566_v24  ;;  %524 = vst.msk [vmem:[%s1019_s5 + $0x38] sm:$0xf] %vm509_vm1, %v573_v48  ;;  %v564_v11 = vpack.c.bf16 %v402_v49, %v402_v49  ;;  %v571_v52 = vpack.c.bf16 %v431_v50, %v431_v50  ;;  %v442_v23 = vadd.f32 %v604_v51, %v932_v4 }
 0x21e   :  { %v433_v28 = vpop.f32.mrf.mxu1 }
 0x21f   :  { %515 = vst.msk [vmem:[%s1019_s5 + $0x14] sm:$0xf] %vm509_vm1, %v564_v11  ;;  %522 = vst.msk [vmem:[%s1019_s5 + $0x30] sm:$0xf] %vm509_vm1, %v571_v52  ;;  %v574_v29 = vpack.c.bf16 %v442_v23, %v442_v23  ;;  %v434_v53 = vadd.f32 %v932_v4, %v433_v28 }
 0x221   :  { %525 = vst.msk [vmem:[%s1019_s5 + $0x3c] sm:$0xf] %vm509_vm1, %v574_v29  ;;  %v572_v56 = vpack.c.bf16 %v434_v53, %v434_v53 }
 0x223   :  { %523 = vst.msk [vmem:[%s1019_s5 + $0x34] sm:$0xf] %vm509_vm1, %v572_v56 }

// kernel: block_forward.9
= control target key start
LH: loop header
LB: loop body
LE: loop exit
PB: predicated region body
PF: predicated region fallthrough
CT: control target
= control target key end

     0   :  { %vm37_vm0 = vcmask 261120   ;;  %vm509_vm1 = vcmask 519168   ;;  %s1014_s0 = inlined_call_operand.vmem [shape: f32[128,32], index: 0, kind: input, shape index: {}]   ;;  %s1015_s3 = inlined_call_operand.vmem [shape: bf16[32,64], index: 3, kind: input, shape index: {}]   ;;  %s1016_s1 = inlined_call_operand.vmem [shape: f32[1,32], index: 1, kind: input, shape index: {}]   ;;  %s1017_s2 = inlined_call_operand.vmem [shape: f32[1,32], index: 2, kind: input, shape index: {}]   ;;  %s1018_s4 = inlined_call_operand.vmem [shape: f32[1,64], index: 4, kind: input, shape index: {}]   ;;  %s1019_s5 = inlined_call_operand.vmem [shape: bf16[128,64], index: 5, kind: output, shape index: {}]  }
   0x1   :  { %v21_v0 = vld [vmem:[%s1014_s0] sm:$0xff]  ;;  %v22_v2 = vld [vmem:[%s1014_s0 + $0x8] sm:$0xff]  ;;  %v23_v8 = vld [vmem:[%s1014_s0 + $0x10] sm:$0xff] }
   0x2   :  { %v29_v1 = vld [vmem:[%s1014_s0 + $0x40] sm:$0xff]  ;;  %v38_v3 = vsel %vm37_vm0, %v21_v0, 0.0  ;;  %v30_v5 = vld [vmem:[%s1014_s0 + $0x48] sm:$0xff]  ;;  %v41_v6 = vsel %vm37_vm0, %v22_v2, 0.0  ;;  %v24_v9 = vld [vmem:[%s1014_s0 + $0x18] sm:$0xff]  ;;  %v44_v10 = vsel %vm37_vm0, %v23_v8, 0.0 }
   0x3   :  { %v62_v4 = vsel %vm37_vm0, %v29_v1, 0.0  ;;  %39 = vadd.xlane.f32.xlu0 %v38_v3  ;;  %v65_v7 = vsel %vm37_vm0, %v30_v5, 0.0  ;;  %v47_v11 = vsel %vm37_vm0, %v24_v9, 0.0  ;;  %v700_v12 = vld [vmem:[%s1014_s0 + $0x50] sm:$0xff]  ;;  %v705_v13 = vld [vmem:[%s1014_s0 + $0x58] sm:$0xff]  ;;  %v714_v16 = vld [vmem:[%s1014_s0 + $0x20] sm:$0xff] }
   0x4   :  { %63 = vadd.xlane.f32.xlu1 %v62_v4  ;;  %v68_v14 = vsel %vm37_vm0, %v700_v12, 0.0  ;;  %v71_v15 = vsel %vm37_vm0, %v705_v13, 0.0  ;;  %v719_v17 = vld [vmem:[%s1014_s0 + $0x28] sm:$0xff]  ;;  %v50_v18 = vsel %vm37_vm0, %v714_v16, 0.0  ;;  %v728_v20 = vld [vmem:[%s1014_s0 + $0x60] sm:$0xff]  ;;  %v742_v24 = vld [vmem:[%s1014_s0 + $0x30] sm:$0xff] }
   0x5   :  { %v53_v19 = vsel %vm37_vm0, %v719_v17, 0.0  ;;  %v733_v21 = vld [vmem:[%s1014_s0 + $0x68] sm:$0xff]  ;;  %v74_v22 = vsel %vm37_vm0, %v728_v20, 0.0  ;;  %v747_v25 = vld [vmem:[%s1014_s0 + $0x38] sm:$0xff]  ;;  %v56_v26 = vsel %vm37_vm0, %v742_v24, 0.0  ;;  %v756_v28 = vld [vmem:[%s1014_s0 + $0x70] sm:$0xff] }
   0x6   :  { %v77_v23 = vsel %vm37_vm0, %v733_v21, 0.0  ;;  %v59_v27 = vsel %vm37_vm0, %v747_v25, 0.0  ;;  %v761_v29 = vld [vmem:[%s1014_s0 + $0x78] sm:$0xff]  ;;  %v80_v30 = vsel %vm37_vm0, %v756_v28, 0.0 }
   0x7   :  { %42 = vadd.xlane.f32.xlu0 %v41_v6  ;;  %v83_v31 = vsel %vm37_vm0, %v761_v29, 0.0 }
   0x8   :  { %66 = vadd.xlane.f32.xlu1 %v65_v7 }
   0xb   :  { %45 = vadd.xlane.f32.xlu0 %v44_v10 }
   0xc   :  { %48 = vadd.xlane.f32.xlu1 %v47_v11 }
   0xf   :  { %69 = vadd.xlane.f32.xlu0 %v68_v14 }
  0x10   :  { %72 = vadd.xlane.f32.xlu1 %v71_v15 }
  0x13   :  { %51 = vadd.xlane.f32.xlu0 %v50_v18 }
  0x14   :  { %54 = vadd.xlane.f32.xlu1 %v53_v19 }
  0x17   :  { %75 = vadd.xlane.f32.xlu0 %v74_v22 }
  0x18   :  { %78 = vadd.xlane.f32.xlu1 %v77_v23 }
  0x1b   :  { %57 = vadd.xlane.f32.xlu0 %v56_v26 }
  0x1c   :  { %60 = vadd.xlane.f32.xlu1 %v59_v27 }
  0x1f   :  { %81 = vadd.xlane.f32.xlu0 %v80_v30 }
  0x20   :  { %84 = vadd.xlane.f32.xlu1 %v83_v31 }
  0x8c   :  { %v40_v32 = vpop.xlane.xlu0 %39 }
  0x8d   :  { %v64_v33 = vpop.xlane.xlu1 %63  ;;  %v87_v34 = vmul.f32 0.03125, %v40_v32 }
  0x8e   :  { %v95_v35 = vmul.f32 0.03125, %v64_v33 }
  0x8f   :  { %v767_v36 = vsub.f32 %v21_v0, %v87_v34 }
  0x90   :  { %v769_v37 = vsub.f32 %v29_v1, %v95_v35  ;;  %v43_v38 = vpop.xlane.xlu0 %42 }
  0x91   :  { %v67_v39 = vpop.xlane.xlu1 %66  ;;  %v88_v40 = vmul.f32 0.03125, %v43_v38  ;;  %v119_v42 = vmul.f32 %v767_v36, %v767_v36 }
  0x92   :  { %v96_v41 = vmul.f32 0.03125, %v67_v39  ;;  %v127_v43 = vmul.f32 %v769_v37, %v769_v37 }
  0x93   :  { %v775_v44 = vsub.f32 %v22_v2, %v88_v40  ;;  %v135_v46 = vsel %vm37_vm0, %v119_v42, 0.0 }
  0x94   :  { %v777_v45 = vsub.f32 %v30_v5, %v96_v41  ;;  %136 = vadd.xlane.f32.xlu0 %v135_v46  ;;  %v46_v47 = vpop.xlane.xlu0 %45  ;;  %v159_v49 = vsel %vm37_vm0, %v127_v43, 0.0 }
  0x95   :  { %v49_v48 = vpop.xlane.xlu1 %48  ;;  %v89_v50 = vmul.f32 0.03125, %v46_v47  ;;  %v120_v52 = vmul.f32 %v775_v44, %v775_v44 }
  0x96   :  { %v90_v51 = vmul.f32 0.03125, %v49_v48  ;;  %v128_v53 = vmul.f32 %v777_v45, %v777_v45 }
  0x97   :  { %v785_v54 = vsub.f32 %v23_v8, %v89_v50  ;;  %v138_v56 = vsel %vm37_vm0, %v120_v52, 0.0 }
  0x98   :  { %v787_v55 = vsub.f32 %v24_v9, %v90_v51  ;;  %160 = vadd.xlane.f32.xlu0 %v159_v49  ;;  %139 = vadd.xlane.f32.xlu1 %v138_v56  ;;  %v70_v57 = vpop.xlane.xlu0 %69  ;;  %v162_v59 = vsel %vm37_vm0, %v128_v53, 0.0  ;;  %v610_v53 = vld [vmem:[%s1015_s3] sm:$0xff]  }
  0x99   :  { %v73_v58 = vpop.xlane.xlu1 %72  ;;  %v97_v60 = vmul.f32 0.03125, %v70_v57  ;;  %v121_v62 = vmul.f32 %v785_v54, %v785_v54 }
  0x9a   :  { %v98_v61 = vmul.f32 0.03125, %v73_v58  ;;  %v122_v63 = vmul.f32 %v787_v55, %v787_v55 }
  0x9b   :  { %v796_v0 = vsub.f32 %v700_v12, %v97_v60  ;;  %v141_v2 = vsel %vm37_vm0, %v121_v62, 0.0 }
  0x9c   :  { %v799_v1 = vsub.f32 %v705_v13, %v98_v61  ;;  %163 = vadd.xlane.f32.xlu1 %v162_v59  ;;  %142 = vadd.xlane.f32.xlu0 %v141_v2  ;;  %v52_v3 = vpop.xlane.xlu0 %51  ;;  %v144_v5 = vsel %vm37_vm0, %v122_v63, 0.0 }
  0x9d   :  { %v55_v4 = vpop.xlane.xlu1 %54  ;;  %v91_v6 = vmul.f32 0.03125, %v52_v3  ;;  %v129_v8 = vmul.f32 %v796_v0, %v796_v0 }
  0x9e   :  { %v92_v7 = vmul.f32 0.03125, %v55_v4  ;;  %v130_v9 = vmul.f32 %v799_v1, %v799_v1 }
  0x9f   :  { %v808_v10 = vsub.f32 %v714_v16, %v91_v6  ;;  %v165_v12 = vsel %vm37_vm0, %v129_v8, 0.0 }
  0xa0   :  { %v811_v11 = vsub.f32 %v719_v17, %v92_v7  ;;  %145 = vadd.xlane.f32.xlu1 %v144_v5  ;;  %166 = vadd.xlane.f32.xlu0 %v165_v12  ;;  %v76_v13 = vpop.xlane.xlu0 %75  ;;  %v168_v15 = vsel %vm37_vm0, %v130_v9, 0.0 }
  0xa1   :  { %v79_v14 = vpop.xlane.xlu1 %78  ;;  %v99_v18 = vmul.f32 0.03125, %v76_v13  ;;  %v123_v22 = vmul.f32 %v808_v10, %v808_v10 }
  0xa2   :  { %v100_v19 = vmul.f32 0.03125, %v79_v14  ;;  %v124_v16 = vmul.f32 %v811_v11, %v811_v11 }
  0xa3   :  { %v820_v23 = vsub.f32 %v728_v20, %v99_v18  ;;  %v147_v26 = vsel %vm37_vm0, %v123_v22, 0.0 }
  0xa4   :  { %v823_v17 = vsub.f32 %v733_v21, %v100_v19  ;;  %169 = vadd.xlane.f32.xlu1 %v168_v15  ;;  %148 = vadd.xlane.f32.xlu0 %v147_v26  ;;  %v58_v27 = vpop.xlane.xlu0 %57  ;;  %v150_v31 = vsel %vm37_vm0, %v124_v16, 0.0 }
  0xa5   :  { %v61_v30 = vpop.xlane.xlu1 %60  ;;  %v93_v32 = vmul.f32 0.03125, %v58_v27  ;;  %v131_v34 = vmul.f32 %v820_v23, %v820_v23 }
  0xa6   :  { %v94_v33 = vmul.f32 0.03125, %v61_v30  ;;  %v132_v20 = vmul.f32 %v823_v17, %v823_v17 }
  0xa7   :  { %v832_v35 = vsub.f32 %v742_v24, %v93_v32  ;;  %v171_v38 = vsel %vm37_vm0, %v131_v34, 0.0 }
  0xa8   :  { %v835_v21 = vsub.f32 %v747_v25, %v94_v33  ;;  %151 = vadd.xlane.f32.xlu1 %v150_v31  ;;  %172 = vadd.xlane.f32.xlu0 %v171_v38  ;;  %v82_v39 = vpop.xlane.xlu0 %81  ;;  %v174_v41 = vsel %vm37_vm0, %v132_v20, 0.0  ;;  %v867_v33 = vld [vmem:[%s1016_s1] ss:$0 sm:$0xff] }
  0xa9   :  { %v85_v40 = vpop.xlane.xlu1 %84  ;;  %v101_v42 = vmul.f32 0.03125, %v82_v39  ;;  %v125_v46 = vmul.f32 %v832_v35, %v832_v35 }
  0xaa   :  { %v102_v43 = vmul.f32 0.03125, %v85_v40  ;;  %v126_v24 = vmul.f32 %v835_v21, %v835_v21 }
  0xab   :  { %v844_v47 = vsub.f32 %v756_v28, %v101_v42  ;;  %v153_v48 = vsel %vm37_vm0, %v125_v46, 0.0 }
  0xac   :  { %v847_v25 = vsub.f32 %v761_v29, %v102_v43  ;;  %175 = vadd.xlane.f32.xlu1 %v174_v41  ;;  %154 = vadd.xlane.f32.xlu0 %v153_v48  ;;  %v156_v49 = vsel %vm37_vm0, %v126_v24, 0.0  ;;  %v609_v29 = vld [vmem:[%s1015_s3 + $0x8] sm:$0xff]  }
  0xad   :  { %v133_v50 = vmul.f32 %v844_v47, %v844_v47  ;;  %585 = vmatprep.subr.bf16.mxu0 %v609_v29  ;;  %605 = vmatprep.subr.bf16.mxu1 %v609_v29 }
  0xae   :  { %v134_v51 = vmul.f32 %v847_v25, %v847_v25  ;;  %586 = vmatpush3.bf16.msra.mxu0 %v609_v29  ;;  %607 = vmatpush3.bf16.msra.mxu1 %v609_v29 }
  0xaf   :  { %v177_v52 = vsel %vm37_vm0, %v133_v50, 0.0  ;;  %587 = vmatprep.subr.bf16.mxu0 %v610_v53  ;;  %606 = vmatprep.subr.bf16.mxu1 %v610_v53 }
  0xb0   :  { %157 = vadd.xlane.f32.xlu1 %v156_v49  ;;  %178 = vadd.xlane.f32.xlu0 %v177_v52  ;;  %v180_v28 = vsel %vm37_vm0, %v134_v51, 0.0 }
  0xb2   :  { %588 = vmatpush3.bf16.msra.mxu0 %v610_v53  ;;  %608 = vmatpush3.bf16.msra.mxu1 %v610_v53 }
  0xb4   :  { %181 = vadd.xlane.f32.xlu1 %v180_v28 }
 0x11d   :  { %v137_v56 = vpop.xlane.xlu0 %136 }
 0x11e   :  { %v183_v57 = vmul.f32 0.03125, %v137_v56 }
 0x120   :  { %v199_v58 = vadd.f32 1e-06, %v183_v57 }
 0x121   :  { %v140_v59 = vpop.xlane.xlu1 %139  ;;  %v161_v60 = vpop.xlane.xlu0 %160 }
 0x122   :  { %611 = vrsqrt.f32 %v199_v58  ;;  %v184_v61 = vmul.f32 0.03125, %v140_v59  ;;  %v191_v62 = vmul.f32 0.03125, %v161_v60 }
 0x124   :  { %v200_v63 = vadd.f32 1e-06, %v184_v61  ;;  %v207_v2 = vadd.f32 1e-06, %v191_v62 }
 0x125   :  { %v164_v3 = vpop.xlane.xlu1 %163  ;;  %v143_v4 = vpop.xlane.xlu0 %142 }
 0x126   :  { %613 = vrsqrt.f32 %v200_v63  ;;  %v192_v5 = vmul.f32 0.03125, %v164_v3  ;;  %v185_v6 = vmul.f32 0.03125, %v143_v4 }
 0x127   :  { %615 = vrsqrt.f32 %v207_v2 }
 0x128   :  { %v208_v7 = vadd.f32 1e-06, %v192_v5  ;;  %v201_v8 = vadd.f32 1e-06, %v185_v6 }
 0x129   :  { %v146_v9 = vpop.xlane.xlu1 %145  ;;  %v167_v12 = vpop.xlane.xlu0 %166 }
 0x12a   :  { %617 = vrsqrt.f32 %v208_v7  ;;  %v186_v13 = vmul.f32 0.03125, %v146_v9  ;;  %v193_v14 = vmul.f32 0.03125, %v167_v12 }
 0x12b   :  { %619 = vrsqrt.f32 %v201_v8 }
 0x12c   :  { %v202_v15 = vadd.f32 1e-06, %v186_v13  ;;  %v209_v18 = vadd.f32 1e-06, %v193_v14 }
 0x12d   :  { %v170_v19 = vpop.xlane.xlu1 %169  ;;  %v149_v22 = vpop.xlane.xlu0 %148 }
 0x12e   :  { %621 = vrsqrt.f32 %v202_v15  ;;  %v194_v16 = vmul.f32 0.03125, %v170_v19  ;;  %v187_v26 = vmul.f32 0.03125, %v149_v22 }
 0x12f   :  { %v612_v27 = vpop.eup %611  ;;  %623 = vrsqrt.f32 %v209_v18 }
 0x130   :  { %v210_v30 = vadd.f32 1e-06, %v194_v16  ;;  %v203_v31 = vadd.f32 1e-06, %v187_v26  ;;  %v231_v32 = vmul.f32 %v612_v27, %v767_v36  ;;  %v874_v36 = vld [vmem:[%s1017_s2] ss:$0 sm:$0xff] }
 0x131   :  { %v152_v34 = vpop.xlane.xlu1 %151  ;;  %v173_v20 = vpop.xlane.xlu0 %172 }
 0x132   :  { %625 = vrsqrt.f32 %v210_v30  ;;  %v188_v38 = vmul.f32 0.03125, %v152_v34  ;;  %v195_v39 = vmul.f32 0.03125, %v173_v20  ;;  %v254_v41 = vmul.f32 %v867_v33, %v231_v32 }
 0x133   :  { %v614_v40 = vpop.eup %613  ;;  %627 = vrsqrt.f32 %v203_v31 }
 0x134   :  { %v616_v42 = vpop.eup %615  ;;  %v204_v43 = vadd.f32 1e-06, %v188_v38  ;;  %v211_v46 = vadd.f32 1e-06, %v195_v39  ;;  %v232_v24 = vmul.f32 %v614_v40, %v775_v44  ;;  %v277_v53 = vadd.f32 %v874_v36, %v254_v41 }
 0x135   :  { %v176_v48 = vpop.xlane.xlu1 %175  ;;  %v155_v49 = vpop.xlane.xlu0 %154  ;;  %v239_v50 = vmul.f32 %v616_v42, %v769_v37 }
 0x136   :  { %629 = vrsqrt.f32 %v204_v43  ;;  %v196_v51 = vmul.f32 0.03125, %v176_v48  ;;  %v189_v52 = vmul.f32 0.03125, %v155_v49  ;;  %v255_v28 = vmul.f32 %v867_v33, %v232_v24 }
 0x137   :  { %v618_v29 = vpop.eup %617  ;;  %631 = vrsqrt.f32 %v211_v46  ;;  %v262_v37 = vmul.f32 %v867_v33, %v239_v50 }
 0x138   :  { %v620_v56 = vpop.eup %619  ;;  %v212_v44 = vadd.f32 1e-06, %v196_v51  ;;  %v205_v57 = vadd.f32 1e-06, %v189_v52  ;;  %v278_v58 = vadd.f32 %v874_v36, %v255_v28  ;;  %v240_v59 = vmul.f32 %v618_v29, %v777_v45 }
 0x139   :  { %v158_v60 = vpop.xlane.xlu1 %157  ;;  %v179_v61 = vpop.xlane.xlu0 %178  ;;  %v233_v62 = vmul.f32 %v620_v56, %v785_v54  ;;  %v285_v54 = vadd.f32 %v874_v36, %v262_v37 }
 0x13a   :  { %633 = vrsqrt.f32 %v212_v44  ;;  %v190_v63 = vmul.f32 0.03125, %v158_v60  ;;  %v197_v2 = vmul.f32 0.03125, %v179_v61  ;;  %v293_v3 = vpack.c.bf16 %v278_v58, %v277_v53 }
 0x13b   :  { %v622_v4 = vpop.eup %621  ;;  %635 = vrsqrt.f32 %v205_v57  ;;  %v263_v5 = vmul.f32 %v867_v33, %v240_v59  ;;  %v256_v6 = vmul.f32 %v867_v33, %v233_v62 }
 0x13c   :  { %v624_v7 = vpop.eup %623  ;;  %v206_v8 = vadd.f32 1e-06, %v190_v63  ;;  %v213_v9 = vadd.f32 1e-06, %v197_v2  ;;  %589 = vmatprep.mubr.msk.bf16.mxu0 %vm37_vm0, %v293_v3  ;;  %v234_v45 = vmul.f32 %v622_v4, %v787_v55  ;;  %v932_v4 = vld [vmem:[%s1018_s4] ss:$0 sm:$0xff] }
 0x13d   :  { %v182_v12 = vpop.xlane.xlu1 %181  ;;  %v286_v13 = vadd.f32 %v874_v36, %v263_v5  ;;  %v241_v14 = vmul.f32 %v624_v7, %v796_v0  ;;  %v279_v16 = vadd.f32 %v874_v36, %v256_v6 }
 0x13e   :  { %637 = vrsqrt.f32 %v206_v8  ;;  %v198_v15 = vmul.f32 0.03125, %v182_v12  ;;  %v257_v18 = vmul.f32 %v867_v33, %v234_v45 }
 0x13f   :  { %v626_v19 = vpop.eup %625  ;;  %639 = vrsqrt.f32 %v213_v9  ;;  %v297_v22 = vpack.c.bf16 %v286_v13, %v285_v54  ;;  %v264_v31 = vmul.f32 %v867_v33, %v241_v14 }
 0x140   :  { %v628_v26 = vpop.eup %627  ;;  %v214_v27 = vadd.f32 1e-06, %v198_v15  ;;  %v280_v55 = vadd.f32 %v874_v36, %v257_v18  ;;  %v242_v30 = vmul.f32 %v626_v19, %v799_v1 }
 0x141   :  { %597 = vmatprep.mubr.msk.bf16.mxu1 %vm37_vm0, %v297_v22  ;;  %v235_v0 = vmul.f32 %v628_v26, %v808_v10  ;;  %v287_v39 = vadd.f32 %v874_v36, %v264_v31 }
 0x142   :  { %641 = vrsqrt.f32 %v214_v27  ;;  %v294_v32 = vpack.c.bf16 %v280_v55, %v279_v16  ;;  %v265_v34 = vmul.f32 %v867_v33, %v242_v30 }
 0x143   :  { %v630_v20 = vpop.eup %629  ;;  %v258_v41 = vmul.f32 %v867_v33, %v235_v0 }
 0x144   :  { %v632_v38 = vpop.eup %631  ;;  %590 = vmatmul.mubr.msk.bf16.vlgmr.msra.gmra.mxu0 %vm37_vm0, %v294_v32  ;;  %v288_v40 = vadd.f32 %v874_v36, %v265_v34  ;;  %v236_v1 = vmul.f32 %v630_v20, %v811_v11 }
 0x145   :  { %v243_v42 = vmul.f32 %v632_v38, %v820_v23  ;;  %v281_v48 = vadd.f32 %v874_v36, %v258_v41 }
 0x146   :  { %v298_v43 = vpack.c.bf16 %v288_v40, %v287_v39  ;;  %v259_v10 = vmul.f32 %v867_v33, %v236_v1 }
 0x147   :  { %v634_v46 = vpop.eup %633  ;;  %v266_v51 = vmul.f32 %v867_v33, %v243_v42 }
 0x148   :  { %v636_v24 = vpop.eup %635  ;;  %598 = vmatmul.mubr.msk.bf16.vlgmr.msra.gmra.mxu1 %vm37_vm0, %v298_v43  ;;  %v282_v49 = vadd.f32 %v874_v36, %v259_v10  ;;  %v244_v50 = vmul.f32 %v634_v46, %v823_v17 }
 0x149   :  { %v237_v11 = vmul.f32 %v636_v24, %v832_v35  ;;  %v289_v53 = vadd.f32 %v874_v36, %v266_v51 }
 0x14a   :  { %v295_v52 = vpack.c.bf16 %v282_v49, %v281_v48  ;;  %v267_v23 = vmul.f32 %v867_v33, %v244_v50 }
 0x14b   :  { %v638_v28 = vpop.eup %637  ;;  %v260_v57 = vmul.f32 %v867_v33, %v237_v11 }
 0x14c   :  { %v640_v29 = vpop.eup %639  ;;  %593 = vmatprep.mubr.msk.bf16.mxu0 %vm37_vm0, %v295_v52  ;;  %v290_v56 = vadd.f32 %v874_v36, %v267_v23  ;;  %v238_v44 = vmul.f32 %v638_v28, %v835_v21 }
 0x14d   :  { %v245_v17 = vmul.f32 %v640_v29, %v844_v47  ;;  %v283_v60 = vadd.f32 %v874_v36, %v260_v57 }
 0x14e   :  { %v299_v58 = vpack.c.bf16 %v290_v56, %v289_v53  ;;  %v261_v35 = vmul.f32 %v867_v33, %v238_v44 }
 0x14f   :  { %v642_v59 = vpop.eup %641  ;;  %v268_v62 = vmul.f32 %v867_v33, %v245_v17 }
 0x150   :  { %601 = vmatprep.mubr.msk.bf16.mxu1 %vm37_vm0, %v299_v58  ;;  %v284_v61 = vadd.f32 %v874_v36, %v261_v35  ;;  %v246_v37 = vmul.f32 %v642_v59, %v847_v25 }
 0x151   :  { %v291_v47 = vadd.f32 %v874_v36, %v268_v62 }
 0x152   :  { %v296_v63 = vpack.c.bf16 %v284_v61, %v283_v60  ;;  %v269_v21 = vmul.f32 %v867_v33, %v246_v37 }
 0x154   :  { %594 = vmatmul.mubr.msk.bf16.gmra.mxu0 %vm37_vm0, %v296_v63  ;;  %v292_v2 = vadd.f32 %v874_v36, %v269_v21 }
 0x156   :  { %v300_v3 = vpack.c.bf16 %v292_v2, %v291_v47 }
 0x158   :  { %602 = vmatmul.mubr.msk.bf16.gmra.mxu1 %vm37_vm0, %v300_v3 }
 0x204   :  { %v591_v25 = vpop.f32.mrf.mxu0 }
 0x205   :  { %v391_v5 = vadd.f32 %v591_v25, %v932_v4 }
 0x206   :  { %v382_v6 = vpop.f32.mrf.mxu0 }
 0x207   :  { %v561_v33 = vpack.c.bf16 %v391_v5, %v391_v5  ;;  %v383_v7 = vadd.f32 %v932_v4, %v382_v6 }
 0x208   :  { %v592_v8 = vpop.f32.mrf.mxu0  ;;  %v599_v9 = vpop.f32.mrf.mxu1 }
 0x209   :  { %512 = vst.msk [vmem:[%s1019_s5 + $0x8] sm:$0xf] %vm509_vm1, %v561_v33  ;;  %v559_v36 = vpack.c.bf16 %v383_v7, %v383_v7  ;;  %v394_v45 = vadd.f32 %v592_v8, %v932_v4  ;;  %v423_v12 = vadd.f32 %v599_v9, %v932_v4 }
 0x20a   :  { %v385_v54 = vpop.f32.mrf.mxu0  ;;  %v414_v13 = vpop.f32.mrf.mxu1 }
 0x20b   :  { %510 = vst.msk [vmem:[%s1019_s5] sm:$0xf] %vm509_vm1, %v559_v36  ;;  %v562_v14 = vpack.c.bf16 %v394_v45, %v394_v45  ;;  %v569_v15 = vpack.c.bf16 %v423_v12, %v423_v12  ;;  %v386_v18 = vadd.f32 %v932_v4, %v385_v54  ;;  %v415_v19 = vadd.f32 %v932_v4, %v414_v13 }
 0x20c   :  { %v600_v22 = vpop.f32.mrf.mxu1 }
 0x20d   :  { %513 = vst.msk [vmem:[%s1019_s5 + $0xc] sm:$0xf] %vm509_vm1, %v562_v14  ;;  %520 = vst.msk [vmem:[%s1019_s5 + $0x28] sm:$0xf] %vm509_vm1, %v569_v15  ;;  %v560_v16 = vpack.c.bf16 %v386_v18, %v386_v18  ;;  %v567_v26 = vpack.c.bf16 %v415_v19, %v415_v19  ;;  %v426_v27 = vadd.f32 %v600_v22, %v932_v4 }
 0x20e   :  { %v417_v55 = vpop.f32.mrf.mxu1 }
 0x20f   :  { %511 = vst.msk [vmem:[%s1019_s5 + $0x4] sm:$0xf] %vm509_vm1, %v560_v16  ;;  %518 = vst.msk [vmem:[%s1019_s5 + $0x20] sm:$0xf] %vm509_vm1, %v567_v26  ;;  %v570_v30 = vpack.c.bf16 %v426_v27, %v426_v27  ;;  %v418_v31 = vadd.f32 %v932_v4, %v417_v55 }
 0x211   :  { %521 = vst.msk [vmem:[%s1019_s5 + $0x2c] sm:$0xf] %vm509_vm1, %v570_v30  ;;  %v568_v0 = vpack.c.bf16 %v418_v31, %v418_v31 }
 0x213   :  { %519 = vst.msk [vmem:[%s1019_s5 + $0x24] sm:$0xf] %vm509_vm1, %v568_v0 }
 0x214   :  { %v595_v32 = vpop.f32.mrf.mxu0 }
 0x215   :  { %v407_v34 = vadd.f32 %v595_v32, %v932_v4 }
 0x216   :  { %v398_v20 = vpop.f32.mrf.mxu0 }
 0x217   :  { %v565_v38 = vpack.c.bf16 %v407_v34, %v407_v34  ;;  %v399_v39 = vadd.f32 %v932_v4, %v398_v20 }
 0x218   :  { %v596_v40 = vpop.f32.mrf.mxu0  ;;  %v603_v1 = vpop.f32.mrf.mxu1 }
 0x219   :  { %516 = vst.msk [vmem:[%s1019_s5 + $0x18] sm:$0xf] %vm509_vm1, %v565_v38  ;;  %v563_v41 = vpack.c.bf16 %v399_v39, %v399_v39  ;;  %v410_v42 = vadd.f32 %v596_v40, %v932_v4  ;;  %v439_v43 = vadd.f32 %v603_v1, %v932_v4 }
 0x21a   :  { %v401_v10 = vpop.f32.mrf.mxu0  ;;  %v430_v46 = vpop.f32.mrf.mxu1 }
 0x21b   :  { %514 = vst.msk [vmem:[%s1019_s5 + $0x10] sm:$0xf] %vm509_vm1, %v563_v41  ;;  %v566_v24 = vpack.c.bf16 %v410_v42, %v410_v42  ;;  %v573_v48 = vpack.c.bf16 %v439_v43, %v439_v43  ;;  %v402_v49 = vadd.f32 %v932_v4, %v401_v10  ;;  %v431_v50 = vadd.f32 %v932_v4, %v430_v46 }
 0x21c   :  { %v604_v51 = vpop.f32.mrf.mxu1 }
 0x21d   :  { %517 = vst.msk [vmem:[%s1019_s5 + $0x1c] sm:$0xf] %vm509_vm1, %v566_v24  ;;  %524 = vst.msk [vmem:[%s1019_s5 + $0x38] sm:$0xf] %vm509_vm1, %v573_v48  ;;  %v564_v11 = vpack.c.bf16 %v402_v49, %v402_v49  ;;  %v571_v52 = vpack.c.bf16 %v431_v50, %v431_v50  ;;  %v442_v23 = vadd.f32 %v604_v51, %v932_v4 }
 0x21e   :  { %v433_v28 = vpop.f32.mrf.mxu1 }
 0x21f   :  { %515 = vst.msk [vmem:[%s1019_s5 + $0x14] sm:$0xf] %vm509_vm1, %v564_v11  ;;  %522 = vst.msk [vmem:[%s1019_s5 + $0x30] sm:$0xf] %vm509_vm1, %v571_v52  ;;  %v574_v29 = vpack.c.bf16 %v442_v23, %v442_v23  ;;  %v434_v53 = vadd.f32 %v932_v4, %v433_v28 }
 0x221   :  { %525 = vst.msk [vmem:[%s1019_s5 + $0x3c] sm:$0xf] %vm509_vm1, %v574_v29  ;;  %v572_v56 = vpack.c.bf16 %v434_v53, %v434_v53 }
 0x223   :  { %523 = vst.msk [vmem:[%s1019_s5 + $0x34] sm:$0xf] %vm509_vm1, %v572_v56 }

// kernel: block_forward.8
= control target key start
LH: loop header
LB: loop body
LE: loop exit
PB: predicated region body
PF: predicated region fallthrough
CT: control target
= control target key end

     0   :  { %s1476_s18 = smov 0   ;;  %s1478_s19 = smov 0   ;;  %s1685_s0 = inlined_call_operand.vmem [shape: bf16[2,64,32], index: 0, kind: input, shape index: {}]   ;;  %s1686_s1 = inlined_call_operand.vmem [shape: bf16[2,16,64], index: 1, kind: input, shape index: {}]   ;;  %s1687_s2 = inlined_call_operand.vmem [shape: f32[2,64,32], index: 2, kind: input, shape index: {}]   ;;  %s1688_s3 = inlined_call_operand.vmem [shape: bf16[32,32], index: 3, kind: input, shape index: {}]   ;;  %s1689_s4 = inlined_call_operand.vmem [shape: f32[1,32], index: 4, kind: input, shape index: {}]   ;;  %s1690_s5 = inlined_call_operand.vmem [shape: f32[2,64,32], index: 5, kind: output, shape index: {}]  }
   0x1   :  { %s1480_s20 = smov 0  }
   0x2 LB: > { %s27_s21 = sadd.s32 1, %s1436_s19  ;;  %p1194_p0 = scmp.ge.s32.totalorder %s1440_s20, 1  ;;  %s1440_s20 = sphi %s1480_s20, %s15_s20   ;;  %s1436_s19 = sphi %s1478_s19, %s1692_s19   ;;  %s1432_s18 = sphi %s1476_s18, %s1691_s18  }
   0x3   : > { %p29_p1 = scmp.ge.s32.totalorder %s27_s21, 2  ;;  %p235_p2 = scmp.lt.s32.totalorder %s1440_s20, 3 }
   0x5   : > { %s1694_s21 = smov (%p29_p1, %s27_s21), 0  ;;  %p236_p3 = pnand %p1194_p0, %p235_p2 }
   0x6   : > { %p286_p4 = scmp.lt.s32.totalorder (!%p236_p3), %s1432_s18, 1  ;;  %s1442_s30 = smov (!%p236_p3), 112  }
   0x7   : > { %239 = sbr.rel (%p236_p3) target bundleno = 1619 (0x653), region = 40  ;;  %s1443_s6 = smov (!%p236_p3), 96  }
   0x8   : > { %s1444_s7 = smov (!%p236_p3), 80   ;;  %s1445_s12 = smov (!%p236_p3), 16  }
   0xc   : > { %s1696_s18 = smov (!%p286_p4, %s1432_s18), 1  ;;  %vm356_vm0 = vcmask 130048   ;;  %vm927_vm1 = vcmask 261248   ;;  %vm971_vm2 = vcmask 261120  }
   0xd   : > { %s1234_s22 = sshll.u32 %s1696_s18, 3  ;;  %s1233_s23 = sshll.u32 %s1696_s18, 5 }
   0xe   : > { %s299_s26 = scalar_lea.vmem %s1686_s1, %s1234_s22  ;;  %s293_s29 = scalar_lea.vmem %s1685_s0, %s1233_s23 }
   0xf   : > { %v1504_v0 = vld [vmem:[%s299_s26] sm:$0xff]   ;;  %v1349_v3 = vld [vmem:[%s293_s29 + $0x8] sm:$0xff]   ;;  %v1350_v4 = vld [vmem:[%s293_s29 + $0x10] sm:$0xff]   ;;  %s1235_s13 = sshll.u32 %s1696_s18, 6 }
  0x10   : > { %v1348_v1 = vld [vmem:[%s293_s29] sm:$0xff]   ;;  %1317 = vmatprep.subr.msk.bf16.mxu0 %vm356_vm0, %v1504_v0  ;;  %v370_v2 = vsel %vm356_vm0, %v1504_v0, 0  ;;  %v1351_v5 = vld [vmem:[%s293_s29 + $0x18] sm:$0xff]   ;;  %s1642_s16 = scalar_lea.vmem %s1687_s2, %s1235_s13  ;;  %s1651_s18 = scalar_lea.vmem %s1690_s5, %s1235_s13 }
  0x11   : > { %1264 = vmatpush3.bf16.xpose.msra.mxu0 %v370_v2  ;;  %1265 = vmatprep.mubr.msk.bf16.mxu0 %vm356_vm0, %v1348_v1 }
  0x18   : > { %1266 = vmatmul.mubr.msk.bf16.vlgmr.msra.gmra.mxu0 %vm356_vm0, %v1349_v3 }
  0x19   : > { %1269 = vmatprep.mubr.msk.bf16.mxu0 %vm356_vm0, %v1350_v4 }
  0x20   : > { %1270 = vmatmul.mubr.msk.bf16.gmra.mxu0 %vm356_vm0, %v1351_v5 }
  0xd8   : > { %v1267_v6 = vpop.f32.mrf.mxu0 }
  0xd9   : > { %v1531_v43 = vmul.f32 0.25, %v1267_v6 }
  0xda   : > { %v406_v7 = vpop.f32.mrf.mxu0 }
  0xdb   : > { %v1529_v42 = vmul.f32 0.25, %v406_v7  ;;  %v451_v47 = vsel %vm356_vm0, %v1531_v43, -inf }
  0xdc   : > { %v1268_v8 = vpop.f32.mrf.mxu0 }
  0xdd   : > { %v445_v44 = vsel %vm356_vm0, %v1529_v42, -inf  ;;  %v1535_v45 = vmul.f32 0.25, %v1268_v8 }
  0xde   : > { %v409_v9 = vpop.f32.mrf.mxu0 }
  0xdf   : > { %v1537_v46 = vmul.f32 0.25, %v409_v9  ;;  %v454_v48 = vsel %vm356_vm0, %v1535_v45, -inf }
  0xe0   : > { %v1271_v10 = vpop.f32.mrf.mxu0 }
  0xe1   : > { %v443_v11 = vmul.f32 0.25, %v1271_v10  ;;  %v448_v49 = vsel %vm356_vm0, %v1537_v46, -inf }
  0xe2   : > { %v422_v12 = vpop.f32.mrf.mxu0 }
  0xe3   : > { %v441_v13 = vmul.f32 0.25, %v422_v12  ;;  %v463_v14 = vsel %vm356_vm0, %v443_v11, -inf }
  0xe4   : > { %464 = vmax.xlane.f32.xlu1 %v463_v14  ;;  %v1272_v15 = vpop.f32.mrf.mxu0 }
  0xe5   : > { %v444_v16 = vmul.f32 0.25, %v1272_v15  ;;  %v457_v17 = vsel %vm356_vm0, %v441_v13, -inf }
  0xe6   : > { %458 = vmax.xlane.f32.xlu0 %v457_v17  ;;  %v425_v18 = vpop.f32.mrf.mxu0 }
  0xe7   : > { %v442_v19 = vmul.f32 0.25, %v425_v18  ;;  %v466_v20 = vsel %vm356_vm0, %v444_v16, -inf }
  0xe8   : > { %467 = vmax.xlane.f32.xlu1 %v466_v20 }
  0xe9   : > { %v460_v21 = vsel %vm356_vm0, %v442_v19, -inf }
  0xea   : > { %461 = vmax.xlane.f32.xlu0 %v460_v21 }
  0xf9   : > { %633 = vrot.lane.b32.xlu1 %v1504_v0, %s1442_s30 }
 0x16d   : > { %v465_v22 = vpop.xlane.xlu1 %464 }
 0x16e   : > { %v475_v23 = vsub.f32 %v443_v11, %v465_v22 }
 0x16f   : > { %v459_v24 = vpop.xlane.xlu0 %458 }
 0x170   : > { %v489_v25 = vmul.f32 1.442695, %v475_v23  ;;  %v473_v26 = vsub.f32 %v441_v13, %v459_v24 }
 0x171   : > { %v468_v27 = vpop.xlane.xlu1 %467 }
 0x172   : > { %1354 = vpow2.f32 %v489_v25  ;;  %v485_v28 = vmul.f32 1.442695, %v473_v26  ;;  %v476_v29 = vsub.f32 %v444_v16, %v468_v27 }
 0x173   : > { %v462_v30 = vpop.xlane.xlu0 %461 }
 0x174   : > { %1356 = vpow2.f32 %v485_v28  ;;  %v491_v31 = vmul.f32 1.442695, %v476_v29  ;;  %v474_v32 = vsub.f32 %v442_v19, %v462_v30 }
 0x175   : > { %v634_v50 = vpop.permute.xlu1 %633 }
 0x176   : > { %1358 = vpow2.f32 %v491_v31  ;;  %v487_v33 = vmul.f32 1.442695, %v474_v32 }
 0x178   : > { %1360 = vpow2.f32 %v487_v33 }
 0x17f   : > { %v1355_v34 = vpop.eup %1354 }
 0x180   : > { %v511_v35 = vsel %vm356_vm0, %v1355_v34, 0.0 }
 0x181   : > { %v1357_v36 = vpop.eup %1356  ;;  %512 = vadd.xlane.f32.xlu0 %v511_v35 }
 0x182   : > { %v505_v39 = vsel %vm356_vm0, %v1357_v36, 0.0 }
 0x183   : > { %v1359_v37 = vpop.eup %1358 }
 0x184   : > { %v514_v38 = vsel %vm356_vm0, %v1359_v37, 0.0 }
 0x185   : > { %v1361_v40 = vpop.eup %1360  ;;  %515 = vadd.xlane.f32.xlu1 %v514_v38  ;;  %506 = vadd.xlane.f32.xlu0 %v505_v39 }
 0x186   : > { %v508_v41 = vsel %vm356_vm0, %v1361_v40, 0.0 }
 0x189   : > { %509 = vadd.xlane.f32.xlu1 %v508_v41 }
 0x19a   : > { %625 = vrot.lane.b32.xlu1 %v1348_v1, %s1442_s30 }
 0x19b   : > { %537 = vrot.lane.b32.xlu0 %v1504_v0, %s1443_s6 }
 0x19e   : > { %627 = vrot.lane.b32.xlu1 %v1349_v3, %s1442_s30 }
 0x19f   : > { %629 = vrot.lane.b32.xlu0 %v1350_v4, %s1442_s30  ;;  %v648_v4 = vsel %vm356_vm0, %v634_v50, 0 }
 0x1a2   : > { %631 = vrot.lane.b32.xlu1 %v1351_v5, %s1442_s30 }
 0x1be   : > { %446 = vmax.xlane.f32.xlu0 %v445_v44 }
 0x1c2   : > { %452 = vmax.xlane.f32.xlu0 %v451_v47 }
 0x1c6   : > { %455 = vmax.xlane.f32.xlu0 %v454_v48  ;;  %449 = vmax.xlane.f32.xlu1 %v448_v49 }
 0x20a   : > { %v513_v51 = vpop.xlane.xlu0 %512 }
 0x20e   : > { %v516_v52 = vpop.xlane.xlu1 %515  ;;  %v507_v53 = vpop.xlane.xlu0 %506 }
 0x20f   : > { %1362 = vrcp.f32 %v516_v52 }
 0x210   : > { %1364 = vrcp.f32 %v507_v53 }
 0x211   : > { %1366 = vrcp.f32 %v513_v51 }
 0x212   : > { %v510_v54 = vpop.xlane.xlu1 %509  ;;  %v538_v55 = vpop.permute.xlu0 %537 }
 0x213   : > { %1368 = vrcp.f32 %v510_v54  ;;  %1315 = vmatprep.subr.bf16.mxu1 %v538_v55  ;;  %1273 = vmatprep.subr.bf16.mxu0 %v538_v55 }
 0x214   : > { %1316 = vmatpush3.bf16.msra.mxu1 %v538_v55  ;;  %1274 = vmatpush3.bf16.msra.mxu0 %v538_v55 }
 0x215   : > { %1318 = vmatprep.subr.msk.bf16.mxu1 %vm356_vm0, %v634_v50 }
 0x216   : > { %v626_v3 = vpop.permute.xlu1 %625  ;;  %v630_v6 = vpop.permute.xlu0 %629 }
 0x21a   : > { %v628_v5 = vpop.permute.xlu1 %627 }
 0x21c   : > { %v1363_v56 = vpop.eup %1362 }
 0x21d   : > { %v1365_v57 = vpop.eup %1364  ;;  %v532_v60 = vmul.f32 %v1363_v56, %v1359_v37 }
 0x21e   : > { %v1367_v58 = vpop.eup %1366  ;;  %v529_v61 = vmul.f32 %v1365_v57, %v1357_v36  ;;  %v632_v7 = vpop.permute.xlu1 %631 }
 0x21f   : > { %v531_v63 = vmul.f32 %v1367_v58, %v1355_v34 }
 0x220   : > { %v1369_v59 = vpop.eup %1368 }
 0x221   : > { %v530_v62 = vmul.f32 %v1369_v59, %v1361_v40  ;;  %v536_v2 = vpack.c.bf16 %v532_v60, %v531_v63 }
 0x223   : > { %v535_v1 = vpack.c.bf16 %v530_v62, %v529_v61 }
 0x225   : > { %1279 = vmatprep.mubr.msk.bf16.mxu1 %vm356_vm0, %v535_v1 }
 0x226   : > { %1280 = vmatmul.mubr.msk.bf16.vlgmr.msra.gmra.mxu1 %vm356_vm0, %v536_v2 }
 0x227   : > { %1284 = vmatpush3.bf16.xpose.msra.mxu1 %v648_v4  ;;  %1285 = vmatprep.mubr.msk.bf16.mxu1 %vm356_vm0, %v626_v3 }
 0x22e   : > { %1286 = vmatmul.mubr.msk.bf16.vlgmr.msra.gmra.mxu1 %vm356_vm0, %v628_v5 }
 0x22f   : > { %1289 = vmatprep.mubr.msk.bf16.mxu1 %vm356_vm0, %v630_v6 }
 0x236   : > { %1290 = vmatmul.mubr.msk.bf16.gmra.mxu1 %vm356_vm0, %v632_v7 }
 0x247   : > { %v447_v8 = vpop.xlane.xlu0 %446 }
 0x248   : > { %v469_v13 = vsub.f32 %v1529_v42, %v447_v8 }
 0x24a   : > { %v477_v18 = vmul.f32 1.442695, %v469_v13 }
 0x24b   : > { %v453_v11 = vpop.xlane.xlu0 %452 }
 0x24c   : > { %v471_v16 = vsub.f32 %v1531_v43, %v453_v11  ;;  %1370 = vpow2.f32 %v477_v18 }
 0x24e   : > { %v481_v23 = vmul.f32 1.442695, %v471_v16 }
 0x24f   : > { %v450_v14 = vpop.xlane.xlu1 %449  ;;  %v456_v20 = vpop.xlane.xlu0 %455 }
 0x250   : > { %v470_v19 = vsub.f32 %v1537_v46, %v450_v14  ;;  %v472_v24 = vsub.f32 %v1535_v45, %v456_v20  ;;  %1372 = vpow2.f32 %v481_v23 }
 0x252   : > { %v479_v26 = vmul.f32 1.442695, %v470_v19  ;;  %v483_v31 = vmul.f32 1.442695, %v472_v24 }
 0x254   : > { %1374 = vpow2.f32 %v479_v26 }
 0x255   : > { %1376 = vpow2.f32 %v483_v31 }
 0x259   : > { %v1568_v47 = vpop.eup %1370 }
 0x25a   : > { %v493_v50 = vsel %vm356_vm0, %v1568_v47, 0.0 }
 0x25d   : > { %v1570_v48 = vpop.eup %1372 }
 0x25e   : > { %v499_v53 = vsel %vm356_vm0, %v1570_v48, 0.0 }
 0x261   : > { %v1575_v51 = vpop.eup %1374 }
 0x262   : > { %v496_v52 = vsel %vm356_vm0, %v1575_v51, 0.0  ;;  %v1581_v54 = vpop.eup %1376 }
 0x263   : > { %v502_v55 = vsel %vm356_vm0, %v1581_v54, 0.0 }
 0x2e6   : > { %v1281_v9 = vpop.f32.mrf.mxu1 }
 0x2e7   : > { %623 = vst.msk [vmem:[#allocation2 + $0x30] sm:$0xff] %vm356_vm0, %v1281_v9 }
 0x2e8   : > { %v602_v10 = vpop.f32.mrf.mxu1 }
 0x2e9   : > { %621 = vst.msk [vmem:[#allocation2 + $0x20] sm:$0xff] %vm356_vm0, %v602_v10 }
 0x2ea   : > { %v1282_v12 = vpop.f32.mrf.mxu1 }
 0x2eb   : > { %624 = vst.msk [vmem:[#allocation2 + $0x38] sm:$0xff] %vm356_vm0, %v1282_v12 }
 0x2ec   : > { %v605_v15 = vpop.f32.mrf.mxu1 }
 0x2ed   : > { %622 = vst.msk [vmem:[#allocation2 + $0x28] sm:$0xff] %vm356_vm0, %v605_v15 }
 0x2ee   : > { %v1287_v17 = vpop.f32.mrf.mxu1 }
 0x2ef   : > { %v717_v27 = vmul.f32 0.25, %v1287_v17 }
 0x2f0   : > { %v684_v21 = vpop.f32.mrf.mxu1 }
 0x2f1   : > { %v715_v22 = vmul.f32 0.25, %v684_v21  ;;  %v729_v34 = vsel %vm356_vm0, %v717_v27, -inf }
 0x2f2   : > { %v1288_v25 = vpop.f32.mrf.mxu1 }
 0x2f3   : > { %v723_v28 = vsel %vm356_vm0, %v715_v22, -inf  ;;  %v718_v33 = vmul.f32 0.25, %v1288_v25 }
 0x2f4   : > { %724 = vmax.xlane.f32.xlu0 %v723_v28  ;;  %v687_v29 = vpop.f32.mrf.mxu1 }
 0x2f5   : > { %v716_v30 = vmul.f32 0.25, %v687_v29  ;;  %v732_v40 = vsel %vm356_vm0, %v718_v33, -inf }
 0x2f6   : > { %v1291_v32 = vpop.f32.mrf.mxu1 }
 0x2f7   : > { %v726_v35 = vsel %vm356_vm0, %v716_v30, -inf  ;;  %v721_v39 = vmul.f32 0.25, %v1291_v32 }
 0x2f8   : > { %730 = vmax.xlane.f32.xlu0 %v729_v34  ;;  %727 = vmax.xlane.f32.xlu1 %v726_v35  ;;  %v700_v36 = vpop.f32.mrf.mxu1 }
 0x2f9   : > { %v719_v37 = vmul.f32 0.25, %v700_v36  ;;  %v741_v45 = vsel %vm356_vm0, %v721_v39, -inf }
 0x2fa   : > { %v1292_v38 = vpop.f32.mrf.mxu1 }
 0x2fb   : > { %v735_v41 = vsel %vm356_vm0, %v719_v37, -inf  ;;  %v722_v44 = vmul.f32 0.25, %v1292_v38 }
 0x2fc   : > { %733 = vmax.xlane.f32.xlu1 %v732_v40  ;;  %736 = vmax.xlane.f32.xlu0 %v735_v41  ;;  %v703_v42 = vpop.f32.mrf.mxu1 }
 0x2fd   : > { %v720_v43 = vmul.f32 0.25, %v703_v42  ;;  %v744_v49 = vsel %vm356_vm0, %v722_v44, -inf }
 0x2ff   : > { %v738_v46 = vsel %vm356_vm0, %v720_v43, -inf }
 0x300   : > { %742 = vmax.xlane.f32.xlu0 %v741_v45  ;;  %739 = vmax.xlane.f32.xlu1 %v738_v46 }
 0x304   : > { %745 = vmax.xlane.f32.xlu1 %v744_v49  ;;  %494 = vadd.xlane.f32.xlu0 %v493_v50 }
 0x308   : > { %497 = vadd.xlane.f32.xlu1 %v496_v52  ;;  %500 = vadd.xlane.f32.xlu0 %v499_v53 }
 0x30c   : > { %503 = vadd.xlane.f32.xlu1 %v502_v55 }
 0x37d   : > { %v725_v56 = vpop.xlane.xlu0 %724 }
 0x37e   : > { %v747_v57 = vsub.f32 %v715_v22, %v725_v56 }
 0x380   : > { %v755_v1 = vmul.f32 1.442695, %v747_v57 }
 0x381   : > { %v728_v58 = vpop.xlane.xlu1 %727  ;;  %v731_v59 = vpop.xlane.xlu0 %730 }
 0x382   : > { %v748_v60 = vsub.f32 %v716_v30, %v728_v58  ;;  %v749_v61 = vsub.f32 %v717_v27, %v731_v59 }
 0x384   : > { %v757_v62 = vmul.f32 1.442695, %v748_v60  ;;  %v759_v63 = vmul.f32 1.442695, %v749_v61 }
 0x385   : > { %v734_v2 = vpop.xlane.xlu1 %733  ;;  %v737_v3 = vpop.xlane.xlu0 %736 }
 0x386   : > { %1378 = vpow2.f32 %v757_v62  ;;  %v750_v4 = vsub.f32 %v718_v33, %v734_v2  ;;  %v751_v6 = vsub.f32 %v719_v37, %v737_v3 }
 0x387   : > { %1380 = vpow2.f32 %v759_v63 }
 0x388   : > { %v761_v5 = vmul.f32 1.442695, %v750_v4  ;;  %1382 = vpow2.f32 %v755_v1  ;;  %v763_v11 = vmul.f32 1.442695, %v751_v6 }
 0x389   : > { %v740_v7 = vpop.xlane.xlu1 %739  ;;  %v743_v8 = vpop.xlane.xlu0 %742 }
 0x38a   : > { %1384 = vpow2.f32 %v761_v5  ;;  %v752_v9 = vsub.f32 %v720_v43, %v740_v7  ;;  %v753_v10 = vsub.f32 %v721_v39, %v743_v8 }
 0x38c   : > { %v765_v12 = vmul.f32 1.442695, %v752_v9  ;;  %v767_v13 = vmul.f32 1.442695, %v753_v10 }
 0x38d   : > { %v746_v14 = vpop.xlane.xlu1 %745  ;;  %v495_v15 = vpop.xlane.xlu0 %494 }
 0x38e   : > { %1386 = vpow2.f32 %v765_v12  ;;  %v754_v16 = vsub.f32 %v722_v44, %v746_v14 }
 0x38f   : > { %1388 = vpow2.f32 %v767_v13 }
 0x390   : > { %1390 = vpow2.f32 %v763_v11  ;;  %v769_v17 = vmul.f32 1.442695, %v754_v16  ;;  %v1352_v16 = vld [vmem:[%s1688_s3 + $0x8] sm:$0xff]  }
 0x391   : > { %1392 = vrcp.f32 %v495_v15  ;;  %v498_v18 = vpop.xlane.xlu1 %497  ;;  %v501_v19 = vpop.xlane.xlu0 %500  ;;  %1303 = vmatprep.subr.bf16.mxu1 %v1352_v16 }
 0x392   : > { %1394 = vpow2.f32 %v769_v17  ;;  %1304 = vmatpush3.bf16.msra.mxu1 %v1352_v16  ;;  %v1353_v17 = vld [vmem:[%s1688_s3] sm:$0xff]  }
 0x393   : > { %v1585_v20 = vpop.eup %1378  ;;  %1396 = vrcp.f32 %v498_v18  ;;  %1305 = vmatprep.subr.bf16.mxu1 %v1353_v17 }
 0x394   : > { %v1587_v21 = vpop.eup %1380  ;;  %1398 = vrcp.f32 %v501_v19  ;;  %v774_v22 = vsel %vm356_vm0, %v1585_v20, 0.0 }
 0x395   : > { %775 = vadd.xlane.f32.xlu1 %v774_v22  ;;  %v504_v23 = vpop.xlane.xlu1 %503  ;;  %v777_v24 = vsel %vm356_vm0, %v1587_v21, 0.0  ;;  %v1383_v25 = vpop.eup %1382 }
 0x396   : > { %1400 = vrcp.f32 %v504_v23  ;;  %778 = vadd.xlane.f32.xlu0 %v777_v24  ;;  %v771_v28 = vsel %vm356_vm0, %v1383_v25, 0.0  ;;  %1306 = vmatpush3.bf16.msra.mxu1 %v1353_v17 }
 0x397   : > { %v1385_v26 = vpop.eup %1384 }
 0x398   : > { %v780_v27 = vsel %vm356_vm0, %v1385_v26, 0.0 }
 0x399   : > { %781 = vadd.xlane.f32.xlu1 %v780_v27 }
 0x39a   : > { %772 = vadd.xlane.f32.xlu0 %v771_v28 }
 0x39b   : > { %v1595_v29 = vpop.eup %1386 }
 0x39c   : > { %v1389_v30 = vpop.eup %1388  ;;  %v786_v31 = vsel %vm356_vm0, %v1595_v29, 0.0 }
 0x39d   : > { %v1391_v32 = vpop.eup %1390  ;;  %787 = vadd.xlane.f32.xlu1 %v786_v31  ;;  %v789_v33 = vsel %vm356_vm0, %v1389_v30, 0.0 }
 0x39e   : > { %v1393_v34 = vpop.eup %1392  ;;  %790 = vadd.xlane.f32.xlu0 %v789_v33  ;;  %v783_v39 = vsel %vm356_vm0, %v1391_v32, 0.0 }
 0x39f   : > { %v1395_v35 = vpop.eup %1394  ;;  %v525_v40 = vmul.f32 %v1393_v34, %v1568_v47 }
 0x3a0   : > { %v1397_v36 = vpop.eup %1396  ;;  %v792_v37 = vsel %vm356_vm0, %v1395_v35, 0.0 }
 0x3a1   : > { %v1399_v38 = vpop.eup %1398  ;;  %793 = vadd.xlane.f32.xlu1 %v792_v37  ;;  %v526_v41 = vmul.f32 %v1397_v36, %v1575_v51 }
 0x3a2   : > { %784 = vadd.xlane.f32.xlu0 %v783_v39  ;;  %v527_v44 = vmul.f32 %v1399_v38, %v1570_v48 }
 0x3a3   : > { %v1401_v42 = vpop.eup %1400  ;;  %v533_v43 = vpack.c.bf16 %v526_v41, %v525_v40 }
 0x3a4   : > { %v528_v45 = vmul.f32 %v1401_v42, %v1581_v54 }
 0x3a5   : > { %1275 = vmatprep.mubr.msk.bf16.mxu0 %vm356_vm0, %v533_v43 }
 0x3a6   : > { %v534_v46 = vpack.c.bf16 %v528_v45, %v527_v44 }
 0x3a8   : > { %1276 = vmatmul.mubr.msk.bf16.vlgmr.msra.gmra.mxu0 %vm356_vm0, %v534_v46  ;;  %v1224_v46 = vld [vmem:[%s1689_s4] ss:$0 sm:$0xff] }
 0x3b8   : > { %815 = vrot.lane.b32.xlu0 %v1504_v0, %s1444_s7 }
 0x41e   : > { %v776_v49 = vpop.xlane.xlu1 %775 }
 0x41f   : > { %v779_v50 = vpop.xlane.xlu0 %778 }
 0x420   : > { %1402 = vrcp.f32 %v779_v50  ;;  %v1051_v50 = vld [vmem:[%s1642_s16 + $0x10] sm:$0xff] }
 0x421   : > { %1404 = vrcp.f32 %v776_v49 }
 0x422   : > { %v782_v47 = vpop.xlane.xlu1 %781 }
 0x423   : > { %1406 = vrcp.f32 %v782_v47  ;;  %v773_v51 = vpop.xlane.xlu0 %772 }
 0x424   : > { %1408 = vrcp.f32 %v773_v51 }
 0x426   : > { %v788_v52 = vpop.xlane.xlu1 %787 }
 0x427   : > { %v791_v48 = vpop.xlane.xlu0 %790 }
 0x428   : > { %1410 = vrcp.f32 %v791_v48 }
 0x429   : > { %1412 = vrcp.f32 %v788_v52  ;;  %v1049_v52 = vld [vmem:[%s1642_s16] sm:$0xff] }
 0x42a   : > { %v794_v53 = vpop.xlane.xlu1 %793 }
 0x42b   : > { %1414 = vrcp.f32 %v794_v53  ;;  %v785_v54 = vpop.xlane.xlu0 %784 }
 0x42c   : > { %1416 = vrcp.f32 %v785_v54 }
 0x42d   : > { %v1403_v55 = vpop.eup %1402 }
 0x42e   : > { %v1405_v56 = vpop.eup %1404  ;;  %v805_v59 = vmul.f32 %v1403_v55, %v1587_v21  ;;  %v1052_v55 = vld [vmem:[%s1642_s16 + $0x18] sm:$0xff] }
 0x42f   : > { %v816_v57 = vpop.permute.xlu0 %815  ;;  %v804_v62 = vmul.f32 %v1405_v56, %v1585_v20 }
 0x430   : > { %v1407_v0 = vpop.eup %1406  ;;  %1293 = vmatprep.subr.bf16.mxu0 %v816_v57 }
 0x431   : > { %v1409_v58 = vpop.eup %1408  ;;  %1294 = vmatpush3.bf16.msra.mxu0 %v816_v57  ;;  %v806_v60 = vmul.f32 %v1407_v0, %v1385_v26 }
 0x432   : > { %v803_v61 = vmul.f32 %v1409_v58, %v1383_v25  ;;  %v1050_v58 = vld [vmem:[%s1642_s16 + $0x8] sm:$0xff] }
 0x433   : > { %v812_v63 = vpack.c.bf16 %v806_v60, %v805_v59 }
 0x434   : > { %v811_v1 = vpack.c.bf16 %v804_v62, %v803_v61  ;;  %v1055_v62 = vld [vmem:[%s1642_s16 + $0x30] sm:$0xff] }
 0x435   : > { %v1411_v2 = vpop.eup %1410 }
 0x436   : > { %1295 = vmatprep.mubr.msk.bf16.mxu0 %vm356_vm0, %v811_v1  ;;  %v1413_v3 = vpop.eup %1412  ;;  %v809_v6 = vmul.f32 %v1411_v2, %v1389_v30 }
 0x437   : > { %1296 = vmatmul.mubr.msk.bf16.vlgmr.msra.gmra.mxu0 %vm356_vm0, %v812_v63  ;;  %v808_v9 = vmul.f32 %v1413_v3, %v1595_v29  ;;  %v1053_v3 = vld [vmem:[%s1642_s16 + $0x20] sm:$0xff] }
 0x438   : > { %v1415_v4 = vpop.eup %1414 }
 0x439   : > { %v1417_v5 = vpop.eup %1416  ;;  %v810_v7 = vmul.f32 %v1415_v4, %v1395_v35 }
 0x43a   : > { %v807_v8 = vmul.f32 %v1417_v5, %v1391_v32 }
 0x43b   : > { %v814_v10 = vpack.c.bf16 %v810_v7, %v809_v6  ;;  %v1056_v7 = vld [vmem:[%s1642_s16 + $0x38] sm:$0xff] }
 0x43c   : > { %v813_v11 = vpack.c.bf16 %v808_v9, %v807_v8 }
 0x43e   : > { %1299 = vmatprep.mubr.msk.bf16.mxu0 %vm356_vm0, %v813_v11  ;;  %v1054_v11 = vld [vmem:[%s1642_s16 + $0x28] sm:$0xff] }
 0x43f   : > { %1300 = vmatmul.mubr.msk.bf16.gmra.mxu0 %vm356_vm0, %v814_v10 }
 0x468   : > { %v1277_v12 = vpop.f32.mrf.mxu0 }
 0x469   : > { %619 = vst.msk [vmem:[#allocation2 + $0x10] sm:$0xff] %vm356_vm0, %v1277_v12 }
 0x46a   : > { %v586_v13 = vpop.f32.mrf.mxu0 }
 0x46b   : > { %617 = vst.msk [vmem:[#allocation2] sm:$0xff] %vm356_vm0, %v586_v13 }
 0x46c   : > { %v1278_v14 = vpop.f32.mrf.mxu0 }
 0x46d   : > { %620 = vst.msk [vmem:[#allocation2 + $0x18] sm:$0xff] %vm356_vm0, %v1278_v14 }
 0x46e   : > { %v589_v15 = vpop.f32.mrf.mxu0 }
 0x46f   : > { %618 = vst.msk [vmem:[#allocation2 + $0x8] sm:$0xff] %vm356_vm0, %v589_v15 }
 0x4f7   : > { %v1297_v18 = vpop.f32.mrf.mxu0 }
 0x4f9   : > { %v864_v19 = vpop.f32.mrf.mxu0 }
 0x4fa   : > { %903 = vrot.lane.b32.xlu1 %v864_v19, %s1445_s12 }
 0x4fb   : > { %v1298_v20 = vpop.f32.mrf.mxu0 }
 0x4fc   : > { %909 = vrot.lane.b32.xlu0 %v1298_v20, %s1445_s12 }
 0x4fd   : > { %v867_v21 = vpop.f32.mrf.mxu0 }
 0x4fe   : > { %905 = vrot.lane.b32.xlu1 %v867_v21, %s1445_s12 }
 0x4ff   : > { %v1301_v22 = vpop.f32.mrf.mxu0 }
 0x501   : > { %v880_v23 = vpop.f32.mrf.mxu0 }
 0x502   : > { %907 = vrot.lane.b32.xlu1 %v1297_v18, %s1445_s12 }
 0x503   : > { %v1302_v24 = vpop.f32.mrf.mxu0 }
 0x505   : > { %v883_v25 = vpop.f32.mrf.mxu0 }
 0x506   : > { %911 = vrot.lane.b32.xlu1 %v880_v23, %s1445_s12  ;;  %913 = vrot.lane.b32.xlu0 %v883_v25, %s1445_s12 }
 0x50a   : > { %915 = vrot.lane.b32.xlu1 %v1301_v22, %s1445_s12  ;;  %917 = vrot.lane.b32.xlu0 %v1302_v24, %s1445_s12 }
 0x56c   : > { %v904_v26 = vpop.permute.xlu1 %903 }
 0x56d   : > { %928 = vst.msk [vmem:[#allocation2] sm:$0xff] %vm927_vm1, %v904_v26 }
 0x56e   : > { %v910_v27 = vpop.permute.xlu0 %909 }
 0x56f   : > { %931 = vst.msk [vmem:[#allocation2 + $0x18] sm:$0xff] %vm927_vm1, %v910_v27 }
 0x570   : > { %v906_v28 = vpop.permute.xlu1 %905 }
 0x571   : > { %929 = vst.msk [vmem:[#allocation2 + $0x8] sm:$0xff] %vm927_vm1, %v906_v28 }
 0x574   : > { %v908_v29 = vpop.permute.xlu1 %907  ;;  %v936_v32 = vld [vmem:[#allocation2] sm:$0xff] }
 0x575   : > { %930 = vst.msk [vmem:[#allocation2 + $0x10] sm:$0xff] %vm927_vm1, %v908_v29 }
 0x576   : > { %v939_v38 = vld [vmem:[#allocation2 + $0x18] sm:$0xff] }
 0x578   : > { %v912_v30 = vpop.permute.xlu1 %911  ;;  %v914_v31 = vpop.permute.xlu0 %913  ;;  %v937_v33 = vld [vmem:[#allocation2 + $0x8] sm:$0xff] }
 0x579   : > { %932 = vst.msk [vmem:[#allocation2 + $0x20] sm:$0xff] %vm927_vm1, %v912_v30  ;;  %933 = vst.msk [vmem:[#allocation2 + $0x28] sm:$0xff] %vm927_vm1, %v914_v31  ;;  %v944_v34 = vpack.c.bf16 %v937_v33, %v936_v32 }
 0x57b   : > { %1307 = vmatprep.mubr.msk.bf16.mxu1 %vm971_vm2, %v944_v34 }
 0x57c   : > { %v916_v35 = vpop.permute.xlu1 %915  ;;  %v918_v36 = vpop.permute.xlu0 %917  ;;  %v938_v37 = vld [vmem:[#allocation2 + $0x10] sm:$0xff] }
 0x57d   : > { %934 = vst.msk [vmem:[#allocation2 + $0x30] sm:$0xff] %vm927_vm1, %v916_v35  ;;  %935 = vst.msk [vmem:[#allocation2 + $0x38] sm:$0xff] %vm927_vm1, %v918_v36  ;;  %v945_v39 = vpack.c.bf16 %v939_v38, %v938_v37 }
 0x57f   : > { %1308 = vmatmul.mubr.msk.bf16.vlgmr.msra.gmra.mxu1 %vm971_vm2, %v945_v39 }
 0x580   : > { %v940_v40 = vld [vmem:[#allocation2 + $0x20] sm:$0xff]  ;;  %v941_v41 = vld [vmem:[#allocation2 + $0x28] sm:$0xff] }
 0x581   : > { %v946_v42 = vpack.c.bf16 %v941_v41, %v940_v40 }
 0x583   : > { %1311 = vmatprep.mubr.msk.bf16.mxu1 %vm971_vm2, %v946_v42 }
 0x584   : > { %v942_v43 = vld [vmem:[#allocation2 + $0x30] sm:$0xff]  ;;  %v943_v44 = vld [vmem:[#allocation2 + $0x38] sm:$0xff] }
 0x585   : > { %v947_v45 = vpack.c.bf16 %v943_v44, %v942_v43 }
 0x587   : > { %1312 = vmatmul.mubr.msk.bf16.gmra.mxu1 %vm971_vm2, %v947_v45 }
 0x63f   : > { %v1309_v49 = vpop.f32.mrf.mxu1 }
 0x640   : > { %v1027_v47 = vadd.f32 %v1309_v49, %v1224_v46 }
 0x641   : > { %v1018_v51 = vpop.f32.mrf.mxu1 }
 0x642   : > { %v1059_v48 = vadd.f32 %v1051_v50, %v1027_v47  ;;  %v1019_v53 = vadd.f32 %v1224_v46, %v1018_v51 }
 0x643   : > { %v1310_v54 = vpop.f32.mrf.mxu1 }
 0x644   : > { %1067 = vst.msk [vmem:[%s1651_s18 + $0x10] sm:$0xff] %vm971_vm2, %v1059_v48  ;;  %v1057_v56 = vadd.f32 %v1049_v52, %v1019_v53  ;;  %v1030_v57 = vadd.f32 %v1310_v54, %v1224_v46 }
 0x645   : > { %v1021_v0 = vpop.f32.mrf.mxu1 }
 0x646   : > { %1065 = vst.msk [vmem:[%s1651_s18] sm:$0xff] %vm971_vm2, %v1057_v56  ;;  %v1060_v59 = vadd.f32 %v1052_v55, %v1030_v57  ;;  %v1022_v60 = vadd.f32 %v1224_v46, %v1021_v0 }
 0x647   : > { %v1313_v61 = vpop.f32.mrf.mxu1 }
 0x648   : > { %1068 = vst.msk [vmem:[%s1651_s18 + $0x18] sm:$0xff] %vm971_vm2, %v1060_v59  ;;  %v1058_v63 = vadd.f32 %v1050_v58, %v1022_v60  ;;  %v1043_v1 = vadd.f32 %v1313_v61, %v1224_v46 }
 0x649   : > { %v1034_v2 = vpop.f32.mrf.mxu1 }
 0x64a   : > { %1066 = vst.msk [vmem:[%s1651_s18 + $0x8] sm:$0xff] %vm971_vm2, %v1058_v63  ;;  %v1063_v4 = vadd.f32 %v1055_v62, %v1043_v1  ;;  %v1035_v5 = vadd.f32 %v1224_v46, %v1034_v2 }
 0x64b   : > { %v1314_v6 = vpop.f32.mrf.mxu1 }
 0x64c   : > { %1071 = vst.msk [vmem:[%s1651_s18 + $0x30] sm:$0xff] %vm971_vm2, %v1063_v4  ;;  %v1061_v8 = vadd.f32 %v1053_v3, %v1035_v5  ;;  %v1046_v9 = vadd.f32 %v1314_v6, %v1224_v46 }
 0x64d   : > { %v1037_v10 = vpop.f32.mrf.mxu1 }
 0x64e   : > { %1069 = vst.msk [vmem:[%s1651_s18 + $0x20] sm:$0xff] %vm971_vm2, %v1061_v8  ;;  %v1064_v12 = vadd.f32 %v1056_v7, %v1046_v9  ;;  %v1038_v13 = vadd.f32 %v1224_v46, %v1037_v10 }
 0x650   : > { %1072 = vst.msk [vmem:[%s1651_s18 + $0x38] sm:$0xff] %vm971_vm2, %v1064_v12  ;;  %v1062_v14 = vadd.f32 %v1054_v11, %v1038_v13 }
 0x652   : > { %1070 = vst.msk [vmem:[%s1651_s18 + $0x28] sm:$0xff] %vm971_vm2, %v1062_v14 }
 0x653 PF: > { %s15_s20 = sadd.s32 1, %s1440_s20   ;;  %s1691_s18 = smov %s1436_s19 }
 0x654   : > { %p12_p5 = scmp.ge.s32.totalorder %s15_s20, 4   ;;  %s1692_s19 = smov %s1694_s21 }
 0x656   :  { %14 = sbr.rel (!%p12_p5) target bundleno = 2 (0x2), region = 76 }

// kernel: block_forward.7
= control target key start
LH: loop header
LB: loop body
LE: loop exit
PB: predicated region body
PF: predicated region fallthrough
CT: control target
= control target key end

     0   :  { %s845_s13 = smov 96   ;;  %s846_s18 = smov 64   ;;  %vm39_vm0 = vcmask 261120   ;;  %vm413_vm1 = vcmask 523264   ;;  %vm418_vm2 = vcmask 785408   ;;  %vm715_vm3 = vcmask 519168   ;;  %s1204_s0 = inlined_call_operand.vmem [shape: f32[32,128], index: 0, kind: input, shape index: {}]   ;;  %s1205_s1 = inlined_call_operand.vmem [shape: f32[1,32], index: 1, kind: input, shape index: {}]   ;;  %s1206_s2 = inlined_call_operand.vmem [shape: f32[1,32], index: 2, kind: input, shape index: {}]   ;;  %s1207_s3 = inlined_call_operand.vmem [shape: bf16[128,32], index: 3, kind: input, shape index: {}]   ;;  %s1208_s4 = inlined_call_operand.vmem [shape: f32[1,32], index: 4, kind: input, shape index: {}]   ;;  %s1209_s7 = inlined_call_operand.vmem [shape: bf16[32,64], index: 7, kind: input, shape index: {}]   ;;  %s1210_s5 = inlined_call_operand.vmem [shape: f32[1,32], index: 5, kind: input, shape index: {}]   ;;  %s1211_s6 = inlined_call_operand.vmem [shape: f32[1,32], index: 6, kind: input, shape index: {}]   ;;  %s1212_s8 = inlined_call_operand.vmem [shape: f32[1,64], index: 8, kind: input, shape index: {}]   ;;  %s1213_s9 = inlined_call_operand.vmem [shape: bf16[32,64], index: 9, kind: output, shape index: {}]  }
   0x1   :  { %v901_v0 = vld [vmem:[%s1204_s0] sm:$0xff]  ;;  %v906_v1 = vld [vmem:[%s1204_s0 + $0x10] sm:$0xff]  ;;  %v915_v2 = vld [vmem:[%s1204_s0 + $0x8] sm:$0xff] }
   0x2   :  { %119 = vrot.lane.b32.xlu0 %v901_v0, %s845_s13  ;;  %123 = vrot.lane.b32.xlu1 %v906_v1, %s845_s13  ;;  %v920_v3 = vld [vmem:[%s1204_s0 + $0x18] sm:$0xff]  ;;  %s847_s0 = smov 32   ;;  %v40_v28 = vsel %vm39_vm0, %v901_v0, 0.0  ;;  %v43_v29 = vsel %vm39_vm0, %v915_v2, 0.0  ;;  %v46_v30 = vsel %vm39_vm0, %v906_v1, 0.0 }
   0x3   :  { %v49_v31 = vsel %vm39_vm0, %v920_v3, 0.0 }
   0x6   :  { %121 = vrot.lane.b32.xlu0 %v915_v2, %s845_s13  ;;  %125 = vrot.lane.b32.xlu1 %v920_v3, %s845_s13 }
   0xa   :  { %215 = vrot.lane.b32.xlu0 %v901_v0, %s846_s18  ;;  %217 = vrot.lane.b32.xlu1 %v915_v2, %s846_s18 }
   0xe   :  { %219 = vrot.lane.b32.xlu0 %v906_v1, %s846_s18  ;;  %221 = vrot.lane.b32.xlu1 %v920_v3, %s846_s18 }
  0x12   :  { %311 = vrot.lane.b32.xlu0 %v901_v0, %s847_s0  ;;  %313 = vrot.lane.b32.xlu1 %v915_v2, %s847_s0 }
  0x16   :  { %315 = vrot.lane.b32.xlu0 %v906_v1, %s847_s0  ;;  %317 = vrot.lane.b32.xlu1 %v920_v3, %s847_s0 }
  0x74   :  { %v120_v4 = vpop.permute.xlu0 %119  ;;  %v124_v5 = vpop.permute.xlu1 %123 }
  0x75   :  { %v131_v6 = vsel %vm39_vm0, %v120_v4, 0.0  ;;  %v137_v7 = vsel %vm39_vm0, %v124_v5, 0.0 }
  0x76   :  { %132 = vadd.xlane.f32.xlu0 %v131_v6 }
  0x78   :  { %v122_v8 = vpop.permute.xlu0 %121  ;;  %v126_v9 = vpop.permute.xlu1 %125 }
  0x79   :  { %v134_v10 = vsel %vm39_vm0, %v122_v8, 0.0  ;;  %v140_v11 = vsel %vm39_vm0, %v126_v9, 0.0 }
  0x7a   :  { %138 = vadd.xlane.f32.xlu0 %v137_v7  ;;  %135 = vadd.xlane.f32.xlu1 %v134_v10 }
  0x7c   :  { %v216_v12 = vpop.permute.xlu0 %215  ;;  %v218_v13 = vpop.permute.xlu1 %217 }
  0x7d   :  { %v227_v14 = vsel %vm39_vm0, %v216_v12, 0.0  ;;  %v230_v15 = vsel %vm39_vm0, %v218_v13, 0.0 }
  0x7e   :  { %141 = vadd.xlane.f32.xlu0 %v140_v11  ;;  %228 = vadd.xlane.f32.xlu1 %v227_v14 }
  0x80   :  { %v220_v16 = vpop.permute.xlu0 %219  ;;  %v222_v17 = vpop.permute.xlu1 %221 }
  0x81   :  { %v233_v18 = vsel %vm39_vm0, %v220_v16, 0.0  ;;  %v236_v19 = vsel %vm39_vm0, %v222_v17, 0.0 }
  0x82   :  { %231 = vadd.xlane.f32.xlu0 %v230_v15  ;;  %234 = vadd.xlane.f32.xlu1 %v233_v18 }
  0x84   :  { %v312_v20 = vpop.permute.xlu0 %311  ;;  %v314_v21 = vpop.permute.xlu1 %313 }
  0x85   :  { %v323_v22 = vsel %vm39_vm0, %v312_v20, 0.0  ;;  %v326_v23 = vsel %vm39_vm0, %v314_v21, 0.0 }
  0x86   :  { %237 = vadd.xlane.f32.xlu0 %v236_v19  ;;  %324 = vadd.xlane.f32.xlu1 %v323_v22 }
  0x88   :  { %v316_v24 = vpop.permute.xlu0 %315  ;;  %v318_v25 = vpop.permute.xlu1 %317 }
  0x89   :  { %v329_v26 = vsel %vm39_vm0, %v316_v24, 0.0  ;;  %v332_v27 = vsel %vm39_vm0, %v318_v25, 0.0 }
  0x8a   :  { %327 = vadd.xlane.f32.xlu0 %v326_v23  ;;  %330 = vadd.xlane.f32.xlu1 %v329_v26 }
  0x8e   :  { %333 = vadd.xlane.f32.xlu0 %v332_v27  ;;  %41 = vadd.xlane.f32.xlu1 %v40_v28 }
  0x92   :  { %44 = vadd.xlane.f32.xlu0 %v43_v29  ;;  %47 = vadd.xlane.f32.xlu1 %v46_v30 }
  0x96   :  { %50 = vadd.xlane.f32.xlu0 %v49_v31 }
  0xff   :  { %v133_v32 = vpop.xlane.xlu0 %132 }
 0x100   :  { %v143_v33 = vmul.f32 0.03125, %v133_v32 }
 0x102   :  { %v963_v34 = vsub.f32 %v901_v0, %v143_v33 }
 0x103   :  { %v136_v35 = vpop.xlane.xlu1 %135  ;;  %v139_v36 = vpop.xlane.xlu0 %138 }
 0x104   :  { %v144_v37 = vmul.f32 0.03125, %v136_v35  ;;  %v145_v38 = vmul.f32 0.03125, %v139_v36  ;;  %v151_v39 = vmul.f32 %v963_v34, %v963_v34 }
 0x106   :  { %v968_v40 = vsub.f32 %v915_v2, %v144_v37  ;;  %v971_v41 = vsub.f32 %v906_v1, %v145_v38  ;;  %159 = vrot.lane.b32.xlu1 %v151_v39, %s845_s13 }
 0x107   :  { %v229_v42 = vpop.xlane.xlu1 %228  ;;  %v142_v43 = vpop.xlane.xlu0 %141 }
 0x108   :  { %v239_v44 = vmul.f32 0.03125, %v229_v42  ;;  %v146_v45 = vmul.f32 0.03125, %v142_v43  ;;  %v152_v46 = vmul.f32 %v968_v40, %v968_v40  ;;  %v153_v47 = vmul.f32 %v971_v41, %v971_v41 }
 0x10a   :  { %v979_v48 = vsub.f32 %v901_v0, %v239_v44  ;;  %v982_v49 = vsub.f32 %v920_v3, %v146_v45  ;;  %161 = vrot.lane.b32.xlu0 %v152_v46, %s845_s13  ;;  %163 = vrot.lane.b32.xlu1 %v153_v47, %s845_s13 }
 0x10b   :  { %v235_v50 = vpop.xlane.xlu1 %234  ;;  %v232_v51 = vpop.xlane.xlu0 %231 }
 0x10c   :  { %v241_v52 = vmul.f32 0.03125, %v235_v50  ;;  %v240_v53 = vmul.f32 0.03125, %v232_v51  ;;  %v247_v54 = vmul.f32 %v979_v48, %v979_v48  ;;  %v154_v55 = vmul.f32 %v982_v49, %v982_v49 }
 0x10e   :  { %v991_v56 = vsub.f32 %v906_v1, %v241_v52  ;;  %v994_v57 = vsub.f32 %v915_v2, %v240_v53  ;;  %255 = vrot.lane.b32.xlu0 %v247_v54, %s846_s18  ;;  %165 = vrot.lane.b32.xlu1 %v154_v55, %s845_s13 }
 0x10f   :  { %v325_v58 = vpop.xlane.xlu1 %324  ;;  %v238_v59 = vpop.xlane.xlu0 %237 }
 0x110   :  { %v335_v60 = vmul.f32 0.03125, %v325_v58  ;;  %v242_v61 = vmul.f32 0.03125, %v238_v59  ;;  %v249_v62 = vmul.f32 %v991_v56, %v991_v56  ;;  %v248_v63 = vmul.f32 %v994_v57, %v994_v57 }
 0x112   :  { %v1003_v4 = vsub.f32 %v901_v0, %v335_v60  ;;  %v1006_v5 = vsub.f32 %v920_v3, %v242_v61  ;;  %259 = vrot.lane.b32.xlu0 %v249_v62, %s846_s18  ;;  %257 = vrot.lane.b32.xlu1 %v248_v63, %s846_s18 }
 0x113   :  { %v331_v6 = vpop.xlane.xlu1 %330  ;;  %v328_v7 = vpop.xlane.xlu0 %327 }
 0x114   :  { %v337_v8 = vmul.f32 0.03125, %v331_v6  ;;  %v336_v9 = vmul.f32 0.03125, %v328_v7  ;;  %v343_v10 = vmul.f32 %v1003_v4, %v1003_v4  ;;  %v250_v11 = vmul.f32 %v1006_v5, %v1006_v5 }
 0x116   :  { %v1015_v12 = vsub.f32 %v906_v1, %v337_v8  ;;  %v1018_v13 = vsub.f32 %v915_v2, %v336_v9  ;;  %351 = vrot.lane.b32.xlu0 %v343_v10, %s847_s0  ;;  %261 = vrot.lane.b32.xlu1 %v250_v11, %s846_s18  ;;  %v1079_v8 = vld [vmem:[%s1206_s2] ss:$0 sm:$0xff] }
 0x117   :  { %v334_v16 = vpop.xlane.xlu0 %333  ;;  %v42_v18 = vpop.xlane.xlu1 %41 }
 0x118   :  { %v345_v14 = vmul.f32 %v1015_v12, %v1015_v12  ;;  %v344_v15 = vmul.f32 %v1018_v13, %v1018_v13  ;;  %v53_v19 = vmul.f32 0.03125, %v42_v18  ;;  %v338_v31 = vmul.f32 0.03125, %v334_v16  ;;  %v797_v16 = vld [vmem:[%s1207_s3 + $0x28] sm:$0xff]   ;;  %v799_v18 = vld [vmem:[%s1207_s3 + $0x18] sm:$0xff]  }
 0x11a   :  { %355 = vrot.lane.b32.xlu0 %v345_v14, %s847_s0  ;;  %353 = vrot.lane.b32.xlu1 %v344_v15, %s847_s0  ;;  %v1029_v21 = vsub.f32 %v901_v0, %v53_v19  ;;  %v1047_v32 = vsub.f32 %v920_v3, %v338_v31  ;;  %v795_v14 = vld [vmem:[%s1207_s3 + $0x38] sm:$0xff]   ;;  %v796_v15 = vld [vmem:[%s1207_s3 + $0x30] sm:$0xff]  }
 0x11b   :  { %v45_v17 = vpop.xlane.xlu0 %44  ;;  %v48_v33 = vpop.xlane.xlu1 %47  ;;  %764 = vmatprep.subr.bf16.mxu0 %v795_v14  ;;  %v800_v19 = vld [vmem:[%s1207_s3 + $0x10] sm:$0xff]  }
 0x11c   :  { %v54_v23 = vmul.f32 0.03125, %v45_v17  ;;  %v61_v25 = vmul.f32 %v1029_v21, %v1029_v21  ;;  %v55_v35 = vmul.f32 0.03125, %v48_v33  ;;  %765 = vmatpush3.bf16.msra.mxu0 %v795_v14  ;;  %v798_v17 = vld [vmem:[%s1207_s3 + $0x20] sm:$0xff]  }
 0x11d   :  { %766 = vmatprep.subr.bf16.mxu0 %v796_v15 }
 0x11e   :  { %v1037_v26 = vsub.f32 %v915_v2, %v54_v23  ;;  %v65_v27 = vsel %vm39_vm0, %v61_v25, 0.0  ;;  %v346_v2 = vmul.f32 %v1047_v32, %v1047_v32  ;;  %v1053_v36 = vsub.f32 %v906_v1, %v55_v35  ;;  %v1064_v1 = vld [vmem:[%s1205_s1] ss:$0 sm:$0xff] }
 0x11f   :  { %v51_v20 = vpop.xlane.xlu0 %50 }
 0x120   :  { %v56_v22 = vmul.f32 0.03125, %v51_v20  ;;  %v62_v0 = vmul.f32 %v1037_v26, %v1037_v26  ;;  %v63_v37 = vmul.f32 %v1053_v36, %v1053_v36  ;;  %767 = vmatpush3.bf16.msra.mxu0 %v796_v15  ;;  %v801_v20 = vld [vmem:[%s1207_s3 + $0x8] sm:$0xff]  }
 0x121   :  { %768 = vmatprep.subr.bf16.mxu0 %v797_v16 }
 0x122   :  { %v1032_v24 = vsub.f32 %v920_v3, %v56_v22  ;;  %v68_v30 = vsel %vm39_vm0, %v62_v0, 0.0  ;;  %v71_v38 = vsel %vm39_vm0, %v63_v37, 0.0  ;;  %v802_v22 = vld [vmem:[%s1207_s3] sm:$0xff]  }
 0x124   :  { %v64_v28 = vmul.f32 %v1032_v24, %v1032_v24  ;;  %769 = vmatpush3.bf16.msra.mxu0 %v797_v16 }
 0x125   :  { %770 = vmatprep.subr.bf16.mxu0 %v798_v17 }
 0x126   :  { %v74_v29 = vsel %vm39_vm0, %v64_v28, 0.0 }
 0x128   :  { %771 = vmatpush3.bf16.msra.mxu0 %v798_v17 }
 0x129   :  { %772 = vmatprep.subr.bf16.mxu0 %v799_v18 }
 0x12c   :  { %773 = vmatpush3.bf16.msra.mxu0 %v799_v18 }
 0x12d   :  { %774 = vmatprep.subr.bf16.mxu0 %v800_v19 }
 0x130   :  { %775 = vmatpush3.bf16.msra.mxu0 %v800_v19 }
 0x131   :  { %776 = vmatprep.subr.bf16.mxu0 %v801_v20 }
 0x134   :  { %777 = vmatpush3.bf16.msra.mxu0 %v801_v20 }
 0x135   :  { %778 = vmatprep.subr.bf16.mxu0 %v802_v22 }
 0x138   :  { %779 = vmatpush3.bf16.msra.mxu0 %v802_v22 }
 0x139   :  { %66 = vadd.xlane.f32.xlu0 %v65_v27 }
 0x13d   :  { %75 = vadd.xlane.f32.xlu0 %v74_v29 }
 0x13e   :  { %69 = vadd.xlane.f32.xlu1 %v68_v30 }
 0x14f   :  { %357 = vrot.lane.b32.xlu1 %v346_v2, %s847_s0 }
 0x173   :  { %72 = vadd.xlane.f32.xlu1 %v71_v38 }
 0x178   :  { %v160_v39 = vpop.permute.xlu1 %159 }
 0x179   :  { %v171_v3 = vsel %vm39_vm0, %v160_v39, 0.0 }
 0x17a   :  { %172 = vadd.xlane.f32.xlu0 %v171_v3 }
 0x17c   :  { %v162_v42 = vpop.permute.xlu0 %161  ;;  %v164_v43 = vpop.permute.xlu1 %163 }
 0x17d   :  { %v174_v44 = vsel %vm39_vm0, %v162_v42, 0.0  ;;  %v177_v59 = vsel %vm39_vm0, %v164_v43, 0.0 }
 0x17e   :  { %175 = vadd.xlane.f32.xlu0 %v174_v44 }
 0x180   :  { %v166_v45 = vpop.permute.xlu1 %165  ;;  %v256_v55 = vpop.permute.xlu0 %255 }
 0x181   :  { %v180_v46 = vsel %vm39_vm0, %v166_v45, 0.0  ;;  %v267_v60 = vsel %vm39_vm0, %v256_v55, 0.0 }
 0x182   :  { %181 = vadd.xlane.f32.xlu0 %v180_v46 }
 0x184   :  { %199 = vrot.lane.b32.xlu1 %v1064_v1, %s847_s0  ;;  %v258_v47 = vpop.permute.xlu1 %257  ;;  %v260_v58 = vpop.permute.xlu0 %259 }
 0x185   :  { %v270_v50 = vsel %vm39_vm0, %v258_v47, 0.0  ;;  %v273_v62 = vsel %vm39_vm0, %v260_v58, 0.0 }
 0x186   :  { %271 = vadd.xlane.f32.xlu0 %v270_v50 }
 0x188   :  { %v262_v51 = vpop.permute.xlu1 %261  ;;  %v352_v61 = vpop.permute.xlu0 %351 }
 0x189   :  { %v276_v52 = vsel %vm39_vm0, %v262_v51, 0.0  ;;  %v363_v63 = vsel %vm39_vm0, %v352_v61, 0.0 }
 0x18a   :  { %277 = vadd.xlane.f32.xlu0 %v276_v52 }
 0x18c   :  { %v354_v53 = vpop.permute.xlu1 %353  ;;  %v356_v6 = vpop.permute.xlu0 %355 }
 0x18d   :  { %v366_v54 = vsel %vm39_vm0, %v354_v53, 0.0  ;;  %v369_v7 = vsel %vm39_vm0, %v356_v6, 0.0 }
 0x18e   :  { %367 = vadd.xlane.f32.xlu0 %v366_v54 }
 0x1a8   :  { %178 = vadd.xlane.f32.xlu1 %v177_v59 }
 0x1ac   :  { %268 = vadd.xlane.f32.xlu1 %v267_v60 }
 0x1b0   :  { %274 = vadd.xlane.f32.xlu1 %v273_v62 }
 0x1b4   :  { %364 = vadd.xlane.f32.xlu1 %v363_v63 }
 0x1b8   :  { %370 = vadd.xlane.f32.xlu1 %v369_v7 }
 0x1c2   :  { %v67_v23 = vpop.xlane.xlu0 %66 }
 0x1c3   :  { %v77_v42 = vmul.f32 0.03125, %v67_v23 }
 0x1c5   :  { %v81_v50 = vadd.f32 1e-06, %v77_v42 }
 0x1c6   :  { %v76_v25 = vpop.xlane.xlu0 %75 }
 0x1c7   :  { %v70_v9 = vpop.xlane.xlu1 %69  ;;  %v80_v61 = vmul.f32 0.03125, %v76_v25 }
 0x1c8   :  { %v78_v37 = vmul.f32 0.03125, %v70_v9 }
 0x1c9   :  { %206 = vrot.lane.b32.xlu1 %v1079_v8, %s847_s0 }
 0x1ca   :  { %v82_v44 = vadd.f32 1e-06, %v78_v37 }
 0x1cb   :  { %v358_v10 = vpop.permute.xlu1 %357 }
 0x1cc   :  { %v372_v11 = vsel %vm39_vm0, %v358_v10, 0.0  ;;  %805 = vrsqrt.f32 %v82_v44 }
 0x1cd   :  { %373 = vadd.xlane.f32.xlu0 %v372_v11  ;;  %391 = vrot.lane.b32.xlu1 %v1064_v1, %s845_s13  ;;  %v84_v11 = vadd.f32 1e-06, %v80_v61 }
 0x1d1   :  { %398 = vrot.lane.b32.xlu1 %v1079_v8, %s845_s13 }
 0x1d9   :  { %v806_v18 = vpop.eup %805 }
 0x1e3   :  { %295 = vrot.lane.b32.xlu0 %v1064_v1, %s846_s18 }
 0x1e7   :  { %302 = vrot.lane.b32.xlu0 %v1079_v8, %s846_s18 }
 0x1fc   :  { %v73_v28 = vpop.xlane.xlu1 %72 }
 0x1fd   :  { %v79_v63 = vmul.f32 0.03125, %v73_v28 }
 0x1ff   :  { %v83_v15 = vadd.f32 1e-06, %v79_v63 }
 0x200   :  { %v1116_v29 = vpop.permute.xlu1 %199 }
 0x203   :  { %v173_v27 = vpop.xlane.xlu0 %172 }
 0x204   :  { %v183_v38 = vmul.f32 0.03125, %v173_v27 }
 0x206   :  { %v187_v46 = vadd.f32 1e-06, %v183_v38 }
 0x207   :  { %v176_v0 = vpop.xlane.xlu0 %175 }
 0x208   :  { %v184_v3 = vmul.f32 0.03125, %v176_v0  ;;  %807 = vrsqrt.f32 %v187_v46 }
 0x20a   :  { %v188_v47 = vadd.f32 1e-06, %v184_v3 }
 0x20b   :  { %v182_v30 = vpop.xlane.xlu0 %181 }
 0x20c   :  { %809 = vrsqrt.f32 %v188_v47  ;;  %v186_v6 = vmul.f32 0.03125, %v182_v30 }
 0x20d   :  { %811 = vrsqrt.f32 %v81_v50 }
 0x20e   :  { %v190_v17 = vadd.f32 1e-06, %v186_v6 }
 0x20f   :  { %v272_v2 = vpop.xlane.xlu0 %271 }
 0x210   :  { %v280_v52 = vmul.f32 0.03125, %v272_v2  ;;  %v90_v2 = vmul.f32 %v806_v18, %v1037_v26 }
 0x212   :  { %v284_v58 = vadd.f32 1e-06, %v280_v52 }
 0x213   :  { %v278_v39 = vpop.xlane.xlu0 %277 }
 0x214   :  { %v282_v9 = vmul.f32 0.03125, %v278_v39 }
 0x215   :  { %v808_v20 = vpop.eup %807 }
 0x216   :  { %v286_v19 = vadd.f32 1e-06, %v282_v9  ;;  %v195_v30 = vmul.f32 %v808_v20, %v963_v34 }
 0x217   :  { %v368_v51 = vpop.xlane.xlu0 %367 }
 0x218   :  { %v376_v55 = vmul.f32 0.03125, %v368_v51 }
 0x219   :  { %v810_v23 = vpop.eup %809 }
 0x21a   :  { %v380_v62 = vadd.f32 1e-06, %v376_v55  ;;  %v812_v28 = vpop.eup %811 }
 0x21b   :  { %v89_v37 = vmul.f32 %v812_v28, %v1029_v21 }
 0x21d   :  { %v99_v47 = vmul.f32 %v1064_v1, %v89_v37 }
 0x21f   :  { %v109_v9 = vadd.f32 %v1079_v8, %v99_v47 }
 0x231   :  { %v179_v31 = vpop.xlane.xlu1 %178 }
 0x232   :  { %v185_v59 = vmul.f32 0.03125, %v179_v31  ;;  %v196_v31 = vmul.f32 %v810_v23, %v968_v40  ;;  %v100_v40 = vmul.f32 %v1064_v1, %v90_v2 }
 0x234   :  { %v189_v10 = vadd.f32 1e-06, %v185_v59  ;;  %v203_v34 = vmul.f32 %v1116_v29, %v196_v31 }
 0x235   :  { %v269_v33 = vpop.xlane.xlu1 %268 }
 0x236   :  { %v279_v54 = vmul.f32 0.03125, %v269_v33 }
 0x238   :  { %v283_v60 = vadd.f32 1e-06, %v279_v54  ;;  %v110_v54 = vadd.f32 %v1079_v8, %v100_v40 }
 0x239   :  { %v275_v35 = vpop.xlane.xlu1 %274 }
 0x23a   :  { %v281_v14 = vmul.f32 0.03125, %v275_v35 }
 0x23c   :  { %v285_v22 = vadd.f32 1e-06, %v281_v14 }
 0x23d   :  { %v365_v43 = vpop.xlane.xlu1 %364 }
 0x23e   :  { %v375_v45 = vmul.f32 0.03125, %v365_v43  ;;  %v202_v43 = vmul.f32 %v1116_v29, %v195_v30 }
 0x240   :  { %v379_v53 = vadd.f32 1e-06, %v375_v45 }
 0x241   :  { %v371_v7 = vpop.xlane.xlu1 %370 }
 0x242   :  { %813 = vrsqrt.f32 %v379_v53  ;;  %v377_v16 = vmul.f32 0.03125, %v371_v7 }
 0x243   :  { %815 = vrsqrt.f32 %v284_v58 }
 0x244   :  { %817 = vrsqrt.f32 %v283_v60  ;;  %v381_v25 = vadd.f32 1e-06, %v377_v16 }
 0x245   :  { %819 = vrsqrt.f32 %v380_v62  ;;  %v1118_v27 = vpop.permute.xlu1 %206 }
 0x246   :  { %821 = vrsqrt.f32 %v189_v10  ;;  %v209_v26 = vadd.f32 %v1118_v27, %v202_v43 }
 0x247   :  { %823 = vrsqrt.f32 %v84_v11 }
 0x248   :  { %825 = vrsqrt.f32 %v83_v15  ;;  %v113_v15 = vpack.c.bf16 %v110_v54, %v109_v9 }
 0x249   :  { %827 = vrsqrt.f32 %v190_v17  ;;  %v1125_v39 = vpop.permute.xlu1 %391 }
 0x24a   :  { %829 = vrsqrt.f32 %v286_v19 }
 0x24b   :  { %831 = vrsqrt.f32 %v285_v22 }
 0x24c   :  { %833 = vrsqrt.f32 %v381_v25 }
 0x24d   :  { %v399_v58 = vpop.permute.xlu1 %398 }
 0x24f   :  { %v814_v0 = vpop.eup %813 }
 0x250   :  { %v387_v33 = vmul.f32 %v814_v0, %v1003_v4  ;;  %v816_v38 = vpop.eup %815  ;;  %v210_v4 = vadd.f32 %v1118_v27, %v203_v34 }
 0x251   :  { %v818_v42 = vpop.eup %817  ;;  %v292_v50 = vmul.f32 %v816_v38, %v994_v57 }
 0x252   :  { %v820_v44 = vpop.eup %819  ;;  %v394_v46 = vmul.f32 %v1125_v39, %v387_v33  ;;  %v291_v51 = vmul.f32 %v818_v42, %v979_v48  ;;  %v213_v62 = vpack.c.bf16 %v210_v4, %v209_v26 }
 0x253   :  { %v822_v52 = vpop.eup %821  ;;  %v388_v53 = vmul.f32 %v820_v44, %v1018_v13 }
 0x254   :  { %v824_v55 = vpop.eup %823  ;;  %v401_v6 = vadd.f32 %v399_v58, %v394_v46  ;;  %v197_v48 = vmul.f32 %v822_v52, %v971_v41  ;;  %v409_v22 = vsel %vm39_vm0, %v113_v15, %v213_v62 }
 0x255   :  { %v826_v61 = vpop.eup %825  ;;  %v395_v63 = vmul.f32 %v1125_v39, %v388_v53  ;;  %v92_v23 = vmul.f32 %v824_v55, %v1032_v24 }
 0x256   :  { %v374_v35 = vpop.xlane.xlu0 %373  ;;  %v828_v57 = vpop.eup %827  ;;  %v91_v17 = vmul.f32 %v826_v61, %v1053_v36  ;;  %v204_v41 = vmul.f32 %v1116_v29, %v197_v48 }
 0x257   :  { %v378_v3 = vmul.f32 0.03125, %v374_v35  ;;  %v830_v13 = vpop.eup %829  ;;  %v402_v14 = vadd.f32 %v399_v58, %v395_v63  ;;  %v198_v25 = vmul.f32 %v828_v57, %v982_v49  ;;  %v102_v37 = vmul.f32 %v1064_v1, %v92_v23 }
 0x258   :  { %v832_v16 = vpop.eup %831  ;;  %v294_v0 = vmul.f32 %v830_v13, %v1006_v5  ;;  %v101_v2 = vmul.f32 %v1064_v1, %v91_v17  ;;  %v211_v49 = vadd.f32 %v1118_v27, %v204_v41  ;;  %v804_v41 = vld [vmem:[%s1209_s7] sm:$0xff]  }
 0x259   :  { %v382_v45 = vadd.f32 1e-06, %v378_v3  ;;  %v834_v19 = vpop.eup %833  ;;  %v405_v20 = vpack.c.bf16 %v402_v14, %v401_v6  ;;  %v293_v30 = vmul.f32 %v832_v16, %v991_v56  ;;  %v205_v24 = vmul.f32 %v1116_v29, %v198_v25  ;;  %v803_v25 = vld [vmem:[%s1209_s7 + $0x8] sm:$0xff]  }
 0x25a   :  { %v296_v21 = vpop.permute.xlu0 %295  ;;  %v389_v31 = vmul.f32 %v834_v19, %v1015_v12  ;;  %v111_v12 = vadd.f32 %v1079_v8, %v101_v2  ;;  %v112_v40 = vadd.f32 %v1079_v8, %v102_v37  ;;  %784 = vmatprep.subr.bf16.mxu1 %v803_v25 }
 0x25b   :  { %835 = vrsqrt.f32 %v382_v45  ;;  %v298_v59 = vmul.f32 %v296_v21, %v291_v51  ;;  %v299_v60 = vmul.f32 %v296_v21, %v292_v50  ;;  %v300_v33 = vmul.f32 %v296_v21, %v293_v30  ;;  %785 = vmatpush3.bf16.msra.mxu1 %v803_v25 }
 0x25c   :  { %v301_v35 = vmul.f32 %v296_v21, %v294_v0  ;;  %v212_v56 = vadd.f32 %v1118_v27, %v205_v24  ;;  %v396_v42 = vmul.f32 %v1125_v39, %v389_v31  ;;  %v114_v26 = vpack.c.bf16 %v112_v40, %v111_v12  ;;  %786 = vmatprep.subr.bf16.mxu1 %v804_v41 }
 0x25e   :  { %v303_v7 = vpop.permute.xlu0 %302  ;;  %v214_v34 = vpack.c.bf16 %v212_v56, %v211_v49  ;;  %v403_v45 = vadd.f32 %v399_v58, %v396_v42  ;;  %v735_v56 = vld [vmem:[%s1210_s5] ss:$0 sm:$0xff] }
 0x25f   :  { %v305_v10 = vadd.f32 %v303_v7, %v298_v59  ;;  %v306_v11 = vadd.f32 %v303_v7, %v299_v60  ;;  %v307_v3 = vadd.f32 %v303_v7, %v300_v33  ;;  %v308_v5 = vadd.f32 %v303_v7, %v301_v35  ;;  %787 = vmatpush3.bf16.msra.mxu1 %v804_v41 }
 0x260   :  { %v412_v46 = vsel %vm39_vm0, %v114_v26, %v214_v34 }
 0x261   :  { %v309_v18 = vpack.c.bf16 %v306_v11, %v305_v10  ;;  %v310_v44 = vpack.c.bf16 %v308_v5, %v307_v3 }
 0x263   :  { %v415_v28 = vsel %vm413_vm1, %v409_v22, %v309_v18  ;;  %v417_v27 = vsel %vm413_vm1, %v412_v46, %v310_v44 }
 0x264   :  { %v420_v36 = vsel %vm418_vm2, %v415_v28, %v405_v20 }
 0x265   :  { %780 = vmatprep.mubr.bf16.mxu0 %v420_v36 }
 0x268   :  { %v836_v38 = vpop.eup %835 }
 0x269   :  { %v390_v43 = vmul.f32 %v836_v38, %v1047_v32  ;;  %v726_v32 = vld [vmem:[%s1208_s4] ss:$0 sm:$0xff] }
 0x26b   :  { %v397_v29 = vmul.f32 %v1125_v39, %v390_v43 }
 0x26d   :  { %v404_v1 = vadd.f32 %v399_v58, %v397_v29  ;;  %v736_v29 = vld [vmem:[%s1211_s6] ss:$0 sm:$0xff] }
 0x26f   :  { %v406_v4 = vpack.c.bf16 %v404_v1, %v403_v45 }
 0x271   :  { %v423_v21 = vsel %vm418_vm2, %v417_v27, %v406_v4 }
 0x272   :  { %781 = vmatmul.mubr.bf16.vlgmr.msra.gmra.mxu0 %v423_v21 }
 0x332   :  { %v782_v47 = vpop.f32.mrf.mxu0 }
 0x333   :  { %v539_v51 = vadd.f32 %v782_v47, %v726_v32 }
 0x334   :  { %v530_v8 = vpop.f32.mrf.mxu0 }
 0x335   :  { %v531_v50 = vadd.f32 %v726_v32, %v530_v8  ;;  %v551_v59 = vsel %vm39_vm0, %v539_v51, 0.0 }
 0x336   :  { %v783_v39 = vpop.f32.mrf.mxu0 }
 0x337   :  { %v545_v52 = vsel %vm39_vm0, %v531_v50, 0.0  ;;  %v542_v55 = vadd.f32 %v783_v39, %v726_v32 }
 0x338   :  { %v533_v53 = vpop.f32.mrf.mxu0  ;;  %546 = vadd.xlane.f32.xlu0 %v545_v52 }
 0x339   :  { %v534_v54 = vadd.f32 %v726_v32, %v533_v53  ;;  %v554_v60 = vsel %vm39_vm0, %v542_v55, 0.0 }
 0x33b   :  { %v548_v58 = vsel %vm39_vm0, %v534_v54, 0.0 }
 0x33c   :  { %549 = vadd.xlane.f32.xlu1 %v548_v58  ;;  %552 = vadd.xlane.f32.xlu0 %v551_v59 }
 0x340   :  { %555 = vadd.xlane.f32.xlu0 %v554_v60 }
 0x3c1   :  { %v547_v61 = vpop.xlane.xlu0 %546 }
 0x3c2   :  { %v557_v62 = vmul.f32 0.03125, %v547_v61 }
 0x3c4   :  { %v561_v63 = vsub.f32 %v531_v50, %v557_v62  ;;  %v737_v50 = vld [vmem:[%s1212_s8] ss:$0 sm:$0xff] }
 0x3c5   :  { %v550_v6 = vpop.xlane.xlu1 %549  ;;  %v553_v7 = vpop.xlane.xlu0 %552 }
 0x3c6   :  { %v558_v9 = vmul.f32 0.03125, %v550_v6  ;;  %v559_v57 = vmul.f32 0.03125, %v553_v7  ;;  %v565_v48 = vmul.f32 %v561_v63, %v561_v63 }
 0x3c8   :  { %v562_v10 = vsub.f32 %v534_v54, %v558_v9  ;;  %v563_v11 = vsub.f32 %v539_v51, %v559_v57  ;;  %v569_v13 = vsel %vm39_vm0, %v565_v48, 0.0 }
 0x3c9   :  { %570 = vadd.xlane.f32.xlu1 %v569_v13  ;;  %v556_v14 = vpop.xlane.xlu0 %555 }
 0x3ca   :  { %v560_v15 = vmul.f32 0.03125, %v556_v14  ;;  %v566_v16 = vmul.f32 %v562_v10, %v562_v10  ;;  %v567_v17 = vmul.f32 %v563_v11, %v563_v11 }
 0x3cc   :  { %v564_v18 = vsub.f32 %v542_v55, %v560_v15  ;;  %v572_v19 = vsel %vm39_vm0, %v566_v16, 0.0  ;;  %v575_v20 = vsel %vm39_vm0, %v567_v17, 0.0 }
 0x3cd   :  { %573 = vadd.xlane.f32.xlu0 %v572_v19  ;;  %576 = vadd.xlane.f32.xlu1 %v575_v20 }
 0x3ce   :  { %v568_v22 = vmul.f32 %v564_v18, %v564_v18 }
 0x3d0   :  { %v578_v23 = vsel %vm39_vm0, %v568_v22, 0.0 }
 0x3d1   :  { %579 = vadd.xlane.f32.xlu0 %v578_v23 }
 0x452   :  { %v571_v28 = vpop.xlane.xlu1 %570 }
 0x453   :  { %v581_v0 = vmul.f32 0.03125, %v571_v28 }
 0x455   :  { %v585_v30 = vadd.f32 1e-05, %v581_v0 }
 0x456   :  { %v577_v36 = vpop.xlane.xlu1 %576  ;;  %v574_v31 = vpop.xlane.xlu0 %573 }
 0x457   :  { %837 = vrsqrt.f32 %v585_v30  ;;  %v583_v2 = vmul.f32 0.03125, %v577_v36  ;;  %v582_v33 = vmul.f32 0.03125, %v574_v31 }
 0x459   :  { %v587_v35 = vadd.f32 1e-05, %v583_v2  ;;  %v586_v24 = vadd.f32 1e-05, %v582_v33 }
 0x45a   :  { %v580_v49 = vpop.xlane.xlu0 %579 }
 0x45b   :  { %839 = vrsqrt.f32 %v587_v35  ;;  %v584_v37 = vmul.f32 0.03125, %v580_v49 }
 0x45c   :  { %841 = vrsqrt.f32 %v586_v24 }
 0x45d   :  { %v588_v38 = vadd.f32 1e-05, %v584_v37 }
 0x45f   :  { %843 = vrsqrt.f32 %v588_v38 }
 0x464   :  { %v838_v3 = vpop.eup %837 }
 0x465   :  { %v593_v5 = vmul.f32 %v838_v3, %v561_v63 }
 0x467   :  { %v604_v40 = vmul.f32 %v735_v56, %v593_v5 }
 0x468   :  { %v840_v42 = vpop.eup %839 }
 0x469   :  { %v842_v12 = vpop.eup %841  ;;  %v595_v43 = vmul.f32 %v840_v42, %v563_v11  ;;  %v615_v4 = vadd.f32 %v736_v29, %v604_v40 }
 0x46a   :  { %v594_v34 = vmul.f32 %v842_v12, %v562_v10 }
 0x46b   :  { %v606_v1 = vmul.f32 %v735_v56, %v595_v43 }
 0x46c   :  { %v844_v44 = vpop.eup %843  ;;  %v605_v45 = vmul.f32 %v735_v56, %v594_v34 }
 0x46d   :  { %v596_v26 = vmul.f32 %v844_v44, %v564_v18  ;;  %v617_v47 = vadd.f32 %v736_v29, %v606_v1 }
 0x46e   :  { %v616_v46 = vadd.f32 %v736_v29, %v605_v45 }
 0x46f   :  { %v607_v27 = vmul.f32 %v735_v56, %v596_v26 }
 0x470   :  { %v619_v21 = vpack.c.bf16 %v616_v46, %v615_v4 }
 0x471   :  { %v618_v32 = vadd.f32 %v736_v29, %v607_v27 }
 0x472   :  { %788 = vmatprep.mubr.msk.bf16.mxu1 %vm39_vm0, %v619_v21 }
 0x473   :  { %v620_v8 = vpack.c.bf16 %v618_v32, %v617_v47 }
 0x475   :  { %789 = vmatmul.mubr.msk.bf16.vlgmr.msra.gmra.mxu1 %vm39_vm0, %v620_v8 }
 0x535   :  { %v790_v39 = vpop.f32.mrf.mxu1 }
 0x536   :  { %v693_v51 = vadd.f32 %v790_v39, %v737_v50 }
 0x537   :  { %v684_v52 = vpop.f32.mrf.mxu1 }
 0x538   :  { %v748_v53 = vpack.c.bf16 %v693_v51, %v693_v51  ;;  %v685_v54 = vadd.f32 %v737_v50, %v684_v52 }
 0x539   :  { %v791_v55 = vpop.f32.mrf.mxu1 }
 0x53a   :  { %718 = vst.msk [vmem:[%s1213_s9 + $0x8] sm:$0xf] %vm715_vm3, %v748_v53  ;;  %v746_v58 = vpack.c.bf16 %v685_v54, %v685_v54  ;;  %v696_v59 = vadd.f32 %v791_v55, %v737_v50 }
 0x53b   :  { %v687_v60 = vpop.f32.mrf.mxu1 }
 0x53c   :  { %716 = vst.msk [vmem:[%s1213_s9] sm:$0xf] %vm715_vm3, %v746_v58  ;;  %v749_v61 = vpack.c.bf16 %v696_v59, %v696_v59  ;;  %v688_v62 = vadd.f32 %v737_v50, %v687_v60 }
 0x53e   :  { %719 = vst.msk [vmem:[%s1213_s9 + $0xc] sm:$0xf] %vm715_vm3, %v749_v61  ;;  %v747_v63 = vpack.c.bf16 %v688_v62, %v688_v62 }
 0x540   :  { %717 = vst.msk [vmem:[%s1213_s9 + $0x4] sm:$0xf] %vm715_vm3, %v747_v63 }

// kernel: block_forward.11
= control target key start
LH: loop header
LB: loop body
LE: loop exit
PB: predicated region body
PF: predicated region fallthrough
CT: control target
= control target key end

     0   :  { %vm113_vm0 = vcmask 523264   ;;  %vm267_vm1 = vcmask 261120   ;;  %s567_s1 = inlined_call_operand.vmem [shape: bf16[64,32], index: 1, kind: input, shape index: {}]   ;;  %s568_s0 = inlined_call_operand.vmem [shape: bf16[128,64], index: 0, kind: input, shape index: {}]   ;;  %s569_s2 = inlined_call_operand.vmem [shape: f32[1,32], index: 2, kind: input, shape index: {}]   ;;  %s570_s3 = inlined_call_operand.vmem [shape: f32[128,32], index: 3, kind: input, shape index: {}]   ;;  %s571_s4 = inlined_call_operand.vmem [shape: f32[128,32], index: 4, kind: output, shape index: {}]  }
   0x1   :  { %v353_v0 = vld [vmem:[%s567_s1 + $0x18] sm:$0xff]   ;;  %v354_v1 = vld [vmem:[%s567_s1 + $0x10] sm:$0xff]   ;;  %v355_v2 = vld [vmem:[%s567_s1 + $0x8] sm:$0xff]  }
   0x2   :  { %321 = vmatprep.subr.bf16.mxu0 %v353_v0  ;;  %345 = vmatprep.subr.bf16.mxu1 %v353_v0  ;;  %v357_v3 = vld [vmem:[%s568_s0] sm:$0xff]   ;;  %v359_v6 = vld [vmem:[%s568_s0 + $0x8] sm:$0xff]   ;;  %v361_v8 = vld [vmem:[%s568_s0 + $0x10] sm:$0xff]  }
   0x3   :  { %322 = vmatpush3.bf16.msra.mxu0 %v353_v0  ;;  %349 = vmatpush3.bf16.msra.mxu1 %v353_v0  ;;  %v358_v4 = vld [vmem:[%s568_s0 + $0x20] sm:$0xff]   ;;  %v360_v7 = vld [vmem:[%s568_s0 + $0x28] sm:$0xff]   ;;  %v362_v9 = vld [vmem:[%s568_s0 + $0x30] sm:$0xff]  }
   0x4   :  { %323 = vmatprep.subr.bf16.mxu0 %v354_v1  ;;  %346 = vmatprep.subr.bf16.mxu1 %v354_v1  ;;  %v356_v5 = vld [vmem:[%s567_s1] sm:$0xff]   ;;  %v363_v10 = vld [vmem:[%s568_s0 + $0x18] sm:$0xff]   ;;  %v237_v14 = vld [vmem:[%s570_s3 + $0x10] sm:$0xff] }
   0x5   :  { %329 = vmatprep.mubr.msk.bf16.mxu0 %vm113_vm0, %v357_v3  ;;  %337 = vmatprep.mubr.msk.bf16.mxu1 %vm113_vm0, %v358_v4  ;;  %v364_v11 = vld [vmem:[%s568_s0 + $0x38] sm:$0xff]   ;;  %v437_v12 = vld [vmem:[%s569_s2] ss:$0 sm:$0xff]  ;;  %v245_v16 = vld [vmem:[%s570_s3 + $0x50] sm:$0xff] }
   0x6   :  { %v235_v20 = vld [vmem:[%s570_s3] sm:$0xff]  ;;  %v238_v28 = vld [vmem:[%s570_s3 + $0x18] sm:$0xff]  ;;  %v236_v36 = vld [vmem:[%s570_s3 + $0x8] sm:$0xff] }
   0x7   :  { %324 = vmatpush3.bf16.msra.mxu0 %v354_v1  ;;  %350 = vmatpush3.bf16.msra.mxu1 %v354_v1  ;;  %v243_v22 = vld [vmem:[%s570_s3 + $0x40] sm:$0xff]  ;;  %v246_v30 = vld [vmem:[%s570_s3 + $0x58] sm:$0xff]  ;;  %v244_v38 = vld [vmem:[%s570_s3 + $0x48] sm:$0xff] }
   0x8   :  { %325 = vmatprep.subr.bf16.mxu0 %v355_v2  ;;  %347 = vmatprep.subr.bf16.mxu1 %v355_v2  ;;  %v241_v44 = vld [vmem:[%s570_s3 + $0x30] sm:$0xff]  ;;  %v239_v52 = vld [vmem:[%s570_s3 + $0x20] sm:$0xff]  ;;  %v242_v60 = vld [vmem:[%s570_s3 + $0x38] sm:$0xff] }
   0x9   :  { %v249_v46 = vld [vmem:[%s570_s3 + $0x70] sm:$0xff]  ;;  %v247_v54 = vld [vmem:[%s570_s3 + $0x60] sm:$0xff]  ;;  %v250_v62 = vld [vmem:[%s570_s3 + $0x78] sm:$0xff] }
   0xa   :  { %v240_v4 = vld [vmem:[%s570_s3 + $0x28] sm:$0xff] }
   0xb   :  { %326 = vmatpush3.bf16.msra.mxu0 %v355_v2  ;;  %351 = vmatpush3.bf16.msra.mxu1 %v355_v2 }
   0xc   :  { %327 = vmatprep.subr.bf16.mxu0 %v356_v5  ;;  %348 = vmatprep.subr.bf16.mxu1 %v356_v5 }
   0xf   :  { %328 = vmatpush3.bf16.msra.mxu0 %v356_v5  ;;  %352 = vmatpush3.bf16.msra.mxu1 %v356_v5 }
  0x12   :  { %330 = vmatmul.mubr.msk.bf16.vlgmr.msra.gmra.mxu0 %vm113_vm0, %v359_v6  ;;  %338 = vmatmul.mubr.msk.bf16.vlgmr.msra.gmra.mxu1 %vm113_vm0, %v360_v7  ;;  %v248_v6 = vld [vmem:[%s570_s3 + $0x68] sm:$0xff] }
  0x13   :  { %333 = vmatprep.mubr.msk.bf16.mxu0 %vm113_vm0, %v361_v8  ;;  %341 = vmatprep.mubr.msk.bf16.mxu1 %vm113_vm0, %v362_v9 }
  0x1a   :  { %334 = vmatmul.mubr.msk.bf16.gmra.mxu0 %vm113_vm0, %v363_v10  ;;  %342 = vmatmul.mubr.msk.bf16.gmra.mxu1 %vm113_vm0, %v364_v11 }
  0xd2   :  { %v331_v13 = vpop.f32.mrf.mxu0  ;;  %v339_v15 = vpop.f32.mrf.mxu1 }
  0xd3   :  { %v181_v17 = vadd.f32 %v331_v13, %v437_v12  ;;  %v213_v18 = vadd.f32 %v339_v15, %v437_v12 }
  0xd4   :  { %v172_v19 = vpop.f32.mrf.mxu0  ;;  %v204_v21 = vpop.f32.mrf.mxu1 }
  0xd5   :  { %v253_v23 = vadd.f32 %v237_v14, %v181_v17  ;;  %v261_v24 = vadd.f32 %v245_v16, %v213_v18  ;;  %v173_v25 = vadd.f32 %v437_v12, %v172_v19  ;;  %v205_v26 = vadd.f32 %v437_v12, %v204_v21 }
  0xd6   :  { %v332_v27 = vpop.f32.mrf.mxu0  ;;  %v340_v29 = vpop.f32.mrf.mxu1 }
  0xd7   :  { %270 = vst.msk [vmem:[%s571_s4 + $0x10] sm:$0xff] %vm267_vm1, %v253_v23  ;;  %278 = vst.msk [vmem:[%s571_s4 + $0x50] sm:$0xff] %vm267_vm1, %v261_v24  ;;  %v251_v31 = vadd.f32 %v235_v20, %v173_v25  ;;  %v259_v32 = vadd.f32 %v243_v22, %v205_v26  ;;  %v184_v33 = vadd.f32 %v332_v27, %v437_v12 }
  0xd8   :  { %v216_v34 = vadd.f32 %v340_v29, %v437_v12  ;;  %v175_v35 = vpop.f32.mrf.mxu0  ;;  %v207_v37 = vpop.f32.mrf.mxu1 }
  0xd9   :  { %268 = vst.msk [vmem:[%s571_s4] sm:$0xff] %vm267_vm1, %v251_v31  ;;  %276 = vst.msk [vmem:[%s571_s4 + $0x40] sm:$0xff] %vm267_vm1, %v259_v32  ;;  %v254_v39 = vadd.f32 %v238_v28, %v184_v33  ;;  %v176_v41 = vadd.f32 %v437_v12, %v175_v35  ;;  %v208_v42 = vadd.f32 %v437_v12, %v207_v37 }
  0xda   :  { %v262_v40 = vadd.f32 %v246_v30, %v216_v34  ;;  %v335_v43 = vpop.f32.mrf.mxu0  ;;  %v343_v45 = vpop.f32.mrf.mxu1 }
  0xdb   :  { %271 = vst.msk [vmem:[%s571_s4 + $0x18] sm:$0xff] %vm267_vm1, %v254_v39  ;;  %v252_v47 = vadd.f32 %v236_v36, %v176_v41  ;;  %v260_v48 = vadd.f32 %v244_v38, %v208_v42  ;;  %v197_v49 = vadd.f32 %v335_v43, %v437_v12  ;;  %v229_v50 = vadd.f32 %v343_v45, %v437_v12 }
  0xdc   :  { %279 = vst.msk [vmem:[%s571_s4 + $0x58] sm:$0xff] %vm267_vm1, %v262_v40  ;;  %v188_v51 = vpop.f32.mrf.mxu0  ;;  %v220_v53 = vpop.f32.mrf.mxu1 }
  0xdd   :  { %269 = vst.msk [vmem:[%s571_s4 + $0x8] sm:$0xff] %vm267_vm1, %v252_v47  ;;  %277 = vst.msk [vmem:[%s571_s4 + $0x48] sm:$0xff] %vm267_vm1, %v260_v48  ;;  %v257_v55 = vadd.f32 %v241_v44, %v197_v49  ;;  %v265_v56 = vadd.f32 %v249_v46, %v229_v50  ;;  %v189_v57 = vadd.f32 %v437_v12, %v188_v51 }
  0xde   :  { %v221_v58 = vadd.f32 %v437_v12, %v220_v53  ;;  %v336_v59 = vpop.f32.mrf.mxu0  ;;  %v344_v61 = vpop.f32.mrf.mxu1 }
  0xdf   :  { %274 = vst.msk [vmem:[%s571_s4 + $0x30] sm:$0xff] %vm267_vm1, %v257_v55  ;;  %282 = vst.msk [vmem:[%s571_s4 + $0x70] sm:$0xff] %vm267_vm1, %v265_v56  ;;  %v255_v63 = vadd.f32 %v239_v52, %v189_v57  ;;  %v200_v1 = vadd.f32 %v336_v59, %v437_v12  ;;  %v232_v2 = vadd.f32 %v344_v61, %v437_v12 }
  0xe0   :  { %v263_v0 = vadd.f32 %v247_v54, %v221_v58  ;;  %v191_v3 = vpop.f32.mrf.mxu0  ;;  %v223_v5 = vpop.f32.mrf.mxu1 }
  0xe1   :  { %272 = vst.msk [vmem:[%s571_s4 + $0x20] sm:$0xff] %vm267_vm1, %v255_v63  ;;  %v258_v7 = vadd.f32 %v242_v60, %v200_v1  ;;  %v266_v8 = vadd.f32 %v250_v62, %v232_v2  ;;  %v192_v9 = vadd.f32 %v437_v12, %v191_v3  ;;  %v224_v10 = vadd.f32 %v437_v12, %v223_v5 }
  0xe2   :  { %280 = vst.msk [vmem:[%s571_s4 + $0x60] sm:$0xff] %vm267_vm1, %v263_v0 }
  0xe3   :  { %275 = vst.msk [vmem:[%s571_s4 + $0x38] sm:$0xff] %vm267_vm1, %v258_v7  ;;  %283 = vst.msk [vmem:[%s571_s4 + $0x78] sm:$0xff] %vm267_vm1, %v266_v8  ;;  %v256_v11 = vadd.f32 %v240_v4, %v192_v9  ;;  %v264_v13 = vadd.f32 %v248_v6, %v224_v10 }
  0xe5   :  { %273 = vst.msk [vmem:[%s571_s4 + $0x28] sm:$0xff] %vm267_vm1, %v256_v11  ;;  %281 = vst.msk [vmem:[%s571_s4 + $0x68] sm:$0xff] %vm267_vm1, %v264_v13 }

// kernel: block_forward.10
= control target key start
LH: loop header
LB: loop body
LE: loop exit
PB: predicated region body
PF: predicated region fallthrough
CT: control target
= control target key end

     0   :  { %s1011_s12 = smov 0   ;;  %s1013_s13 = smov 0   ;;  %s1400_s0 = inlined_call_operand.vmem [shape: bf16[2,8,8,64], index: 0, kind: input, shape index: {}]   ;;  %s1401_s1 = inlined_call_operand.vmem [shape: f32[9,64], index: 1, kind: input, shape index: {}]   ;;  %s1402_s2 = inlined_call_operand.vmem [shape: f32[1,64], index: 2, kind: input, shape index: {}]   ;;  %s1403_s3 = inlined_call_operand.vmem [shape: bf16[2,8,8,64], index: 3, kind: output, shape index: {}]  }
   0x1   :  { %s1015_s14 = smov 0  }
   0x2 LB: > { %s25_s15 = sadd.s32 1, %s984_s13  ;;  %p863_p0 = scmp.ge.s32.totalorder %s988_s14, 1  ;;  %s988_s14 = sphi %s1015_s14, %s13_s14   ;;  %s984_s13 = sphi %s1013_s13, %s1405_s13   ;;  %s980_s12 = sphi %s1011_s12, %s1404_s12  }
   0x3   : > { %p27_p1 = scmp.ge.s32.totalorder %s25_s15, 2  ;;  %p173_p2 = scmp.lt.s32.totalorder %s988_s14, 3 }
   0x5   : > { %s1407_s15 = smov (%p27_p1, %s25_s15), 0  ;;  %p174_p3 = pnand %p863_p0, %p173_p2 }
   0x6   : > { %p210_p4 = scmp.lt.s32.totalorder (!%p174_p3), %s980_s12, 1 }
   0x7   : > { %177 = sbr.rel (%p174_p3) target bundleno = 158 (0x9e), region = 32 }
   0xc   : > { %vm233_vm0 = vcmask 523264   ;;  %v272_v0 = vlaneseq  ;;  %v990_v1 = vmov 0.0   ;;  %s1409_s12 = smov (!%p210_p4, %s980_s12), 1  ;;  %v1038_v3 = vld [vmem:[%s1401_s1] sm:$0xff]  ;;  %vm737_vm4 = vcmask 519168  }
   0xd   : > { %234 = vst.msk [vmem:[#allocation2] sm:$0xff] %vm233_vm0, %v990_v1  ;;  %236 = vst.msk [vmem:[#allocation2 + $0x48] sm:$0xff] %vm233_vm0, %v990_v1  ;;  %s888_s18 = sshll.u32 %s1409_s12, 5 }
   0xe   : > { %v1033_v2 = vshrl.u32 %v272_v0, 7  ;;  %s217_s21 = scalar_lea.vmem %s1400_s0, %s888_s18  ;;  %s1348_s28 = scalar_lea.vmem %s1403_s3, %s888_s18 }
   0xf   : > { %v891_v6 = vld [vmem:[%s217_s21] sm:$0xff]   ;;  %v906_v7 = vld [vmem:[%s217_s21 + $0x8] sm:$0xff]   ;;  %v907_v8 = vld [vmem:[%s217_s21 + $0x10] sm:$0xff]  }
  0x10   : > { %v320_v4 = vsub.s32 0, %v1033_v2  ;;  %v340_v5 = vsub.s32 1, %v1033_v2  ;;  %vm274_vm1 = vcmp.ge.s32.totalorder %v1033_v2, 1  ;;  %v360_v11 = vsub.s32 2, %v1033_v2  ;;  %v908_v16 = vld [vmem:[%s217_s21 + $0x18] sm:$0xff]  }
  0x11   : > { %v892_v12 = vunpack.c.l.bf16 %v891_v6  ;;  %v893_v13 = vunpack.c.h.bf16 %v891_v6  ;;  %v896_v14 = vunpack.c.l.bf16 %v906_v7  ;;  %v897_v15 = vunpack.c.h.bf16 %v906_v7 }
  0x12   : > { %v1050_v9 = vrot.slane %v1038_v3, %v320_v4  ;;  %v1053_v10 = vrot.slane %v1038_v3, %v340_v5  ;;  %v900_v17 = vunpack.c.l.bf16 %v907_v8  ;;  %v901_v18 = vunpack.c.h.bf16 %v907_v8 }
  0x13   : > { %v904_v19 = vunpack.c.l.bf16 %v908_v16  ;;  %v905_v20 = vunpack.c.h.bf16 %v908_v16  ;;  %254 = vst.msk [vmem:[#allocation2 + $0x8] sm:$0xff] %vm233_vm0, %v892_v12  ;;  %255 = vst.msk [vmem:[#allocation2 + $0x10] sm:$0xff] %vm233_vm0, %v893_v13  ;;  %vm295_vm2 = vcmp.le.s32.totalorder %v1033_v2, 6  ;;  %v1069_v26 = vrot.slane %v1038_v3, %v360_v11 }
  0x14   : > { %v262_v21 = vld [vmem:[#allocation2] sm:$0xff]  ;;  %256 = vst.msk [vmem:[#allocation2 + $0x18] sm:$0xff] %vm233_vm0, %v896_v14  ;;  %257 = vst.msk [vmem:[#allocation2 + $0x20] sm:$0xff] %vm233_vm0, %v897_v15  ;;  %v380_v29 = vsub.s32 3, %v1033_v2  ;;  %v400_v30 = vsub.s32 4, %v1033_v2  ;;  %v420_v36 = vsub.s32 5, %v1033_v2 }
  0x15   : > { %v275_v22 = vrot.slane %v262_v21, 7  ;;  %v296_v23 = vrot.slane %v262_v21, 1  ;;  %258 = vst.msk [vmem:[#allocation2 + $0x28] sm:$0xff] %vm233_vm0, %v900_v17  ;;  %259 = vst.msk [vmem:[#allocation2 + $0x30] sm:$0xff] %vm233_vm0, %v901_v18  ;;  %v342_v25 = vmul.f32 %v1053_v10, %v262_v21  ;;  %v440_v37 = vsub.s32 6, %v1033_v2 }
  0x16   : > { %260 = vst.msk [vmem:[#allocation2 + $0x38] sm:$0xff] %vm233_vm0, %v904_v19  ;;  %261 = vst.msk [vmem:[#allocation2 + $0x40] sm:$0xff] %vm233_vm0, %v905_v20  ;;  %v1078_v35 = vrot.slane %v1038_v3, %v380_v29  ;;  %v460_v38 = vsub.s32 7, %v1033_v2  ;;  %v1086_v44 = vrot.slane %v1038_v3, %v400_v30  ;;  %v1098_v52 = vrot.slane %v1038_v3, %v420_v36  ;;  %v1131_v17 = vld [vmem:[%s1401_s1 + $0x8] ss:$0 sm:$0xff] }
  0x17   : > { %v285_v24 = vsel %vm274_vm1, %v275_v22, 0.0  ;;  %v306_v27 = vsel %vm295_vm2, %v296_v23, 0.0  ;;  %v1101_v53 = vrot.slane %v1038_v3, %v440_v37 }
  0x18   : > { %v322_v28 = vmul.f32 %v1050_v9, %v285_v24  ;;  %v362_v32 = vmul.f32 %v1069_v26, %v306_v27  ;;  %v1108_v57 = vrot.slane %v1038_v3, %v460_v38 }
  0x1a   : > { %v350_v31 = vadd.f32 %v342_v25, %v322_v28  ;;  %v263_v33 = vld [vmem:[#allocation2 + $0x8] sm:$0xff]  ;;  %v264_v34 = vld [vmem:[#allocation2 + $0x10] sm:$0xff] }
  0x1b   : > { %v1083_v39 = vld [vmem:[#allocation2 + $0x18] sm:$0xff]  ;;  %v276_v40 = vrot.slane %v263_v33, 7  ;;  %v277_v41 = vrot.slane %v264_v34, 7  ;;  %v297_v42 = vrot.slane %v263_v33, 1  ;;  %v298_v43 = vrot.slane %v264_v34, 1  ;;  %v1120_v6 = vld [vmem:[#allocation2 + $0x20] sm:$0xff] }
  0x1c   : > { %v278_v45 = vrot.slane %v1083_v39, 7  ;;  %v370_v49 = vadd.f32 %v362_v32, %v350_v31  ;;  %v344_v51 = vmul.f32 %v1053_v10, %v264_v34  ;;  %v402_v60 = vmul.f32 %v1086_v44, %v263_v33  ;;  %v1144_v36 = vld [vmem:[#allocation2 + $0x28] sm:$0xff] }
  0x1d   : > { %v286_v46 = vsel %vm274_vm1, %v276_v40, 0.0  ;;  %v287_v47 = vsel %vm274_vm1, %v277_v41, 0.0  ;;  %v308_v48 = vsel %vm295_vm2, %v298_v43, 0.0  ;;  %v307_v54 = vsel %vm295_vm2, %v297_v42, 0.0  ;;  %v271_v41 = vld [vmem:[#allocation2 + $0x48] sm:$0xff] }
  0x1e   : > { %v324_v50 = vmul.f32 %v1050_v9, %v287_v47  ;;  %v323_v55 = vmul.f32 %v1050_v9, %v286_v46  ;;  %v382_v56 = vmul.f32 %v1078_v35, %v286_v46  ;;  %v364_v59 = vmul.f32 %v1069_v26, %v308_v48  ;;  %v1150_v42 = vld [vmem:[%s1402_s2] ss:$0 sm:$0xff] }
  0x1f   : > { %v288_v61 = vsel %vm274_vm1, %v278_v45, 0.0  ;;  %v299_v63 = vrot.slane %v1083_v39, 1  ;;  %v343_v1 = vmul.f32 %v1053_v10, %v263_v33  ;;  %v363_v4 = vmul.f32 %v1069_v26, %v307_v54 }
  0x20   : > { %v352_v58 = vadd.f32 %v344_v51, %v324_v50  ;;  %v390_v62 = vadd.f32 %v382_v56, %v370_v49  ;;  %v325_v0 = vmul.f32 %v1050_v9, %v288_v61  ;;  %v345_v3 = vmul.f32 %v1053_v10, %v1083_v39 }
  0x21   : > { %v422_v8 = vmul.f32 %v1098_v52, %v307_v54  ;;  %v309_v11 = vsel %vm295_vm2, %v299_v63, 0.0  ;;  %v351_v12 = vadd.f32 %v343_v1, %v323_v55  ;;  %v383_v13 = vmul.f32 %v1078_v35, %v287_v47 }
  0x22   : > { %v372_v5 = vadd.f32 %v364_v59, %v352_v58  ;;  %v410_v7 = vadd.f32 %v402_v60, %v390_v62  ;;  %v462_v14 = vmul.f32 %v1108_v57, %v264_v34  ;;  %v353_v15 = vadd.f32 %v345_v3, %v325_v0 }
  0x23   : > { %v384_v16 = vmul.f32 %v1078_v35, %v288_v61  ;;  %v442_v19 = vmul.f32 %v1101_v53, %v287_v47  ;;  %v371_v20 = vadd.f32 %v363_v4, %v351_v12  ;;  %v279_v21 = vrot.slane %v1120_v6, 7 }
  0x24   : > { %v430_v18 = vadd.f32 %v422_v8, %v410_v7  ;;  %v365_v22 = vmul.f32 %v1069_v26, %v309_v11  ;;  %v403_v23 = vmul.f32 %v1086_v44, %v264_v34  ;;  %v300_v24 = vrot.slane %v1120_v6, 1 }
  0x25   : > { %v392_v25 = vadd.f32 %v384_v16, %v372_v5  ;;  %v391_v28 = vadd.f32 %v383_v13, %v371_v20  ;;  %v289_v29 = vsel %vm274_vm1, %v279_v21, 0.0  ;;  %v404_v30 = vmul.f32 %v1086_v44, %v1083_v39  ;;  %v1183_v21 = vld [vmem:[#allocation2 + $0x30] sm:$0xff] }
  0x26   : > { %v450_v27 = vadd.f32 %v442_v19, %v430_v18  ;;  %v423_v31 = vmul.f32 %v1098_v52, %v308_v48  ;;  %v482_v32 = vmul.f32 %v1131_v17, %v308_v48  ;;  %v373_v33 = vadd.f32 %v365_v22, %v353_v15 }
  0x27   : > { %v411_v34 = vadd.f32 %v403_v23, %v391_v28  ;;  %v424_v38 = vmul.f32 %v1098_v52, %v309_v11  ;;  %v412_v40 = vadd.f32 %v404_v30, %v392_v25  ;;  %v443_v43 = vmul.f32 %v1101_v53, %v288_v61 }
  0x28   : > { %v470_v37 = vadd.f32 %v462_v14, %v450_v27  ;;  %v310_v45 = vsel %vm295_vm2, %v300_v24, 0.0  ;;  %v385_v46 = vmul.f32 %v1078_v35, %v289_v29  ;;  %v444_v47 = vmul.f32 %v1101_v53, %v289_v29 }
  0x29   : > { %v431_v49 = vadd.f32 %v423_v31, %v411_v34  ;;  %v432_v50 = vadd.f32 %v424_v38, %v412_v40  ;;  %v280_v51 = vrot.slane %v1144_v36, 7  ;;  %v463_v54 = vmul.f32 %v1108_v57, %v1083_v39 }
  0x2a   : > { %v490_v48 = vadd.f32 %v482_v32, %v470_v37  ;;  %v393_v55 = vadd.f32 %v385_v46, %v373_v33  ;;  %v284_v56 = vrot.slane %v271_v41, 7  ;;  %v464_v61 = vmul.f32 %v1108_v57, %v1120_v6 }
  0x2b   : > { %v451_v59 = vadd.f32 %v443_v43, %v431_v49  ;;  %v452_v60 = vadd.f32 %v444_v47, %v432_v50  ;;  %v483_v62 = vmul.f32 %v1131_v17, %v309_v11  ;;  %v484_v63 = vmul.f32 %v1131_v17, %v310_v45 }
  0x2c   : > { %v1161_v58 = vadd.f32 %v1150_v42, %v490_v48  ;;  %v301_v0 = vrot.slane %v1144_v36, 1  ;;  %v405_v1 = vmul.f32 %v1086_v44, %v1120_v6  ;;  %v290_v3 = vsel %vm274_vm1, %v280_v51, 0.0 }
  0x2d   : > { %v471_v4 = vadd.f32 %v463_v54, %v451_v59  ;;  %v472_v5 = vadd.f32 %v464_v61, %v452_v60  ;;  %v425_v7 = vmul.f32 %v1098_v52, %v310_v45  ;;  %v294_v11 = vsel %vm274_vm1, %v284_v56, 0.0 }
  0x2e   : > { %v1171_v39 = vmul.f32 0.70710677, %v1161_v58  ;;  %v413_v8 = vadd.f32 %v405_v1, %v393_v55  ;;  %v305_v12 = vrot.slane %v271_v41, 1  ;;  %v326_v15 = vmul.f32 %v1050_v9, %v289_v29 }
  0x2f   : > { %v491_v14 = vadd.f32 %v483_v62, %v471_v4  ;;  %v492_v16 = vadd.f32 %v484_v63, %v472_v5  ;;  %v346_v18 = vmul.f32 %v1053_v10, %v1120_v6  ;;  %v445_v20 = vmul.f32 %v1101_v53, %v290_v3 }
  0x30   : > { %v521_v13 = vand.u32 2147483647, %v1171_v39  ;;  %v433_v19 = vadd.f32 %v425_v7, %v413_v8  ;;  %v1186_v22 = vmul.f32 %v1108_v57, %v271_v41  ;;  %v311_v27 = vsel %vm295_vm2, %v301_v0, 0.0 }
  0x31   : > { %v1189_v24 = vadd.f32 %v1150_v42, %v491_v14  ;;  %v1192_v25 = vadd.f32 %v1150_v42, %v492_v16  ;;  %v465_v29 = vmul.f32 %v1108_v57, %v1144_v36  ;;  %v315_v30 = vsel %vm295_vm2, %v305_v12, 0.0 }
  0x32   : > { %v529_v23 = vmul.f32 0.3275911, %v521_v13  ;;  %v633_v28 = vsub.f32 0.0, %v521_v13  ;;  %v453_v6 = vadd.f32 %v445_v20, %v433_v19  ;;  %v354_v33 = vadd.f32 %v346_v18, %v326_v15  ;;  %v269_v18 = vld [vmem:[#allocation2 + $0x38] sm:$0xff] }
  0x33   : > { %v1201_v32 = vmul.f32 0.70710677, %v1189_v24  ;;  %v281_v37 = vrot.slane %v1183_v21, 7  ;;  %v1205_v34 = vmul.f32 0.70710677, %v1192_v25  ;;  %v485_v40 = vmul.f32 %v1131_v17, %v311_v27 }
  0x34   : > { %v537_v31 = vadd.f32 1.0, %v529_v23  ;;  %v473_v38 = vadd.f32 %v465_v29, %v453_v6  ;;  %v1209_v41 = vmul.f32 %v1101_v53, %v294_v11  ;;  %v366_v46 = vmul.f32 %v1069_v26, %v310_v45 }
  0x35   : > { %v522_v43 = vand.u32 2147483647, %v1201_v32  ;;  %v327_v47 = vmul.f32 %v1050_v9, %v290_v3  ;;  %v641_v48 = vmul.f32 %v633_v28, %v521_v13  ;;  %v523_v49 = vand.u32 2147483647, %v1205_v34 }
  0x36   : > { %934 = vrcp.f32 %v537_v31  ;;  %v493_v50 = vadd.f32 %v485_v40, %v473_v38  ;;  %v1216_v51 = vmul.f32 %v1131_v17, %v315_v30  ;;  %v374_v55 = vadd.f32 %v366_v46, %v354_v33 }
  0x37   : > { %v530_v54 = vmul.f32 0.3275911, %v522_v43  ;;  %v347_v56 = vmul.f32 %v1053_v10, %v1144_v36  ;;  %v291_v59 = vsel %vm274_vm1, %v281_v37, 0.0  ;;  %v634_v60 = vsub.f32 0.0, %v522_v43 }
  0x38   : > { %v531_v61 = vmul.f32 0.3275911, %v523_v49  ;;  %v635_v45 = vsub.f32 0.0, %v523_v49  ;;  %v1223_v62 = vadd.f32 %v1150_v42, %v493_v50  ;;  %v386_v1 = vmul.f32 %v1078_v35, %v290_v3 }
  0x39   : > { %v538_v63 = vadd.f32 1.0, %v530_v54  ;;  %v355_v0 = vadd.f32 %v347_v56, %v327_v47  ;;  %v302_v4 = vrot.slane %v1183_v21, 1  ;;  %v649_v5 = vmul.f32 1.442695, %v641_v48 }
  0x3a   : > { %v539_v7 = vadd.f32 1.0, %v531_v61  ;;  %v1228_v8 = vmul.f32 0.70710677, %v1223_v62  ;;  %v328_v11 = vmul.f32 %v1050_v9, %v291_v59  ;;  %v367_v12 = vmul.f32 %v1069_v26, %v311_v27 }
  0x3b   : > { %936 = vrcp.f32 %v538_v63  ;;  %v348_v13 = vmul.f32 %v1053_v10, %v1183_v21  ;;  %v394_v14 = vadd.f32 %v386_v1, %v374_v55  ;;  %v642_v15 = vmul.f32 %v634_v60, %v522_v43 }
  0x3c   : > { %938 = vrcp.f32 %v539_v7  ;;  %v643_v16 = vmul.f32 %v635_v45, %v523_v49  ;;  %v524_v3 = vand.u32 2147483647, %v1228_v8  ;;  %v1236_v19 = vmul.f32 0.5, %v1161_v58 }
  0x3d   : > { %v375_v20 = vadd.f32 %v367_v12, %v355_v0  ;;  %v312_v23 = vsel %vm295_vm2, %v302_v4, 0.0  ;;  %v406_v28 = vmul.f32 %v1086_v44, %v1144_v36  ;;  %940 = vpow2.f32 %v649_v5 }
  0x3e   : > { %v426_v6 = vmul.f32 %v1098_v52, %v311_v27  ;;  %v532_v29 = vmul.f32 0.3275911, %v524_v3  ;;  %v356_v30 = vadd.f32 %v348_v13, %v328_v11  ;;  %v636_v31 = vsub.f32 0.0, %v524_v3 }
  0x3f   : > { %v387_v33 = vmul.f32 %v1078_v35, %v291_v59  ;;  %v414_v37 = vadd.f32 %v406_v28, %v394_v14  ;;  %v282_v38 = vrot.slane %v269_v18, 7  ;;  %v651_v40 = vmul.f32 1.442695, %v642_v15 }
  0x40   : > { %v653_v58 = vmul.f32 1.442695, %v643_v16  ;;  %v540_v43 = vadd.f32 1.0, %v532_v29  ;;  %v368_v46 = vmul.f32 %v1069_v26, %v312_v23  ;;  %v446_v48 = vmul.f32 %v1101_v53, %v291_v59  ;;  %v1263_v16 = vld [vmem:[#allocation2 + $0x40] sm:$0xff] }
  0x41   : > { %v434_v47 = vadd.f32 %v426_v6, %v414_v37  ;;  %v303_v49 = vrot.slane %v269_v18, 1  ;;  %v395_v36 = vadd.f32 %v387_v33, %v375_v20  ;;  %v292_v54 = vsel %vm274_vm1, %v282_v38, 0.0 }
  0x42   : > { %942 = vrcp.f32 %v540_v43  ;;  %v376_v27 = vadd.f32 %v368_v46, %v356_v30  ;;  %v407_v55 = vmul.f32 %v1086_v44, %v1183_v21  ;;  %v644_v60 = vmul.f32 %v636_v31, %v524_v3 }
  0x43   : > { %v1246_v50 = vpop.eup %934  ;;  %v454_v61 = vadd.f32 %v446_v48, %v434_v47  ;;  %v466_v45 = vmul.f32 %v1108_v57, %v1183_v21  ;;  %944 = vpow2.f32 %v651_v40  ;;  %v427_v59 = vmul.f32 %v1098_v52, %v312_v23 }
  0x44   : > { %v561_v56 = vmul.f32 1.0614054, %v1246_v50  ;;  %v486_v63 = vmul.f32 %v1131_v17, %v312_v23  ;;  %v415_v0 = vadd.f32 %v407_v55, %v395_v36  ;;  %v313_v5 = vsel %vm295_vm2, %v303_v49, 0.0 }
  0x45   : > { %v474_v4 = vadd.f32 %v466_v45, %v454_v61  ;;  %v388_v7 = vmul.f32 %v1078_v35, %v292_v54  ;;  %946 = vpow2.f32 %v653_v58  ;;  %v349_v11 = vmul.f32 %v1053_v10, %v269_v18 }
  0x46   : > { %v870_v1 = vadd.f32 -1.4531521, %v561_v56  ;;  %v435_v12 = vadd.f32 %v427_v59, %v415_v0  ;;  %v447_v13 = vmul.f32 %v1101_v53, %v292_v54  ;;  %v655_v14 = vmul.f32 1.442695, %v644_v60 }
  0x47   : > { %v494_v15 = vadd.f32 %v486_v63, %v474_v4  ;;  %v396_v3 = vadd.f32 %v388_v7, %v376_v27  ;;  %v329_v23 = vmul.f32 %v1050_v9, %v292_v54  ;;  %v467_v6 = vmul.f32 %v1108_v57, %v269_v18 }
  0x48   : > { %v577_v21 = vmul.f32 %v1246_v50, %v870_v1  ;;  %v1265_v20 = vpop.eup %936  ;;  %v455_v28 = vadd.f32 %v447_v13, %v435_v12  ;;  %v487_v29 = vmul.f32 %v1131_v17, %v313_v5  ;;  %v408_v37 = vmul.f32 %v1086_v44, %v269_v18 }
  0x49   : > { %v1270_v10 = vpop.eup %938  ;;  %v562_v31 = vmul.f32 1.0614054, %v1265_v20  ;;  %v1274_v33 = vadd.f32 %v1150_v42, %v494_v15  ;;  %v283_v9 = vrot.slane %v1263_v16, 7  ;;  %v304_v58 = vrot.slane %v1263_v16, 1 }
  0x4a   : > { %v585_v30 = vadd.f32 1.4214138, %v577_v21  ;;  %v563_v38 = vmul.f32 1.0614054, %v1270_v10  ;;  %v475_v40 = vadd.f32 %v467_v6, %v455_v28  ;;  %v941_v43 = vpop.eup %940  ;;  %v416_v49 = vadd.f32 %v408_v37, %v396_v3 }
  0x4b   : > { %v871_v47 = vadd.f32 -1.4531521, %v562_v31  ;;  %v1282_v48 = vmul.f32 0.70710677, %v1274_v33  ;;  %v357_v27 = vadd.f32 %v349_v11, %v329_v23  ;;  %v369_v54 = vmul.f32 %v1069_v26, %v313_v5 }
  0x4c   : > { %v593_v46 = vmul.f32 %v1246_v50, %v585_v30  ;;  %v872_v36 = vadd.f32 -1.4531521, %v563_v38  ;;  %v495_v18 = vadd.f32 %v487_v29, %v475_v40  ;;  %v428_v61 = vmul.f32 %v1098_v52, %v313_v5 }
  0x4d   : > { %v578_v56 = vmul.f32 %v1265_v20, %v871_v47  ;;  %v1287_v60 = vand.u32 2147483647, %v1282_v48  ;;  %v293_v63 = vsel %vm274_vm1, %v283_v9, 0.0  ;;  %v314_v26 = vsel %vm295_vm2, %v304_v58, 0.0 }
  0x4e   : > { %v878_v55 = vadd.f32 -0.28449672, %v593_v46  ;;  %v579_v45 = vmul.f32 %v1270_v10, %v872_v36  ;;  %v1292_v59 = vadd.f32 %v1150_v42, %v495_v18  ;;  %v436_v11 = vadd.f32 %v428_v61, %v416_v49 }
  0x4f   : > { %v1298_v0 = vpop.eup %942  ;;  %v586_v4 = vadd.f32 1.4214138, %v578_v56  ;;  %v533_v7 = vmul.f32 0.3275911, %v1287_v60  ;;  %v377_v13 = vadd.f32 %v369_v54, %v357_v27  ;;  %v448_v28 = vmul.f32 %v1101_v53, %v293_v63 }
  0x50   : > { %v609_v1 = vmul.f32 %v1246_v50, %v878_v55  ;;  %v587_v5 = vadd.f32 1.4214138, %v579_v45  ;;  %v564_v12 = vmul.f32 1.0614054, %v1298_v0  ;;  %v1304_v21 = vmul.f32 0.70710677, %v1292_v59  ;;  %v945_v15 = vpop.eup %944 }
  0x51   : > { %v594_v2 = vmul.f32 %v1265_v20, %v586_v4  ;;  %v541_v23 = vadd.f32 1.0, %v533_v7  ;;  %v389_v31 = vmul.f32 %v1078_v35, %v293_v63  ;;  %v456_v9 = vadd.f32 %v448_v28, %v436_v11 }
  0x52   : > { %v617_v3 = vadd.f32 0.2548296, %v609_v1  ;;  %v595_v6 = vmul.f32 %v1270_v10, %v587_v5  ;;  %v873_v29 = vadd.f32 -1.4531521, %v564_v12  ;;  %v1310_v30 = vand.u32 2147483647, %v1304_v21  ;;  %v947_v37 = vpop.eup %946 }
  0x53   : > { %v879_v40 = vadd.f32 -0.28449672, %v594_v2  ;;  %948 = vrcp.f32 %v541_v23  ;;  %vm681_vm3 = vcmp.ge.f32.partialorder %v1171_v39, 0.0  ;;  %v468_v35 = vmul.f32 %v1108_v57, %v1263_v16 }
  0x54   : > { %v625_v38 = vmul.f32 %v1246_v50, %v617_v3  ;;  %v880_v58 = vadd.f32 -0.28449672, %v595_v6  ;;  %v580_v46 = vmul.f32 %v1298_v0, %v873_v29  ;;  %950 = vpow2.f32 %v655_v14 }
  0x55   : > { %v534_v53 = vmul.f32 0.3275911, %v1310_v30  ;;  %v610_v49 = vmul.f32 %v1265_v20, %v879_v40  ;;  %v488_v54 = vmul.f32 %v1131_v17, %v314_v26  ;;  %v476_v14 = vadd.f32 %v468_v35, %v456_v9 }
  0x56   : > { %v665_v47 = vmul.f32 %v941_v43, %v625_v38  ;;  %v611_v36 = vmul.f32 %v1270_v10, %v880_v58  ;;  %v588_v50 = vadd.f32 1.4214138, %v580_v46  ;;  %v397_v56 = vadd.f32 %v389_v31, %v377_v13 }
  0x57   : > { %v542_v27 = vadd.f32 1.0, %v534_v53  ;;  %v618_v55 = vadd.f32 0.2548296, %v610_v49  ;;  %v637_v45 = vsub.f32 0.0, %v1287_v60  ;;  %v496_v1 = vadd.f32 %v488_v54, %v476_v14 }
  0x58   : > { %v673_v18 = vsub.f32 1.0, %v665_v47  ;;  %v619_v61 = vadd.f32 0.2548296, %v611_v36  ;;  %v596_v43 = vmul.f32 %v1298_v0, %v588_v50  ;;  %v409_v4 = vmul.f32 %v1086_v44, %v1263_v16 }
  0x59   : > { %952 = vrcp.f32 %v542_v27  ;;  %v626_v57 = vmul.f32 %v1265_v20, %v618_v55  ;;  %v706_v17 = vmul.f32 0.5, %v1189_v24  ;;  %v429_v5 = vmul.f32 %v1098_v52, %v314_v26 }
  0x5a   : > { %v689_v63 = vsub.f32 0.0, %v673_v18  ;;  %v627_v7 = vmul.f32 %v1270_v10, %v619_v61  ;;  %v881_v11 = vadd.f32 -0.28449672, %v596_v43  ;;  %v1333_v3 = vadd.f32 %v1150_v42, %v496_v1 }
  0x5b   : > { %v666_v13 = vmul.f32 %v945_v15, %v626_v57  ;;  %v417_v20 = vadd.f32 %v409_v4, %v397_v56  ;;  %v645_v24 = vmul.f32 %v637_v45, %v1287_v60  ;;  %v638_v10 = vsub.f32 0.0, %v1310_v30 }
  0x5c   : > { %v697_v12 = vsel %vm681_vm3, %v673_v18, %v689_v63  ;;  %v667_v23 = vmul.f32 %v947_v37, %v627_v7  ;;  %v612_v44 = vmul.f32 %v1298_v0, %v881_v11  ;;  %v1339_v52 = vmul.f32 0.70710677, %v1333_v3 }
  0x5d   : > { %v713_v2 = vadd.f32 1.0, %v697_v12  ;;  %v674_v16 = vsub.f32 1.0, %v666_v13  ;;  %v437_v39 = vadd.f32 %v429_v5, %v417_v20  ;;  %vm682_vm5 = vcmp.ge.f32.partialorder %v1201_v32, 0.0 }
  0x5e   : > { %v675_v15 = vsub.f32 1.0, %v667_v23  ;;  %v620_v28 = vadd.f32 0.2548296, %v612_v44  ;;  %vm683_vm6 = vcmp.ge.f32.partialorder %v1205_v34, 0.0  ;;  %v527_v6 = vand.u32 2147483647, %v1339_v52 }
  0x5f   : > { %v721_v26 = vmul.f32 %v713_v2, %v1236_v19  ;;  %v690_v60 = vsub.f32 0.0, %v674_v16  ;;  %v457_v29 = vadd.f32 %v1209_v41, %v437_v39  ;;  %v657_v38 = vmul.f32 1.442695, %v645_v24 }
  0x60   : > { %v949_v31 = vpop.eup %948  ;;  %v691_v37 = vsub.f32 0.0, %v675_v15  ;;  %v628_v32 = vmul.f32 %v1298_v0, %v620_v28  ;;  %v646_v46 = vmul.f32 %v638_v10, %v1310_v30  ;;  %v535_v53 = vmul.f32 0.3275911, %v527_v6 }
  0x61   : > { %v729_v19 = vpack.c.bf16 %v721_v26, %v721_v26  ;;  %v951_v40 = vpop.eup %950  ;;  %v698_v9 = vsel %vm682_vm5, %v674_v16, %v690_v60  ;;  %v565_v58 = vmul.f32 1.0614054, %v949_v31  ;;  %v477_v35 = vadd.f32 %v1186_v22, %v457_v29 }
  0x62   : > { %v714_v47 = vadd.f32 1.0, %v698_v9  ;;  %v699_v34 = vsel %vm683_vm6, %v675_v15, %v691_v37  ;;  %v668_v49 = vmul.f32 %v951_v40, %v628_v32  ;;  %v707_v41 = vmul.f32 0.5, %v1192_v25 }
  0x63   : > { %738 = vst.msk [vmem:[%s1348_s28] sm:$0xf] %vm737_vm4, %v729_v19  ;;  %v715_v36 = vadd.f32 1.0, %v699_v34  ;;  %v874_v50 = vadd.f32 -1.4531521, %v565_v58  ;;  %v543_v27 = vadd.f32 1.0, %v535_v53  ;;  %954 = vpow2.f32 %v657_v38 }
  0x64   : > { %v722_v0 = vmul.f32 %v714_v47, %v706_v17  ;;  %v676_v54 = vsub.f32 1.0, %v668_v49  ;;  %v497_v18 = vadd.f32 %v1216_v51, %v477_v35  ;;  %v659_v56 = vmul.f32 1.442695, %v646_v46 }
  0x65   : > { %v723_v55 = vmul.f32 %v715_v36, %v707_v41  ;;  %v581_v14 = vmul.f32 %v949_v31, %v874_v50  ;;  %956 = vrcp.f32 %v543_v27  ;;  %vm684_vm7 = vcmp.ge.f32.partialorder %v1228_v8, 0.0 }
  0x66   : > { %v953_v30 = vpop.eup %952  ;;  %v730_v61 = vpack.c.bf16 %v722_v0, %v722_v0  ;;  %v692_v43 = vsub.f32 0.0, %v676_v54  ;;  %v1361_v25 = vadd.f32 %v1150_v42, %v497_v18  ;;  %v708_v4 = vmul.f32 0.5, %v1223_v62 }
  0x67   : > { %v566_v22 = vmul.f32 1.0614054, %v953_v30  ;;  %v731_v45 = vpack.c.bf16 %v723_v55, %v723_v55  ;;  %v589_v63 = vadd.f32 1.4214138, %v581_v14  ;;  %958 = vpow2.f32 %v659_v56 }
  0x68   : > { %739 = vst.msk [vmem:[%s1348_s28 + $0x4] sm:$0xf] %vm737_vm4, %v730_v61  ;;  %v700_v57 = vsel %vm684_vm7, %v676_v54, %v692_v43  ;;  %v1367_v1 = vmul.f32 0.70710677, %v1361_v25  ;;  %v639_v12 = vsub.f32 0.0, %v527_v6  ;;  %vm685_vm8 = vcmp.ge.f32.partialorder %v1282_v48, 0.0 }
  0x69   : > { %v875_v51 = vadd.f32 -1.4531521, %v566_v22  ;;  %740 = vst.msk [vmem:[%s1348_s28 + $0x8] sm:$0xf] %vm737_vm4, %v731_v45  ;;  %v716_v17 = vadd.f32 1.0, %v700_v57  ;;  %v597_v7 = vmul.f32 %v949_v31, %v589_v63  ;;  %vm686_vm9 = vcmp.ge.f32.partialorder %v1304_v21, 0.0 }
  0x6a   : > { %v528_v11 = vand.u32 2147483647, %v1367_v1  ;;  %v647_v10 = vmul.f32 %v639_v12, %v527_v6  ;;  %v710_v14 = vmul.f32 0.5, %v1292_v59  ;;  %vm687_vm10 = vcmp.ge.f32.partialorder %v1339_v52, 0.0 }
  0x6b   : > { %v582_v42 = vmul.f32 %v953_v30, %v875_v51  ;;  %v724_v8 = vmul.f32 %v716_v17, %v708_v4  ;;  %v882_v5 = vadd.f32 -0.28449672, %v597_v7  ;;  %vm688_vm11 = vcmp.ge.f32.partialorder %v1367_v1, 0.0 }
  0x6c   : > { %v536_v20 = vmul.f32 0.3275911, %v528_v11  ;;  %v661_v19 = vmul.f32 1.442695, %v647_v10  ;;  %v640_v9 = vsub.f32 0.0, %v528_v11  ;;  %v712_v52 = vmul.f32 0.5, %v1361_v25 }
  0x6d   : > { %v590_v13 = vadd.f32 1.4214138, %v582_v42  ;;  %v732_v2 = vpack.c.bf16 %v724_v8, %v724_v8  ;;  %v613_v23 = vmul.f32 %v949_v31, %v882_v5  ;;  %v711_v5 = vmul.f32 0.5, %v1333_v3 }
  0x6e   : > { %v544_v24 = vadd.f32 1.0, %v536_v20  ;;  %v648_v41 = vmul.f32 %v640_v9, %v528_v11 }
  0x6f   : > { %v598_v44 = vmul.f32 %v953_v30, %v590_v13  ;;  %741 = vst.msk [vmem:[%s1348_s28 + $0xc] sm:$0xf] %vm737_vm4, %v732_v2  ;;  %v621_v16 = vadd.f32 0.2548296, %v613_v23 }
  0x70   : > { %960 = vrcp.f32 %v544_v24  ;;  %v955_v39 = vpop.eup %954  ;;  %v663_v55 = vmul.f32 1.442695, %v648_v41 }
  0x71   : > { %v883_v62 = vadd.f32 -0.28449672, %v598_v44  ;;  %v629_v26 = vmul.f32 %v949_v31, %v621_v16  ;;  %962 = vpow2.f32 %v661_v19  ;;  %v709_v31 = vmul.f32 0.5, %v1274_v33 }
  0x72   : > { %v957_v15 = vpop.eup %956  ;;  %964 = vpow2.f32 %v663_v55 }
  0x73   : > { %v614_v28 = vmul.f32 %v953_v30, %v883_v62  ;;  %v669_v60 = vmul.f32 %v955_v39, %v629_v26  ;;  %v567_v29 = vmul.f32 1.0614054, %v957_v15 }
  0x74   : > { %v959_v58 = vpop.eup %958 }
  0x75   : > { %v622_v37 = vadd.f32 0.2548296, %v614_v28  ;;  %v677_v32 = vsub.f32 1.0, %v669_v60  ;;  %v876_v38 = vadd.f32 -1.4531521, %v567_v29 }
  0x77   : > { %v630_v40 = vmul.f32 %v953_v30, %v622_v37  ;;  %v693_v46 = vsub.f32 0.0, %v677_v32  ;;  %v583_v53 = vmul.f32 %v957_v15, %v876_v38 }
  0x79   : > { %v670_v6 = vmul.f32 %v959_v58, %v630_v40  ;;  %v701_v47 = vsel %vm685_vm8, %v677_v32, %v693_v46  ;;  %v591_v34 = vadd.f32 1.4214138, %v583_v53 }
  0x7a   : > { %v717_v49 = vadd.f32 1.0, %v701_v47 }
  0x7b   : > { %v678_v35 = vsub.f32 1.0, %v670_v6  ;;  %v599_v36 = vmul.f32 %v957_v15, %v591_v34 }
  0x7c   : > { %v725_v50 = vmul.f32 %v717_v49, %v709_v31 }
  0x7d   : > { %v694_v27 = vsub.f32 0.0, %v678_v35  ;;  %v961_v0 = vpop.eup %960  ;;  %v884_v54 = vadd.f32 -0.28449672, %v599_v36 }
  0x7e   : > { %v733_v18 = vpack.c.bf16 %v725_v50, %v725_v50  ;;  %v568_v48 = vmul.f32 1.0614054, %v961_v0  ;;  %v963_v21 = vpop.eup %962 }
  0x7f   : > { %v702_v30 = vsel %vm686_vm9, %v678_v35, %v694_v27  ;;  %v615_v33 = vmul.f32 %v957_v15, %v884_v54  ;;  %v965_v23 = vpop.eup %964 }
  0x80   : > { %v718_v56 = vadd.f32 1.0, %v702_v30  ;;  %742 = vst.msk [vmem:[%s1348_s28 + $0x10] sm:$0xf] %vm737_vm4, %v733_v18  ;;  %v877_v61 = vadd.f32 -1.4531521, %v568_v48 }
  0x81   : > { %v623_v22 = vadd.f32 0.2548296, %v615_v33 }
  0x82   : > { %v726_v43 = vmul.f32 %v718_v56, %v710_v14  ;;  %v584_v45 = vmul.f32 %v961_v0, %v877_v61 }
  0x83   : > { %v631_v57 = vmul.f32 %v957_v15, %v623_v22 }
  0x84   : > { %v734_v63 = vpack.c.bf16 %v726_v43, %v726_v43  ;;  %v592_v51 = vadd.f32 1.4214138, %v584_v45 }
  0x85   : > { %v671_v4 = vmul.f32 %v963_v21, %v631_v57 }
  0x86   : > { %743 = vst.msk [vmem:[%s1348_s28 + $0x14] sm:$0xf] %vm737_vm4, %v734_v63  ;;  %v600_v17 = vmul.f32 %v961_v0, %v592_v51 }
  0x87   : > { %v679_v7 = vsub.f32 1.0, %v671_v4 }
  0x88   : > { %v885_v59 = vadd.f32 -0.28449672, %v600_v17 }
  0x89   : > { %v695_v42 = vsub.f32 0.0, %v679_v7 }
  0x8a   : > { %v616_v11 = vmul.f32 %v961_v0, %v885_v59 }
  0x8b   : > { %v703_v8 = vsel %vm687_vm10, %v679_v7, %v695_v42 }
  0x8c   : > { %v719_v12 = vadd.f32 1.0, %v703_v8  ;;  %v624_v13 = vadd.f32 0.2548296, %v616_v11 }
  0x8e   : > { %v727_v20 = vmul.f32 %v719_v12, %v711_v5  ;;  %v632_v2 = vmul.f32 %v961_v0, %v624_v13 }
  0x90   : > { %v735_v44 = vpack.c.bf16 %v727_v20, %v727_v20  ;;  %v672_v24 = vmul.f32 %v965_v23, %v632_v2 }
  0x92   : > { %744 = vst.msk [vmem:[%s1348_s28 + $0x18] sm:$0xf] %vm737_vm4, %v735_v44  ;;  %v680_v16 = vsub.f32 1.0, %v672_v24 }
  0x94   : > { %v696_v10 = vsub.f32 0.0, %v680_v16 }
  0x96   : > { %v704_v62 = vsel %vm688_vm11, %v680_v16, %v696_v10 }
  0x97   : > { %v720_v39 = vadd.f32 1.0, %v704_v62 }
  0x99   : > { %v728_v26 = vmul.f32 %v720_v39, %v712_v52 }
  0x9b   : > { %v736_v3 = vpack.c.bf16 %v728_v26, %v728_v26 }
  0x9d   : > { %745 = vst.msk [vmem:[%s1348_s28 + $0x1c] sm:$0xf] %vm737_vm4, %v736_v3 }
  0x9e PF: > { %s13_s14 = sadd.s32 1, %s988_s14   ;;  %s1404_s12 = smov %s984_s13 }
  0x9f   : > { %p10_p5 = scmp.ge.s32.totalorder %s13_s14, 4   ;;  %s1405_s13 = smov %s1407_s15 }
  0xa1   :  { %12 = sbr.rel (!%p10_p5) target bundleno = 2 (0x2), region = 70 }

</bundles_post_ra>
